<compile_context>
chip_gen: v7x
topology: tpu7x:2x2x1
jax: 0.10.0
libtpu: 0.0.40
codegen_flags: <defaults>
</compile_context>

<pallas_src>
import functools
import math

import jax
import jax.numpy as jnp
import numpy as np
from jax.experimental import pallas as pl
from jax.experimental.pallas import tpu as pltpu


def _round_up(x, m):
    return (x + m - 1) // m * m


def _full_spec(a):
    """Full-extent BlockSpec (same block every grid step -> stays resident)."""
    zeros = (0,) * a.ndim
    return pl.BlockSpec(a.shape, lambda b: zeros)


# --------------------------- fused decoder block ---------------------------- #

def _decoder_block_kernel(
        x_ref, enc_ref,
        wqkv_ref, bqkv_ref, wo1_ref, bo1_ref, g1_ref, be1_ref,
        wq_ref, bq_ref, wkv_ref, bkv_ref, wo2_ref, bo2_ref, g2_ref, be2_ref,
        w1_ref, b1_ref, w2_ref, b2_ref, g3_ref, be3_ref,
        o_ref, *, num_heads, head_size, eps):
    hd = num_heads * head_size
    scale = 1.0 / math.sqrt(head_size)
    neg_big = jnp.finfo(jnp.float32).min

    def layernorm(y, g, b):                       # y: (S, D) f32
        mean = jnp.mean(y, axis=-1, keepdims=True)
        var = jnp.mean((y - mean) ** 2, axis=-1, keepdims=True)
        return (y - mean) * jax.lax.rsqrt(var + eps) * g + b

    def mha(q, k, v, wo, causal):
        # q: (Sq, hd) bf16, k/v: (Sk, hd) bf16, wo: (hd, d_out) bf16
        Sq, Sk = q.shape[0], k.shape[0]
        d_out = wo.shape[1]
        if causal:
            row = jax.lax.broadcasted_iota(jnp.int32, (Sq, Sk), 0)
            col = jax.lax.broadcasted_iota(jnp.int32, (Sq, Sk), 1)
            keep = col <= row                     # built in-kernel, no mask DMA
        acc = jnp.zeros((Sq, d_out), jnp.float32)
        # Heads unrolled at trace time on VMEM-resident sub-vreg tiles; the
        # output projection is fused per head (sum_h ctx_h @ wo_h == concat @ wo),
        # so there is no concatenate and ctx never leaves the kernel.
        for hidx in range(num_heads):
            sl = slice(hidx * head_size, (hidx + 1) * head_size)
            s = jax.lax.dot_general(q[:, sl], k[:, sl], (((1,), (1,)), ((), ())),
                                    preferred_element_type=jnp.float32) * scale
            if causal:
                s = jnp.where(keep, s, neg_big)
            s = s - jnp.max(s, axis=-1, keepdims=True)
            p = jnp.exp(s)
            p = p / jnp.sum(p, axis=-1, keepdims=True)      # exact softmax
            ctx = jnp.dot(p.astype(v.dtype), v[:, sl],
                          preferred_element_type=jnp.float32)
            acc = acc + jnp.dot(ctx.astype(wo.dtype), wo[sl, :],
                                preferred_element_type=jnp.float32)
        return acc

    x_bf = x_ref[0]                               # (S, d_in) bf16
    x_f32 = x_bf.astype(jnp.float32)
    enc = enc_ref[0]                              # (S_enc, d_enc) bf16

    # ---- self-attention (fused Q|K|V projection, causal) + out-proj + LN ----
    qkv = (jnp.dot(x_bf, wqkv_ref[...], preferred_element_type=jnp.float32)
           + bqkv_ref[...]).astype(jnp.bfloat16)                 # (S, 3*hd)
    sa = mha(qkv[:, :hd], qkv[:, hd:2 * hd], qkv[:, 2 * hd:],
             wo1_ref[...], causal=True) + bo1_ref[...]
    x1 = layernorm(x_f32 + sa, g1_ref[...], be1_ref[...])        # (S, d_out) f32

    # ---- cross-attention (fused K|V projection) + out-proj + residual + LN ----
    q = (jnp.dot(x1.astype(jnp.bfloat16), wq_ref[...],
                 preferred_element_type=jnp.float32) + bq_ref[...]
         ).astype(jnp.bfloat16)                                  # (S, hd)
    kv = (jnp.dot(enc, wkv_ref[...], preferred_element_type=jnp.float32)
          + bkv_ref[...]).astype(jnp.bfloat16)                   # (S_enc, 2*hd)
    ca = mha(q, kv[:, :hd], kv[:, hd:], wo2_ref[...], causal=False) + bo2_ref[...]
    x2 = layernorm(x1 + ca, g2_ref[...], be2_ref[...])

    # ---- FFN (single-shot: hidden dim fits one block) + residual + LN ----
    hidden = jnp.dot(x2.astype(jnp.bfloat16), w1_ref[...],
                     preferred_element_type=jnp.float32) + b1_ref[...]
    hidden = jnp.maximum(hidden, 0.0).astype(jnp.bfloat16)
    ff = jnp.dot(hidden, w2_ref[...], preferred_element_type=jnp.float32) + b2_ref[...]
    x3 = layernorm(x2 + ff, g3_ref[...], be3_ref[...])

    o_ref[0] = x3.astype(o_ref.dtype)


def decoder_block(x, enc, p, num_heads, head_size, eps=1e-5):
    """One fused pallas_call for a whole decoder block. x/enc are bf16."""
    B, S, d_in = x.shape
    S_enc, d_enc = enc.shape[1], enc.shape[2]
    d_out = p["wo1"].shape[1]

    weights = [p["wqkv"], p["bqkv"], p["wo1"], p["bo1"], p["g1"], p["be1"],
               p["wq"], p["bq"], p["wkv"], p["bkv"], p["wo2"], p["bo2"],
               p["g2"], p["be2"],
               p["w1"], p["b1"], p["w2"], p["b2"], p["g3"], p["be3"]]

    return pl.pallas_call(
        functools.partial(_decoder_block_kernel, num_heads=num_heads,
                          head_size=head_size, eps=eps),
        grid=(B,),
        in_specs=[pl.BlockSpec((1, S, d_in), lambda b: (b, 0, 0)),
                  pl.BlockSpec((1, S_enc, d_enc), lambda b: (b, 0, 0))]
                 + [_full_spec(w) for w in weights],
        out_specs=pl.BlockSpec((1, S, d_out), lambda b: (b, 0, 0)),
        out_shape=jax.ShapeDtypeStruct((B, S, d_out), jnp.bfloat16),
        compiler_params=pltpu.CompilerParams(dimension_semantics=("parallel",)),
    )(x, enc, *weights)


# ------------------------------ output linear ------------------------------- #

def _fc_kernel(x_ref, w_ref, b_ref, o_ref):
    o_ref[0] = (jnp.dot(x_ref[0], w_ref[...], preferred_element_type=jnp.float32)
                + b_ref[...]).astype(o_ref.dtype)


def output_fc(x, w_pad, b_pad, vocab):
    """Logits = x @ w + b.  Weight pre-padded once at init so the store is
    lane-dense (last dim 128); a single slice to `vocab` at the end."""
    B, S, d = x.shape
    Np = w_pad.shape[1]
    out = pl.pallas_call(
        _fc_kernel,
        grid=(B,),
        in_specs=[pl.BlockSpec((1, S, d), lambda b: (b, 0, 0)),
                  _full_spec(w_pad),
                  _full_spec(b_pad)],
        out_specs=pl.BlockSpec((1, S, Np), lambda b: (b, 0, 0)),
        out_shape=jax.ShapeDtypeStruct((B, S, Np), jnp.float32),
        compiler_params=pltpu.CompilerParams(dimension_semantics=("parallel",)),
    )(x, w_pad, b_pad)
    return out[..., :vocab]


# ------------------------------ model pieces -------------------------------- #

def sinusoidal_pe(max_len, d):
    pos = np.arange(max_len, dtype=np.float32)[:, None]
    i = np.arange(d, dtype=np.float32)[None, :]
    angle = pos / np.power(10000.0, (2.0 * np.floor(i / 2.0)) / d)
    pe = np.where((np.arange(d)[None, :] % 2) == 0, np.sin(angle), np.cos(angle))
    return jnp.asarray(pe, dtype=jnp.float32)


def transformer_decoder_forward(params, decoder_input, encoder_output, cfg):
    # embedding gather + positional encoding stay in plain JAX (glue ops)
    emb = jnp.take(params["embedding"], decoder_input, axis=0)    # (B, S, in_size)
    S = decoder_input.shape[1]
    x = (emb + params["pe"][:S][None, :, :]).astype(jnp.bfloat16)
    # TODO(synk): nn.Dropout is identity in eval mode; training-time dropout not implemented.
    enc = encoder_output.astype(jnp.bfloat16)
    for blk in params["blocks"]:
        x = decoder_block(x, enc, blk, cfg["num_heads"], cfg["head_size"])
    return output_fc(x, params["fc_w"], params["fc_b"], cfg["vocab_size"])


# ------------------------------ parameter init ------------------------------ #

def init_params(key, cfg):
    # residual adds require matching feature dims (same constraint as the torch module)
    assert cfg["in_size"] == cfg["out_size"], "residual connections need in_size == out_size"
    keys = iter(jax.random.split(key, 512))
    hd = cfg["num_heads"] * cfg["head_size"]

    def dense(fan_in, fan_out):
        # weights stored bf16 in HBM (halves DMA); accumulation stays f32 in-kernel
        return (jax.random.normal(next(keys), (fan_in, fan_out), jnp.float32)
                * 0.02).astype(jnp.bfloat16)

    def bias(n):
        return jnp.zeros((1, n), jnp.float32)

    def gamma(n):
        return jnp.ones((1, n), jnp.float32)

    blocks = []
    for layer in range(cfg["num_layers"]):
        d_in = cfg["in_size"] if layer == 0 else cfg["out_size"]
        d_out = cfg["out_size"]
        blocks.append({
            # self attention (Q|K|V fused)
            "wqkv": dense(d_in, 3 * hd), "bqkv": bias(3 * hd),
            "wo1": dense(hd, d_out), "bo1": bias(d_out),
            "g1": gamma(d_out), "be1": bias(d_out),
            # cross attention (K|V fused)
            "wq": dense(d_out, hd), "bq": bias(hd),
            "wkv": dense(cfg["encoder_out_size"], 2 * hd), "bkv": bias(2 * hd),
            "wo2": dense(hd, d_out), "bo2": bias(d_out),
            "g2": gamma(d_out), "be2": bias(d_out),
            # FFN
            "w1": dense(d_out, cfg["fc_hidden_size"]), "b1": bias(cfg["fc_hidden_size"]),
            "w2": dense(cfg["fc_hidden_size"], d_out), "b2": bias(d_out),
            "g3": gamma(d_out), "be3": bias(d_out),
        })

    # final fc: pad the vocab dim to a lane multiple ONCE at init (no per-call pads)
    vocab_pad = _round_up(max(cfg["vocab_size"], 128), 128)
    fc_w = jnp.zeros((cfg["out_size"], vocab_pad), jnp.bfloat16)
    fc_w = fc_w.at[:, :cfg["vocab_size"]].set(dense(cfg["out_size"], cfg["vocab_size"]))
    fc_b = jnp.zeros((1, vocab_pad), jnp.float32)

    return {
        "embedding": jax.random.normal(next(keys), (cfg["vocab_size"], cfg["in_size"]),
                                       jnp.float32) * 0.02,
        "pe": sinusoidal_pe(cfg["max_seq_len"], cfg["in_size"]),
        "blocks": blocks,
        "fc_w": fc_w,
        "fc_b": fc_b,
    }


# ----------------------------------- main ------------------------------------ #

if __name__ == "__main__":
    cfg = dict(
        vocab_size=50, max_seq_len=16,
        in_size=32, out_size=32,
        head_size=8, num_heads=4, num_layers=2,
        dropout_p=0.1, fc_hidden_size=64,
        encoder_out_size=32,
    )

    B, S, S_enc = 2, 8, 8

    key = jax.random.PRNGKey(0)
    k_par, k_ids, k_enc = jax.random.split(key, 3)

    params = init_params(k_par, cfg)
    decoder_input = jax.random.randint(k_ids, (B, S), 0, cfg["vocab_size"], dtype=jnp.int32)
    encoder_output = jax.random.normal(k_enc, (B, S_enc, cfg["encoder_out_size"]), jnp.float32)

    fwd = jax.jit(lambda p, di, eo: transformer_decoder_forward(p, di, eo, cfg))
    logits = fwd(params, decoder_input, encoder_output)
    jax.block_until_ready(logits)

    assert logits.shape == (B, S, cfg["vocab_size"])
    assert bool(jnp.all(jnp.isfinite(logits)))
    print("KERNEL_OK")
</pallas_src>

<mosaic_0001>
module attributes {stable_mosaic.version = 11 : i64} {
  func.func @_fc_kernel(%arg0: i32, %arg1: memref<1x8x32xbf16, #tpu.memory_space<vmem>>, %arg2: memref<32x128xbf16, #tpu.memory_space<vmem>>, %arg3: memref<1x128xf32, #tpu.memory_space<vmem>>, %arg4: memref<1x8x128xf32, #tpu.memory_space<vmem>>) attributes {dimension_semantics = [#tpu.dimension_semantics<parallel>], iteration_bounds = array<i64: 2>, scalar_prefetch = 0 : i64, scratch_operands = 0 : i64, tpu.core_type = #tpu.core_type<tc>, window_params = [{transform_indices = @transform_0, window_bounds = array<i64: 1, 8, 32>}, {pipeline_mode = #tpu.pipeline_mode<synchronous>, transform_indices = @transform_1, window_bounds = array<i64: 32, 128>}, {pipeline_mode = #tpu.pipeline_mode<synchronous>, transform_indices = @transform_2, window_bounds = array<i64: 1, 128>}, {transform_indices = @transform_3, window_bounds = array<i64: 1, 8, 128>}]} {
    %c0 = arith.constant 0 : index
    %c0_0 = arith.constant 0 : index
    %c0_1 = arith.constant 0 : index
    %0 = vector.load %arg1[%c0, %c0_0, %c0_1] : memref<1x8x32xbf16, #tpu.memory_space<vmem>>, vector<1x8x32xbf16>
    %1 = vector.shape_cast %0 : vector<1x8x32xbf16> to vector<8x32xbf16>
    %c0_2 = arith.constant 0 : index
    %c0_3 = arith.constant 0 : index
    %2 = vector.load %arg2[%c0_2, %c0_3] : memref<32x128xbf16, #tpu.memory_space<vmem>>, vector<32x128xbf16>
    %cst = arith.constant dense<0.000000e+00> : vector<8x128xf32>
    %3 = tpu.matmul %1, %2, %cst {dimension_numbers = #tpu.dot_dimension_numbers<[1], [0], [0], [1], [0, 0, 1, 1], [], []>} : vector<8x32xbf16>, vector<32x128xbf16>, vector<8x128xf32> -> vector<8x128xf32>
    %c0_4 = arith.constant 0 : index
    %c0_5 = arith.constant 0 : index
    %4 = vector.load %arg3[%c0_4, %c0_5] : memref<1x128xf32, #tpu.memory_space<vmem>>, vector<1x128xf32>
    %5 = vector.broadcast %4 : vector<1x128xf32> to vector<8x128xf32>
    %6 = arith.addf %3, %5 : vector<8x128xf32>
    %c0_6 = arith.constant 0 : index
    %c0_7 = arith.constant 0 : index
    %c0_8 = arith.constant 0 : index
    %7 = vector.load %arg4[%c0_6, %c0_7, %c0_8] : memref<1x8x128xf32, #tpu.memory_space<vmem>>, vector<1x8x128xf32>
    %8 = vector.shape_cast %7 : vector<1x8x128xf32> to vector<8x128xf32>
    %9 = vector.shape_cast %6 : vector<8x128xf32> to vector<1x8x128xf32>
    tpu.vector_store %arg4[%c0_6, %c0_7, %c0_8], %9 {strides = array<i32>} : memref<1x8x128xf32, #tpu.memory_space<vmem>>, vector<1x8x128xf32>,
    return
  }
  func.func @transform_0(%arg0: i32) -> (i32, i32, i32) {
    %c0_i32 = arith.constant 0 : i32
    %c0_i32_0 = arith.constant 0 : i32
    %c0_i32_1 = arith.constant 0 : i32
    return %arg0, %c0_i32, %c0_i32_0 : i32, i32, i32
  }
  func.func @transform_1(%arg0: i32) -> (i32, i32) {
    %c0_i32 = arith.constant 0 : i32
    %c0_i32_0 = arith.constant 0 : i32
    %c0_i32_1 = arith.constant 0 : i32
    return %c0_i32, %c0_i32_0 : i32, i32
  }
  func.func @transform_2(%arg0: i32) -> (i32, i32) {
    %c0_i32 = arith.constant 0 : i32
    %c0_i32_0 = arith.constant 0 : i32
    %c0_i32_1 = arith.constant 0 : i32
    return %c0_i32, %c0_i32_0 : i32, i32
  }
  func.func @transform_3(%arg0: i32) -> (i32, i32, i32) {
    %c0_i32 = arith.constant 0 : i32
    %c0_i32_0 = arith.constant 0 : i32
    %c0_i32_1 = arith.constant 0 : i32
    return %arg0, %c0_i32, %c0_i32_0 : i32, i32, i32
  }
}

module attributes {stable_mosaic.version = 11 : i64} {
  func.func @_decoder_block_kernel(%arg0: i32, %arg1: memref<1x8x32xbf16, #tpu.memory_space<vmem>>, %arg2: memref<1x8x32xbf16, #tpu.memory_space<vmem>>, %arg3: memref<32x96xbf16, #tpu.memory_space<vmem>>, %arg4: memref<1x96xf32, #tpu.memory_space<vmem>>, %arg5: memref<32x32xbf16, #tpu.memory_space<vmem>>, %arg6: memref<1x32xf32, #tpu.memory_space<vmem>>, %arg7: memref<1x32xf32, #tpu.memory_space<vmem>>, %arg8: memref<1x32xf32, #tpu.memory_space<vmem>>, %arg9: memref<32x32xbf16, #tpu.memory_space<vmem>>, %arg10: memref<1x32xf32, #tpu.memory_space<vmem>>, %arg11: memref<32x64xbf16, #tpu.memory_space<vmem>>, %arg12: memref<1x64xf32, #tpu.memory_space<vmem>>, %arg13: memref<32x32xbf16, #tpu.memory_space<vmem>>, %arg14: memref<1x32xf32, #tpu.memory_space<vmem>>, %arg15: memref<1x32xf32, #tpu.memory_space<vmem>>, %arg16: memref<1x32xf32, #tpu.memory_space<vmem>>, %arg17: memref<32x64xbf16, #tpu.memory_space<vmem>>, %arg18: memref<1x64xf32, #tpu.memory_space<vmem>>, %arg19: memref<64x32xbf16, #tpu.memory_space<vmem>>, %arg20: memref<1x32xf32, #tpu.memory_space<vmem>>, %arg21: memref<1x32xf32, #tpu.memory_space<vmem>>, %arg22: memref<1x32xf32, #tpu.memory_space<vmem>>, %arg23: memref<1x8x32xbf16, #tpu.memory_space<vmem>>) attributes {dimension_semantics = [#tpu.dimension_semantics<parallel>], iteration_bounds = array<i64: 2>, scalar_prefetch = 0 : i64, scratch_operands = 0 : i64, tpu.core_type = #tpu.core_type<tc>, window_params = [{transform_indices = @transform_0, window_bounds = array<i64: 1, 8, 32>}, {transform_indices = @transform_1, window_bounds = array<i64: 1, 8, 32>}, {pipeline_mode = #tpu.pipeline_mode<synchronous>, transform_indices = @transform_2, window_bounds = array<i64: 32, 96>}, {pipeline_mode = #tpu.pipeline_mode<synchronous>, transform_indices = @transform_3, window_bounds = array<i64: 1, 96>}, {pipeline_mode = #tpu.pipeline_mode<synchronous>, transform_indices = @transform_4, window_bounds = array<i64: 32, 32>}, {pipeline_mode = #tpu.pipeline_mode<synchronous>, transform_indices = @transform_5, window_bounds = array<i64: 1, 32>}, {pipeline_mode = #tpu.pipeline_mode<synchronous>, transform_indices = @transform_6, window_bounds = array<i64: 1, 32>}, {pipeline_mode = #tpu.pipeline_mode<synchronous>, transform_indices = @transform_7, window_bounds = array<i64: 1, 32>}, {pipeline_mode = #tpu.pipeline_mode<synchronous>, transform_indices = @transform_8, window_bounds = array<i64: 32, 32>}, {pipeline_mode = #tpu.pipeline_mode<synchronous>, transform_indices = @transform_9, window_bounds = array<i64: 1, 32>}, {pipeline_mode = #tpu.pipeline_mode<synchronous>, transform_indices = @transform_10, window_bounds = array<i64: 32, 64>}, {pipeline_mode = #tpu.pipeline_mode<synchronous>, transform_indices = @transform_11, window_bounds = array<i64: 1, 64>}, {pipeline_mode = #tpu.pipeline_mode<synchronous>, transform_indices = @transform_12, window_bounds = array<i64: 32, 32>}, {pipeline_mode = #tpu.pipeline_mode<synchronous>, transform_indices = @transform_13, window_bounds = array<i64: 1, 32>}, {pipeline_mode = #tpu.pipeline_mode<synchronous>, transform_indices = @transform_14, window_bounds = array<i64: 1, 32>}, {pipeline_mode = #tpu.pipeline_mode<synchronous>, transform_indices = @transform_15, window_bounds = array<i64: 1, 32>}, {pipeline_mode = #tpu.pipeline_mode<synchronous>, transform_indices = @transform_16, window_bounds = array<i64: 32, 64>}, {pipeline_mode = #tpu.pipeline_mode<synchronous>, transform_indices = @transform_17, window_bounds = array<i64: 1, 64>}, {pipeline_mode = #tpu.pipeline_mode<synchronous>, transform_indices = @transform_18, window_bounds = array<i64: 64, 32>}, {pipeline_mode = #tpu.pipeline_mode<synchronous>, transform_indices = @transform_19, window_bounds = array<i64: 1, 32>}, {pipeline_mode = #tpu.pipeline_mode<synchronous>, transform_indices = @transform_20, window_bounds = array<i64: 1, 32>}, {pipeline_mode = #tpu.pipeline_mode<synchronous>, transform_indices = @transform_21, window_bounds = array<i64: 1, 32>}, {transform_indices = @transform_22, window_bounds = array<i64: 1, 8, 32>}]} {
    %c0 = arith.constant 0 : index
    %c0_0 = arith.constant 0 : index
    %c0_1 = arith.constant 0 : index
    %0 = vector.load %arg1[%c0, %c0_0, %c0_1] : memref<1x8x32xbf16, #tpu.memory_space<vmem>>, vector<1x8x32xbf16>
    %1 = vector.shape_cast %0 : vector<1x8x32xbf16> to vector<8x32xbf16>
    %2 = arith.extf %1 : vector<8x32xbf16> to vector<8x32xf32>
    %c0_2 = arith.constant 0 : index
    %c0_3 = arith.constant 0 : index
    %c0_4 = arith.constant 0 : index
    %3 = vector.load %arg2[%c0_2, %c0_3, %c0_4] : memref<1x8x32xbf16, #tpu.memory_space<vmem>>, vector<1x8x32xbf16>
    %4 = vector.shape_cast %3 : vector<1x8x32xbf16> to vector<8x32xbf16>
    %c0_5 = arith.constant 0 : index
    %c0_6 = arith.constant 0 : index
    %5 = vector.load %arg3[%c0_5, %c0_6] : memref<32x96xbf16, #tpu.memory_space<vmem>>, vector<32x96xbf16>
    %cst = arith.constant dense<0.000000e+00> : vector<8x96xf32>
    %6 = tpu.matmul %1, %5, %cst {dimension_numbers = #tpu.dot_dimension_numbers<[1], [0], [0], [1], [0, 0, 1, 1], [], []>} : vector<8x32xbf16>, vector<32x96xbf16>, vector<8x96xf32> -> vector<8x96xf32>
    %c0_7 = arith.constant 0 : index
    %c0_8 = arith.constant 0 : index
    %7 = vector.load %arg4[%c0_7, %c0_8] : memref<1x96xf32, #tpu.memory_space<vmem>>, vector<1x96xf32>
    %8 = vector.broadcast %7 : vector<1x96xf32> to vector<8x96xf32>
    %9 = arith.addf %6, %8 : vector<8x96xf32>
    %10 = arith.truncf %9 : vector<8x96xf32> to vector<8x96xbf16>
    %11 = vector.extract_strided_slice %10 {offsets = [0, 0], sizes = [8, 32], strides = [1, 1]} : vector<8x96xbf16> to vector<8x32xbf16>
    %12 = vector.extract_strided_slice %10 {offsets = [0, 32], sizes = [8, 32], strides = [1, 1]} : vector<8x96xbf16> to vector<8x32xbf16>
    %13 = vector.extract_strided_slice %10 {offsets = [0, 64], sizes = [8, 32], strides = [1, 1]} : vector<8x96xbf16> to vector<8x32xbf16>
    %c0_9 = arith.constant 0 : index
    %c0_10 = arith.constant 0 : index
    %14 = vector.load %arg5[%c0_9, %c0_10] : memref<32x32xbf16, #tpu.memory_space<vmem>>, vector<32x32xbf16>
    %15 = tpu.iota {dimensions = array<i32: 0>} : vector<8x8xi32>
    %16 = tpu.iota {dimensions = array<i32: 1>} : vector<8x8xi32>
    %17 = arith.cmpi sle, %16, %15 : vector<8x8xi32>
    %cst_11 = arith.constant 0.000000e+00 : f32
    %18 = vector.broadcast %cst_11 : f32 to vector<8x32xf32>
    %19 = vector.extract_strided_slice %11 {offsets = [0, 0], sizes = [8, 8], strides = [1, 1]} : vector<8x32xbf16> to vector<8x8xbf16>
    %20 = vector.extract_strided_slice %12 {offsets = [0, 0], sizes = [8, 8], strides = [1, 1]} : vector<8x32xbf16> to vector<8x8xbf16>
    %cst_12 = arith.constant dense<0.000000e+00> : vector<8x8xf32>
    %21 = tpu.matmul %19, %20, %cst_12 {dimension_numbers = #tpu.dot_dimension_numbers<[1], [1], [0], [0], [0, 0, 1, 0], [], []>} : vector<8x8xbf16>, vector<8x8xbf16>, vector<8x8xf32> -> vector<8x8xf32>
    %cst_13 = arith.constant 0.353553385 : f32
    %22 = vector.broadcast %cst_13 : f32 to vector<8x8xf32>
    %23 = arith.mulf %21, %22 : vector<8x8xf32>
    %cst_14 = arith.constant -3.40282347E+38 : f32
    %24 = vector.broadcast %cst_14 : f32 to vector<8x8xf32>
    %25 = arith.select %17, %23, %24 : vector<8x8xi1>, vector<8x8xf32>
    %cst_15 = arith.constant dense<0xFF800000> : vector<8xf32>
    %26 = vector.multi_reduction <maximumf>, %25, %cst_15 [1] : vector<8x8xf32> to vector<8xf32>
    %27 = vector.shape_cast %26 : vector<8xf32> to vector<8x1xf32>
    %28 = vector.broadcast %27 : vector<8x1xf32> to vector<8x8xf32>
    %29 = arith.subf %25, %28 : vector<8x8xf32>
    %30 = math.exp %29 : vector<8x8xf32>
    %cst_16 = arith.constant dense<0.000000e+00> : vector<8xf32>
    %31 = vector.multi_reduction <add>, %30, %cst_16 [1] : vector<8x8xf32> to vector<8xf32>
    %32 = vector.shape_cast %31 : vector<8xf32> to vector<8x1xf32>
    %33 = vector.broadcast %32 : vector<8x1xf32> to vector<8x8xf32>
    %34 = arith.divf %30, %33 : vector<8x8xf32>
    %35 = arith.truncf %34 : vector<8x8xf32> to vector<8x8xbf16>
    %36 = vector.extract_strided_slice %13 {offsets = [0, 0], sizes = [8, 8], strides = [1, 1]} : vector<8x32xbf16> to vector<8x8xbf16>
    %cst_17 = arith.constant dense<0.000000e+00> : vector<8x8xf32>
    %37 = tpu.matmul %35, %36, %cst_17 {dimension_numbers = #tpu.dot_dimension_numbers<[1], [0], [0], [1], [0, 0, 1, 1], [], []>} : vector<8x8xbf16>, vector<8x8xbf16>, vector<8x8xf32> -> vector<8x8xf32>
    %38 = arith.truncf %37 : vector<8x8xf32> to vector<8x8xbf16>
    %39 = vector.extract_strided_slice %14 {offsets = [0, 0], sizes = [8, 32], strides = [1, 1]} : vector<32x32xbf16> to vector<8x32xbf16>
    %cst_18 = arith.constant dense<0.000000e+00> : vector<8x32xf32>
    %40 = tpu.matmul %38, %39, %cst_18 {dimension_numbers = #tpu.dot_dimension_numbers<[1], [0], [0], [1], [0, 0, 1, 1], [], []>} : vector<8x8xbf16>, vector<8x32xbf16>, vector<8x32xf32> -> vector<8x32xf32>
    %41 = arith.addf %18, %40 : vector<8x32xf32>
    %42 = vector.extract_strided_slice %11 {offsets = [0, 8], sizes = [8, 8], strides = [1, 1]} : vector<8x32xbf16> to vector<8x8xbf16>
    %43 = vector.extract_strided_slice %12 {offsets = [0, 8], sizes = [8, 8], strides = [1, 1]} : vector<8x32xbf16> to vector<8x8xbf16>
    %cst_19 = arith.constant dense<0.000000e+00> : vector<8x8xf32>
    %44 = tpu.matmul %42, %43, %cst_19 {dimension_numbers = #tpu.dot_dimension_numbers<[1], [1], [0], [0], [0, 0, 1, 0], [], []>} : vector<8x8xbf16>, vector<8x8xbf16>, vector<8x8xf32> -> vector<8x8xf32>
    %cst_20 = arith.constant 0.353553385 : f32
    %45 = vector.broadcast %cst_20 : f32 to vector<8x8xf32>
    %46 = arith.mulf %44, %45 : vector<8x8xf32>
    %cst_21 = arith.constant -3.40282347E+38 : f32
    %47 = vector.broadcast %cst_21 : f32 to vector<8x8xf32>
    %48 = arith.select %17, %46, %47 : vector<8x8xi1>, vector<8x8xf32>
    %cst_22 = arith.constant dense<0xFF800000> : vector<8xf32>
    %49 = vector.multi_reduction <maximumf>, %48, %cst_22 [1] : vector<8x8xf32> to vector<8xf32>
    %50 = vector.shape_cast %49 : vector<8xf32> to vector<8x1xf32>
    %51 = vector.broadcast %50 : vector<8x1xf32> to vector<8x8xf32>
    %52 = arith.subf %48, %51 : vector<8x8xf32>
    %53 = math.exp %52 : vector<8x8xf32>
    %cst_23 = arith.constant dense<0.000000e+00> : vector<8xf32>
    %54 = vector.multi_reduction <add>, %53, %cst_23 [1] : vector<8x8xf32> to vector<8xf32>
    %55 = vector.shape_cast %54 : vector<8xf32> to vector<8x1xf32>
    %56 = vector.broadcast %55 : vector<8x1xf32> to vector<8x8xf32>
    %57 = arith.divf %53, %56 : vector<8x8xf32>
    %58 = arith.truncf %57 : vector<8x8xf32> to vector<8x8xbf16>
    %59 = vector.extract_strided_slice %13 {offsets = [0, 8], sizes = [8, 8], strides = [1, 1]} : vector<8x32xbf16> to vector<8x8xbf16>
    %cst_24 = arith.constant dense<0.000000e+00> : vector<8x8xf32>
    %60 = tpu.matmul %58, %59, %cst_24 {dimension_numbers = #tpu.dot_dimension_numbers<[1], [0], [0], [1], [0, 0, 1, 1], [], []>} : vector<8x8xbf16>, vector<8x8xbf16>, vector<8x8xf32> -> vector<8x8xf32>
    %61 = arith.truncf %60 : vector<8x8xf32> to vector<8x8xbf16>
    %62 = vector.extract_strided_slice %14 {offsets = [8, 0], sizes = [8, 32], strides = [1, 1]} : vector<32x32xbf16> to vector<8x32xbf16>
    %cst_25 = arith.constant dense<0.000000e+00> : vector<8x32xf32>
    %63 = tpu.matmul %61, %62, %cst_25 {dimension_numbers = #tpu.dot_dimension_numbers<[1], [0], [0], [1], [0, 0, 1, 1], [], []>} : vector<8x8xbf16>, vector<8x32xbf16>, vector<8x32xf32> -> vector<8x32xf32>
    %64 = arith.addf %41, %63 : vector<8x32xf32>
    %65 = vector.extract_strided_slice %11 {offsets = [0, 16], sizes = [8, 8], strides = [1, 1]} : vector<8x32xbf16> to vector<8x8xbf16>
    %66 = vector.extract_strided_slice %12 {offsets = [0, 16], sizes = [8, 8], strides = [1, 1]} : vector<8x32xbf16> to vector<8x8xbf16>
    %cst_26 = arith.constant dense<0.000000e+00> : vector<8x8xf32>
    %67 = tpu.matmul %65, %66, %cst_26 {dimension_numbers = #tpu.dot_dimension_numbers<[1], [1], [0], [0], [0, 0, 1, 0], [], []>} : vector<8x8xbf16>, vector<8x8xbf16>, vector<8x8xf32> -> vector<8x8xf32>
    %cst_27 = arith.constant 0.353553385 : f32
    %68 = vector.broadcast %cst_27 : f32 to vector<8x8xf32>
    %69 = arith.mulf %67, %68 : vector<8x8xf32>
    %cst_28 = arith.constant -3.40282347E+38 : f32
    %70 = vector.broadcast %cst_28 : f32 to vector<8x8xf32>
    %71 = arith.select %17, %69, %70 : vector<8x8xi1>, vector<8x8xf32>
    %cst_29 = arith.constant dense<0xFF800000> : vector<8xf32>
    %72 = vector.multi_reduction <maximumf>, %71, %cst_29 [1] : vector<8x8xf32> to vector<8xf32>
    %73 = vector.shape_cast %72 : vector<8xf32> to vector<8x1xf32>
    %74 = vector.broadcast %73 : vector<8x1xf32> to vector<8x8xf32>
    %75 = arith.subf %71, %74 : vector<8x8xf32>
    %76 = math.exp %75 : vector<8x8xf32>
    %cst_30 = arith.constant dense<0.000000e+00> : vector<8xf32>
    %77 = vector.multi_reduction <add>, %76, %cst_30 [1] : vector<8x8xf32> to vector<8xf32>
    %78 = vector.shape_cast %77 : vector<8xf32> to vector<8x1xf32>
    %79 = vector.broadcast %78 : vector<8x1xf32> to vector<8x8xf32>
    %80 = arith.divf %76, %79 : vector<8x8xf32>
    %81 = arith.truncf %80 : vector<8x8xf32> to vector<8x8xbf16>
    %82 = vector.extract_strided_slice %13 {offsets = [0, 16], sizes = [8, 8], strides = [1, 1]} : vector<8x32xbf16> to vector<8x8xbf16>
    %cst_31 = arith.constant dense<0.000000e+00> : vector<8x8xf32>
    %83 = tpu.matmul %81, %82, %cst_31 {dimension_numbers = #tpu.dot_dimension_numbers<[1], [0], [0], [1], [0, 0, 1, 1], [], []>} : vector<8x8xbf16>, vector<8x8xbf16>, vector<8x8xf32> -> vector<8x8xf32>
    %84 = arith.truncf %83 : vector<8x8xf32> to vector<8x8xbf16>
    %85 = vector.extract_strided_slice %14 {offsets = [16, 0], sizes = [8, 32], strides = [1, 1]} : vector<32x32xbf16> to vector<8x32xbf16>
    %cst_32 = arith.constant dense<0.000000e+00> : vector<8x32xf32>
    %86 = tpu.matmul %84, %85, %cst_32 {dimension_numbers = #tpu.dot_dimension_numbers<[1], [0], [0], [1], [0, 0, 1, 1], [], []>} : vector<8x8xbf16>, vector<8x32xbf16>, vector<8x32xf32> -> vector<8x32xf32>
    %87 = arith.addf %64, %86 : vector<8x32xf32>
    %88 = vector.extract_strided_slice %11 {offsets = [0, 24], sizes = [8, 8], strides = [1, 1]} : vector<8x32xbf16> to vector<8x8xbf16>
    %89 = vector.extract_strided_slice %12 {offsets = [0, 24], sizes = [8, 8], strides = [1, 1]} : vector<8x32xbf16> to vector<8x8xbf16>
    %cst_33 = arith.constant dense<0.000000e+00> : vector<8x8xf32>
    %90 = tpu.matmul %88, %89, %cst_33 {dimension_numbers = #tpu.dot_dimension_numbers<[1], [1], [0], [0], [0, 0, 1, 0], [], []>} : vector<8x8xbf16>, vector<8x8xbf16>, vector<8x8xf32> -> vector<8x8xf32>
    %cst_34 = arith.constant 0.353553385 : f32
    %91 = vector.broadcast %cst_34 : f32 to vector<8x8xf32>
    %92 = arith.mulf %90, %91 : vector<8x8xf32>
    %cst_35 = arith.constant -3.40282347E+38 : f32
    %93 = vector.broadcast %cst_35 : f32 to vector<8x8xf32>
    %94 = arith.select %17, %92, %93 : vector<8x8xi1>, vector<8x8xf32>
    %cst_36 = arith.constant dense<0xFF800000> : vector<8xf32>
    %95 = vector.multi_reduction <maximumf>, %94, %cst_36 [1] : vector<8x8xf32> to vector<8xf32>
    %96 = vector.shape_cast %95 : vector<8xf32> to vector<8x1xf32>
    %97 = vector.broadcast %96 : vector<8x1xf32> to vector<8x8xf32>
    %98 = arith.subf %94, %97 : vector<8x8xf32>
    %99 = math.exp %98 : vector<8x8xf32>
    %cst_37 = arith.constant dense<0.000000e+00> : vector<8xf32>
    %100 = vector.multi_reduction <add>, %99, %cst_37 [1] : vector<8x8xf32> to vector<8xf32>
    %101 = vector.shape_cast %100 : vector<8xf32> to vector<8x1xf32>
    %102 = vector.broadcast %101 : vector<8x1xf32> to vector<8x8xf32>
    %103 = arith.divf %99, %102 : vector<8x8xf32>
    %104 = arith.truncf %103 : vector<8x8xf32> to vector<8x8xbf16>
    %105 = vector.extract_strided_slice %13 {offsets = [0, 24], sizes = [8, 8], strides = [1, 1]} : vector<8x32xbf16> to vector<8x8xbf16>
    %cst_38 = arith.constant dense<0.000000e+00> : vector<8x8xf32>
    %106 = tpu.matmul %104, %105, %cst_38 {dimension_numbers = #tpu.dot_dimension_numbers<[1], [0], [0], [1], [0, 0, 1, 1], [], []>} : vector<8x8xbf16>, vector<8x8xbf16>, vector<8x8xf32> -> vector<8x8xf32>
    %107 = arith.truncf %106 : vector<8x8xf32> to vector<8x8xbf16>
    %108 = vector.extract_strided_slice %14 {offsets = [24, 0], sizes = [8, 32], strides = [1, 1]} : vector<32x32xbf16> to vector<8x32xbf16>
    %cst_39 = arith.constant dense<0.000000e+00> : vector<8x32xf32>
    %109 = tpu.matmul %107, %108, %cst_39 {dimension_numbers = #tpu.dot_dimension_numbers<[1], [0], [0], [1], [0, 0, 1, 1], [], []>} : vector<8x8xbf16>, vector<8x32xbf16>, vector<8x32xf32> -> vector<8x32xf32>
    %110 = arith.addf %87, %109 : vector<8x32xf32>
    %c0_40 = arith.constant 0 : index
    %c0_41 = arith.constant 0 : index
    %111 = vector.load %arg6[%c0_40, %c0_41] : memref<1x32xf32, #tpu.memory_space<vmem>>, vector<1x32xf32>
    %112 = vector.broadcast %111 : vector<1x32xf32> to vector<8x32xf32>
    %113 = arith.addf %110, %112 : vector<8x32xf32>
    %114 = arith.addf %2, %113 : vector<8x32xf32>
    %c0_42 = arith.constant 0 : index
    %c0_43 = arith.constant 0 : index
    %115 = vector.load %arg7[%c0_42, %c0_43] : memref<1x32xf32, #tpu.memory_space<vmem>>, vector<1x32xf32>
    %c0_44 = arith.constant 0 : index
    %c0_45 = arith.constant 0 : index
    %116 = vector.load %arg8[%c0_44, %c0_45] : memref<1x32xf32, #tpu.memory_space<vmem>>, vector<1x32xf32>
    %cst_46 = arith.constant dense<0.000000e+00> : vector<8xf32>
    %117 = vector.multi_reduction <add>, %114, %cst_46 [1] : vector<8x32xf32> to vector<8xf32>
    %118 = vector.shape_cast %117 : vector<8xf32> to vector<8x1xf32>
    %cst_47 = arith.constant 3.200000e+01 : f32
    %119 = vector.broadcast %cst_47 : f32 to vector<8x1xf32>
    %120 = arith.divf %118, %119 : vector<8x1xf32>
    %121 = vector.broadcast %120 : vector<8x1xf32> to vector<8x32xf32>
    %122 = arith.subf %114, %121 : vector<8x32xf32>
    %123 = arith.mulf %122, %122 : vector<8x32xf32>
    %cst_48 = arith.constant dense<0.000000e+00> : vector<8xf32>
    %124 = vector.multi_reduction <add>, %123, %cst_48 [1] : vector<8x32xf32> to vector<8xf32>
    %125 = vector.shape_cast %124 : vector<8xf32> to vector<8x1xf32>
    %cst_49 = arith.constant 3.200000e+01 : f32
    %126 = vector.broadcast %cst_49 : f32 to vector<8x1xf32>
    %127 = arith.divf %125, %126 : vector<8x1xf32>
    %128 = vector.broadcast %120 : vector<8x1xf32> to vector<8x32xf32>
    %129 = arith.subf %114, %128 : vector<8x32xf32>
    %cst_50 = arith.constant 9.99999974E-6 : f32
    %130 = vector.broadcast %cst_50 : f32 to vector<8x1xf32>
    %131 = arith.addf %127, %130 : vector<8x1xf32>
    %132 = math.rsqrt %131 : vector<8x1xf32>
    %133 = vector.broadcast %132 : vector<8x1xf32> to vector<8x32xf32>
    %134 = arith.mulf %129, %133 : vector<8x32xf32>
    %135 = vector.broadcast %115 : vector<1x32xf32> to vector<8x32xf32>
    %136 = arith.mulf %134, %135 : vector<8x32xf32>
    %137 = vector.broadcast %116 : vector<1x32xf32> to vector<8x32xf32>
    %138 = arith.addf %136, %137 : vector<8x32xf32>
    %139 = arith.truncf %138 : vector<8x32xf32> to vector<8x32xbf16>
    %c0_51 = arith.constant 0 : index
    %c0_52 = arith.constant 0 : index
    %140 = vector.load %arg9[%c0_51, %c0_52] : memref<32x32xbf16, #tpu.memory_space<vmem>>, vector<32x32xbf16>
    %cst_53 = arith.constant dense<0.000000e+00> : vector<8x32xf32>
    %141 = tpu.matmul %139, %140, %cst_53 {dimension_numbers = #tpu.dot_dimension_numbers<[1], [0], [0], [1], [0, 0, 1, 1], [], []>} : vector<8x32xbf16>, vector<32x32xbf16>, vector<8x32xf32> -> vector<8x32xf32>
    %c0_54 = arith.constant 0 : index
    %c0_55 = arith.constant 0 : index
    %142 = vector.load %arg10[%c0_54, %c0_55] : memref<1x32xf32, #tpu.memory_space<vmem>>, vector<1x32xf32>
    %143 = vector.broadcast %142 : vector<1x32xf32> to vector<8x32xf32>
    %144 = arith.addf %141, %143 : vector<8x32xf32>
    %145 = arith.truncf %144 : vector<8x32xf32> to vector<8x32xbf16>
    %c0_56 = arith.constant 0 : index
    %c0_57 = arith.constant 0 : index
    %146 = vector.load %arg11[%c0_56, %c0_57] : memref<32x64xbf16, #tpu.memory_space<vmem>>, vector<32x64xbf16>
    %cst_58 = arith.constant dense<0.000000e+00> : vector<8x64xf32>
    %147 = tpu.matmul %4, %146, %cst_58 {dimension_numbers = #tpu.dot_dimension_numbers<[1], [0], [0], [1], [0, 0, 1, 1], [], []>} : vector<8x32xbf16>, vector<32x64xbf16>, vector<8x64xf32> -> vector<8x64xf32>
    %c0_59 = arith.constant 0 : index
    %c0_60 = arith.constant 0 : index
    %148 = vector.load %arg12[%c0_59, %c0_60] : memref<1x64xf32, #tpu.memory_space<vmem>>, vector<1x64xf32>
    %149 = vector.broadcast %148 : vector<1x64xf32> to vector<8x64xf32>
    %150 = arith.addf %147, %149 : vector<8x64xf32>
    %151 = arith.truncf %150 : vector<8x64xf32> to vector<8x64xbf16>
    %152 = vector.extract_strided_slice %151 {offsets = [0, 0], sizes = [8, 32], strides = [1, 1]} : vector<8x64xbf16> to vector<8x32xbf16>
    %153 = vector.extract_strided_slice %151 {offsets = [0, 32], sizes = [8, 32], strides = [1, 1]} : vector<8x64xbf16> to vector<8x32xbf16>
    %c0_61 = arith.constant 0 : index
    %c0_62 = arith.constant 0 : index
    %154 = vector.load %arg13[%c0_61, %c0_62] : memref<32x32xbf16, #tpu.memory_space<vmem>>, vector<32x32xbf16>
    %cst_63 = arith.constant 0.000000e+00 : f32
    %155 = vector.broadcast %cst_63 : f32 to vector<8x32xf32>
    %156 = vector.extract_strided_slice %145 {offsets = [0, 0], sizes = [8, 8], strides = [1, 1]} : vector<8x32xbf16> to vector<8x8xbf16>
    %157 = vector.extract_strided_slice %152 {offsets = [0, 0], sizes = [8, 8], strides = [1, 1]} : vector<8x32xbf16> to vector<8x8xbf16>
    %cst_64 = arith.constant dense<0.000000e+00> : vector<8x8xf32>
    %158 = tpu.matmul %156, %157, %cst_64 {dimension_numbers = #tpu.dot_dimension_numbers<[1], [1], [0], [0], [0, 0, 1, 0], [], []>} : vector<8x8xbf16>, vector<8x8xbf16>, vector<8x8xf32> -> vector<8x8xf32>
    %cst_65 = arith.constant 0.353553385 : f32
    %159 = vector.broadcast %cst_65 : f32 to vector<8x8xf32>
    %160 = arith.mulf %158, %159 : vector<8x8xf32>
    %cst_66 = arith.constant dense<0xFF800000> : vector<8xf32>
    %161 = vector.multi_reduction <maximumf>, %160, %cst_66 [1] : vector<8x8xf32> to vector<8xf32>
    %162 = vector.shape_cast %161 : vector<8xf32> to vector<8x1xf32>
    %163 = vector.broadcast %162 : vector<8x1xf32> to vector<8x8xf32>
    %164 = arith.subf %160, %163 : vector<8x8xf32>
    %165 = math.exp %164 : vector<8x8xf32>
    %cst_67 = arith.constant dense<0.000000e+00> : vector<8xf32>
    %166 = vector.multi_reduction <add>, %165, %cst_67 [1] : vector<8x8xf32> to vector<8xf32>
    %167 = vector.shape_cast %166 : vector<8xf32> to vector<8x1xf32>
    %168 = vector.broadcast %167 : vector<8x1xf32> to vector<8x8xf32>
    %169 = arith.divf %165, %168 : vector<8x8xf32>
    %170 = arith.truncf %169 : vector<8x8xf32> to vector<8x8xbf16>
    %171 = vector.extract_strided_slice %153 {offsets = [0, 0], sizes = [8, 8], strides = [1, 1]} : vector<8x32xbf16> to vector<8x8xbf16>
    %cst_68 = arith.constant dense<0.000000e+00> : vector<8x8xf32>
    %172 = tpu.matmul %170, %171, %cst_68 {dimension_numbers = #tpu.dot_dimension_numbers<[1], [0], [0], [1], [0, 0, 1, 1], [], []>} : vector<8x8xbf16>, vector<8x8xbf16>, vector<8x8xf32> -> vector<8x8xf32>
    %173 = arith.truncf %172 : vector<8x8xf32> to vector<8x8xbf16>
    %174 = vector.extract_strided_slice %154 {offsets = [0, 0], sizes = [8, 32], strides = [1, 1]} : vector<32x32xbf16> to vector<8x32xbf16>
    %cst_69 = arith.constant dense<0.000000e+00> : vector<8x32xf32>
    %175 = tpu.matmul %173, %174, %cst_69 {dimension_numbers = #tpu.dot_dimension_numbers<[1], [0], [0], [1], [0, 0, 1, 1], [], []>} : vector<8x8xbf16>, vector<8x32xbf16>, vector<8x32xf32> -> vector<8x32xf32>
    %176 = arith.addf %155, %175 : vector<8x32xf32>
    %177 = vector.extract_strided_slice %145 {offsets = [0, 8], sizes = [8, 8], strides = [1, 1]} : vector<8x32xbf16> to vector<8x8xbf16>
    %178 = vector.extract_strided_slice %152 {offsets = [0, 8], sizes = [8, 8], strides = [1, 1]} : vector<8x32xbf16> to vector<8x8xbf16>
    %cst_70 = arith.constant dense<0.000000e+00> : vector<8x8xf32>
    %179 = tpu.matmul %177, %178, %cst_70 {dimension_numbers = #tpu.dot_dimension_numbers<[1], [1], [0], [0], [0, 0, 1, 0], [], []>} : vector<8x8xbf16>, vector<8x8xbf16>, vector<8x8xf32> -> vector<8x8xf32>
    %cst_71 = arith.constant 0.353553385 : f32
    %180 = vector.broadcast %cst_71 : f32 to vector<8x8xf32>
    %181 = arith.mulf %179, %180 : vector<8x8xf32>
    %cst_72 = arith.constant dense<0xFF800000> : vector<8xf32>
    %182 = vector.multi_reduction <maximumf>, %181, %cst_72 [1] : vector<8x8xf32> to vector<8xf32>
    %183 = vector.shape_cast %182 : vector<8xf32> to vector<8x1xf32>
    %184 = vector.broadcast %183 : vector<8x1xf32> to vector<8x8xf32>
    %185 = arith.subf %181, %184 : vector<8x8xf32>
    %186 = math.exp %185 : vector<8x8xf32>
    %cst_73 = arith.constant dense<0.000000e+00> : vector<8xf32>
    %187 = vector.multi_reduction <add>, %186, %cst_73 [1] : vector<8x8xf32> to vector<8xf32>
    %188 = vector.shape_cast %187 : vector<8xf32> to vector<8x1xf32>
    %189 = vector.broadcast %188 : vector<8x1xf32> to vector<8x8xf32>
    %190 = arith.divf %186, %189 : vector<8x8xf32>
    %191 = arith.truncf %190 : vector<8x8xf32> to vector<8x8xbf16>
    %192 = vector.extract_strided_slice %153 {offsets = [0, 8], sizes = [8, 8], strides = [1, 1]} : vector<8x32xbf16> to vector<8x8xbf16>
    %cst_74 = arith.constant dense<0.000000e+00> : vector<8x8xf32>
    %193 = tpu.matmul %191, %192, %cst_74 {dimension_numbers = #tpu.dot_dimension_numbers<[1], [0], [0], [1], [0, 0, 1, 1], [], []>} : vector<8x8xbf16>, vector<8x8xbf16>, vector<8x8xf32> -> vector<8x8xf32>
    %194 = arith.truncf %193 : vector<8x8xf32> to vector<8x8xbf16>
    %195 = vector.extract_strided_slice %154 {offsets = [8, 0], sizes = [8, 32], strides = [1, 1]} : vector<32x32xbf16> to vector<8x32xbf16>
    %cst_75 = arith.constant dense<0.000000e+00> : vector<8x32xf32>
    %196 = tpu.matmul %194, %195, %cst_75 {dimension_numbers = #tpu.dot_dimension_numbers<[1], [0], [0], [1], [0, 0, 1, 1], [], []>} : vector<8x8xbf16>, vector<8x32xbf16>, vector<8x32xf32> -> vector<8x32xf32>
    %197 = arith.addf %176, %196 : vector<8x32xf32>
    %198 = vector.extract_strided_slice %145 {offsets = [0, 16], sizes = [8, 8], strides = [1, 1]} : vector<8x32xbf16> to vector<8x8xbf16>
    %199 = vector.extract_strided_slice %152 {offsets = [0, 16], sizes = [8, 8], strides = [1, 1]} : vector<8x32xbf16> to vector<8x8xbf16>
    %cst_76 = arith.constant dense<0.000000e+00> : vector<8x8xf32>
    %200 = tpu.matmul %198, %199, %cst_76 {dimension_numbers = #tpu.dot_dimension_numbers<[1], [1], [0], [0], [0, 0, 1, 0], [], []>} : vector<8x8xbf16>, vector<8x8xbf16>, vector<8x8xf32> -> vector<8x8xf32>
    %cst_77 = arith.constant 0.353553385 : f32
    %201 = vector.broadcast %cst_77 : f32 to vector<8x8xf32>
    %202 = arith.mulf %200, %201 : vector<8x8xf32>
    %cst_78 = arith.constant dense<0xFF800000> : vector<8xf32>
    %203 = vector.multi_reduction <maximumf>, %202, %cst_78 [1] : vector<8x8xf32> to vector<8xf32>
    %204 = vector.shape_cast %203 : vector<8xf32> to vector<8x1xf32>
    %205 = vector.broadcast %204 : vector<8x1xf32> to vector<8x8xf32>
    %206 = arith.subf %202, %205 : vector<8x8xf32>
    %207 = math.exp %206 : vector<8x8xf32>
    %cst_79 = arith.constant dense<0.000000e+00> : vector<8xf32>
    %208 = vector.multi_reduction <add>, %207, %cst_79 [1] : vector<8x8xf32> to vector<8xf32>
    %209 = vector.shape_cast %208 : vector<8xf32> to vector<8x1xf32>
    %210 = vector.broadcast %209 : vector<8x1xf32> to vector<8x8xf32>
    %211 = arith.divf %207, %210 : vector<8x8xf32>
    %212 = arith.truncf %211 : vector<8x8xf32> to vector<8x8xbf16>
    %213 = vector.extract_strided_slice %153 {offsets = [0, 16], sizes = [8, 8], strides = [1, 1]} : vector<8x32xbf16> to vector<8x8xbf16>
    %cst_80 = arith.constant dense<0.000000e+00> : vector<8x8xf32>
    %214 = tpu.matmul %212, %213, %cst_80 {dimension_numbers = #tpu.dot_dimension_numbers<[1], [0], [0], [1], [0, 0, 1, 1], [], []>} : vector<8x8xbf16>, vector<8x8xbf16>, vector<8x8xf32> -> vector<8x8xf32>
    %215 = arith.truncf %214 : vector<8x8xf32> to vector<8x8xbf16>
    %216 = vector.extract_strided_slice %154 {offsets = [16, 0], sizes = [8, 32], strides = [1, 1]} : vector<32x32xbf16> to vector<8x32xbf16>
    %cst_81 = arith.constant dense<0.000000e+00> : vector<8x32xf32>
    %217 = tpu.matmul %215, %216, %cst_81 {dimension_numbers = #tpu.dot_dimension_numbers<[1], [0], [0], [1], [0, 0, 1, 1], [], []>} : vector<8x8xbf16>, vector<8x32xbf16>, vector<8x32xf32> -> vector<8x32xf32>
    %218 = arith.addf %197, %217 : vector<8x32xf32>
    %219 = vector.extract_strided_slice %145 {offsets = [0, 24], sizes = [8, 8], strides = [1, 1]} : vector<8x32xbf16> to vector<8x8xbf16>
    %220 = vector.extract_strided_slice %152 {offsets = [0, 24], sizes = [8, 8], strides = [1, 1]} : vector<8x32xbf16> to vector<8x8xbf16>
    %cst_82 = arith.constant dense<0.000000e+00> : vector<8x8xf32>
    %221 = tpu.matmul %219, %220, %cst_82 {dimension_numbers = #tpu.dot_dimension_numbers<[1], [1], [0], [0], [0, 0, 1, 0], [], []>} : vector<8x8xbf16>, vector<8x8xbf16>, vector<8x8xf32> -> vector<8x8xf32>
    %cst_83 = arith.constant 0.353553385 : f32
    %222 = vector.broadcast %cst_83 : f32 to vector<8x8xf32>
    %223 = arith.mulf %221, %222 : vector<8x8xf32>
    %cst_84 = arith.constant dense<0xFF800000> : vector<8xf32>
    %224 = vector.multi_reduction <maximumf>, %223, %cst_84 [1] : vector<8x8xf32> to vector<8xf32>
    %225 = vector.shape_cast %224 : vector<8xf32> to vector<8x1xf32>
    %226 = vector.broadcast %225 : vector<8x1xf32> to vector<8x8xf32>
    %227 = arith.subf %223, %226 : vector<8x8xf32>
    %228 = math.exp %227 : vector<8x8xf32>
    %cst_85 = arith.constant dense<0.000000e+00> : vector<8xf32>
    %229 = vector.multi_reduction <add>, %228, %cst_85 [1] : vector<8x8xf32> to vector<8xf32>
    %230 = vector.shape_cast %229 : vector<8xf32> to vector<8x1xf32>
    %231 = vector.broadcast %230 : vector<8x1xf32> to vector<8x8xf32>
    %232 = arith.divf %228, %231 : vector<8x8xf32>
    %233 = arith.truncf %232 : vector<8x8xf32> to vector<8x8xbf16>
    %234 = vector.extract_strided_slice %153 {offsets = [0, 24], sizes = [8, 8], strides = [1, 1]} : vector<8x32xbf16> to vector<8x8xbf16>
    %cst_86 = arith.constant dense<0.000000e+00> : vector<8x8xf32>
    %235 = tpu.matmul %233, %234, %cst_86 {dimension_numbers = #tpu.dot_dimension_numbers<[1], [0], [0], [1], [0, 0, 1, 1], [], []>} : vector<8x8xbf16>, vector<8x8xbf16>, vector<8x8xf32> -> vector<8x8xf32>
    %236 = arith.truncf %235 : vector<8x8xf32> to vector<8x8xbf16>
    %237 = vector.extract_strided_slice %154 {offsets = [24, 0], sizes = [8, 32], strides = [1, 1]} : vector<32x32xbf16> to vector<8x32xbf16>
    %cst_87 = arith.constant dense<0.000000e+00> : vector<8x32xf32>
    %238 = tpu.matmul %236, %237, %cst_87 {dimension_numbers = #tpu.dot_dimension_numbers<[1], [0], [0], [1], [0, 0, 1, 1], [], []>} : vector<8x8xbf16>, vector<8x32xbf16>, vector<8x32xf32> -> vector<8x32xf32>
    %239 = arith.addf %218, %238 : vector<8x32xf32>
    %c0_88 = arith.constant 0 : index
    %c0_89 = arith.constant 0 : index
    %240 = vector.load %arg14[%c0_88, %c0_89] : memref<1x32xf32, #tpu.memory_space<vmem>>, vector<1x32xf32>
    %241 = vector.broadcast %240 : vector<1x32xf32> to vector<8x32xf32>
    %242 = arith.addf %239, %241 : vector<8x32xf32>
    %243 = arith.addf %138, %242 : vector<8x32xf32>
    %c0_90 = arith.constant 0 : index
    %c0_91 = arith.constant 0 : index
    %244 = vector.load %arg15[%c0_90, %c0_91] : memref<1x32xf32, #tpu.memory_space<vmem>>, vector<1x32xf32>
    %c0_92 = arith.constant 0 : index
    %c0_93 = arith.constant 0 : index
    %245 = vector.load %arg16[%c0_92, %c0_93] : memref<1x32xf32, #tpu.memory_space<vmem>>, vector<1x32xf32>
    %cst_94 = arith.constant dense<0.000000e+00> : vector<8xf32>
    %246 = vector.multi_reduction <add>, %243, %cst_94 [1] : vector<8x32xf32> to vector<8xf32>
    %247 = vector.shape_cast %246 : vector<8xf32> to vector<8x1xf32>
    %cst_95 = arith.constant 3.200000e+01 : f32
    %248 = vector.broadcast %cst_95 : f32 to vector<8x1xf32>
    %249 = arith.divf %247, %248 : vector<8x1xf32>
    %250 = vector.broadcast %249 : vector<8x1xf32> to vector<8x32xf32>
    %251 = arith.subf %243, %250 : vector<8x32xf32>
    %252 = arith.mulf %251, %251 : vector<8x32xf32>
    %cst_96 = arith.constant dense<0.000000e+00> : vector<8xf32>
    %253 = vector.multi_reduction <add>, %252, %cst_96 [1] : vector<8x32xf32> to vector<8xf32>
    %254 = vector.shape_cast %253 : vector<8xf32> to vector<8x1xf32>
    %cst_97 = arith.constant 3.200000e+01 : f32
    %255 = vector.broadcast %cst_97 : f32 to vector<8x1xf32>
    %256 = arith.divf %254, %255 : vector<8x1xf32>
    %257 = vector.broadcast %249 : vector<8x1xf32> to vector<8x32xf32>
    %258 = arith.subf %243, %257 : vector<8x32xf32>
    %cst_98 = arith.constant 9.99999974E-6 : f32
    %259 = vector.broadcast %cst_98 : f32 to vector<8x1xf32>
    %260 = arith.addf %256, %259 : vector<8x1xf32>
    %261 = math.rsqrt %260 : vector<8x1xf32>
    %262 = vector.broadcast %261 : vector<8x1xf32> to vector<8x32xf32>
    %263 = arith.mulf %258, %262 : vector<8x32xf32>
    %264 = vector.broadcast %244 : vector<1x32xf32> to vector<8x32xf32>
    %265 = arith.mulf %263, %264 : vector<8x32xf32>
    %266 = vector.broadcast %245 : vector<1x32xf32> to vector<8x32xf32>
    %267 = arith.addf %265, %266 : vector<8x32xf32>
    %268 = arith.truncf %267 : vector<8x32xf32> to vector<8x32xbf16>
    %c0_99 = arith.constant 0 : index
    %c0_100 = arith.constant 0 : index
    %269 = vector.load %arg17[%c0_99, %c0_100] : memref<32x64xbf16, #tpu.memory_space<vmem>>, vector<32x64xbf16>
    %cst_101 = arith.constant dense<0.000000e+00> : vector<8x64xf32>
    %270 = tpu.matmul %268, %269, %cst_101 {dimension_numbers = #tpu.dot_dimension_numbers<[1], [0], [0], [1], [0, 0, 1, 1], [], []>} : vector<8x32xbf16>, vector<32x64xbf16>, vector<8x64xf32> -> vector<8x64xf32>
    %c0_102 = arith.constant 0 : index
    %c0_103 = arith.constant 0 : index
    %271 = vector.load %arg18[%c0_102, %c0_103] : memref<1x64xf32, #tpu.memory_space<vmem>>, vector<1x64xf32>
    %272 = vector.broadcast %271 : vector<1x64xf32> to vector<8x64xf32>
    %273 = arith.addf %270, %272 : vector<8x64xf32>
    %cst_104 = arith.constant 0.000000e+00 : f32
    %274 = vector.broadcast %cst_104 : f32 to vector<8x64xf32>
    %275 = arith.maximumf %273, %274 : vector<8x64xf32>
    %276 = arith.truncf %275 : vector<8x64xf32> to vector<8x64xbf16>
    %c0_105 = arith.constant 0 : index
    %c0_106 = arith.constant 0 : index
    %277 = vector.load %arg19[%c0_105, %c0_106] : memref<64x32xbf16, #tpu.memory_space<vmem>>, vector<64x32xbf16>
    %cst_107 = arith.constant dense<0.000000e+00> : vector<8x32xf32>
    %278 = tpu.matmul %276, %277, %cst_107 {dimension_numbers = #tpu.dot_dimension_numbers<[1], [0], [0], [1], [0, 0, 1, 1], [], []>} : vector<8x64xbf16>, vector<64x32xbf16>, vector<8x32xf32> -> vector<8x32xf32>
    %c0_108 = arith.constant 0 : index
    %c0_109 = arith.constant 0 : index
    %279 = vector.load %arg20[%c0_108, %c0_109] : memref<1x32xf32, #tpu.memory_space<vmem>>, vector<1x32xf32>
    %280 = vector.broadcast %279 : vector<1x32xf32> to vector<8x32xf32>
    %281 = arith.addf %278, %280 : vector<8x32xf32>
    %282 = arith.addf %267, %281 : vector<8x32xf32>
    %c0_110 = arith.constant 0 : index
    %c0_111 = arith.constant 0 : index
    %283 = vector.load %arg21[%c0_110, %c0_111] : memref<1x32xf32, #tpu.memory_space<vmem>>, vector<1x32xf32>
    %c0_112 = arith.constant 0 : index
    %c0_113 = arith.constant 0 : index
    %284 = vector.load %arg22[%c0_112, %c0_113] : memref<1x32xf32, #tpu.memory_space<vmem>>, vector<1x32xf32>
    %cst_114 = arith.constant dense<0.000000e+00> : vector<8xf32>
    %285 = vector.multi_reduction <add>, %282, %cst_114 [1] : vector<8x32xf32> to vector<8xf32>
    %286 = vector.shape_cast %285 : vector<8xf32> to vector<8x1xf32>
    %cst_115 = arith.constant 3.200000e+01 : f32
    %287 = vector.broadcast %cst_115 : f32 to vector<8x1xf32>
    %288 = arith.divf %286, %287 : vector<8x1xf32>
    %289 = vector.broadcast %288 : vector<8x1xf32> to vector<8x32xf32>
    %290 = arith.subf %282, %289 : vector<8x32xf32>
    %291 = arith.mulf %290, %290 : vector<8x32xf32>
    %cst_116 = arith.constant dense<0.000000e+00> : vector<8xf32>
    %292 = vector.multi_reduction <add>, %291, %cst_116 [1] : vector<8x32xf32> to vector<8xf32>
    %293 = vector.shape_cast %292 : vector<8xf32> to vector<8x1xf32>
    %cst_117 = arith.constant 3.200000e+01 : f32
    %294 = vector.broadcast %cst_117 : f32 to vector<8x1xf32>
    %295 = arith.divf %293, %294 : vector<8x1xf32>
    %296 = vector.broadcast %288 : vector<8x1xf32> to vector<8x32xf32>
    %297 = arith.subf %282, %296 : vector<8x32xf32>
    %cst_118 = arith.constant 9.99999974E-6 : f32
    %298 = vector.broadcast %cst_118 : f32 to vector<8x1xf32>
    %299 = arith.addf %295, %298 : vector<8x1xf32>
    %300 = math.rsqrt %299 : vector<8x1xf32>
    %301 = vector.broadcast %300 : vector<8x1xf32> to vector<8x32xf32>
    %302 = arith.mulf %297, %301 : vector<8x32xf32>
    %303 = vector.broadcast %283 : vector<1x32xf32> to vector<8x32xf32>
    %304 = arith.mulf %302, %303 : vector<8x32xf32>
    %305 = vector.broadcast %284 : vector<1x32xf32> to vector<8x32xf32>
    %306 = arith.addf %304, %305 : vector<8x32xf32>
    %307 = arith.truncf %306 : vector<8x32xf32> to vector<8x32xbf16>
    %c0_119 = arith.constant 0 : index
    %c0_120 = arith.constant 0 : index
    %c0_121 = arith.constant 0 : index
    %308 = vector.load %arg23[%c0_119, %c0_120, %c0_121] : memref<1x8x32xbf16, #tpu.memory_space<vmem>>, vector<1x8x32xbf16>
    %309 = vector.shape_cast %308 : vector<1x8x32xbf16> to vector<8x32xbf16>
    %310 = vector.shape_cast %307 : vector<8x32xbf16> to vector<1x8x32xbf16>
    tpu.vector_store %arg23[%c0_119, %c0_120, %c0_121], %310 {strides = array<i32>} : memref<1x8x32xbf16, #tpu.memory_space<vmem>>, vector<1x8x32xbf16>,
    return
  }
  func.func @transform_0(%arg0: i32) -> (i32, i32, i32) {
    %c0_i32 = arith.constant 0 : i32
    %c0_i32_0 = arith.constant 0 : i32
    %c0_i32_1 = arith.constant 0 : i32
    return %arg0, %c0_i32, %c0_i32_0 : i32, i32, i32
  }
  func.func @transform_1(%arg0: i32) -> (i32, i32, i32) {
    %c0_i32 = arith.constant 0 : i32
    %c0_i32_0 = arith.constant 0 : i32
    %c0_i32_1 = arith.constant 0 : i32
    return %arg0, %c0_i32, %c0_i32_0 : i32, i32, i32
  }
  func.func @transform_2(%arg0: i32) -> (i32, i32) {
    %c0_i32 = arith.constant 0 : i32
    %c0_i32_0 = arith.constant 0 : i32
    %c0_i32_1 = arith.constant 0 : i32
    return %c0_i32, %c0_i32_0 : i32, i32
  }
  func.func @transform_3(%arg0: i32) -> (i32, i32) {
    %c0_i32 = arith.constant 0 : i32
    %c0_i32_0 = arith.constant 0 : i32
    %c0_i32_1 = arith.constant 0 : i32
    return %c0_i32, %c0_i32_0 : i32, i32
  }
  func.func @transform_4(%arg0: i32) -> (i32, i32) {
    %c0_i32 = arith.constant 0 : i32
    %c0_i32_0 = arith.constant 0 : i32
    %c0_i32_1 = arith.constant 0 : i32
    return %c0_i32, %c0_i32_0 : i32, i32
  }
  func.func @transform_5(%arg0: i32) -> (i32, i32) {
    %c0_i32 = arith.constant 0 : i32
    %c0_i32_0 = arith.constant 0 : i32
    %c0_i32_1 = arith.constant 0 : i32
    return %c0_i32, %c0_i32_0 : i32, i32
  }
  func.func @transform_6(%arg0: i32) -> (i32, i32) {
    %c0_i32 = arith.constant 0 : i32
    %c0_i32_0 = arith.constant 0 : i32
    %c0_i32_1 = arith.constant 0 : i32
    return %c0_i32, %c0_i32_0 : i32, i32
  }
  func.func @transform_7(%arg0: i32) -> (i32, i32) {
    %c0_i32 = arith.constant 0 : i32
    %c0_i32_0 = arith.constant 0 : i32
    %c0_i32_1 = arith.constant 0 : i32
    return %c0_i32, %c0_i32_0 : i32, i32
  }
  func.func @transform_8(%arg0: i32) -> (i32, i32) {
    %c0_i32 = arith.constant 0 : i32
    %c0_i32_0 = arith.constant 0 : i32
    %c0_i32_1 = arith.constant 0 : i32
    return %c0_i32, %c0_i32_0 : i32, i32
  }
  func.func @transform_9(%arg0: i32) -> (i32, i32) {
    %c0_i32 = arith.constant 0 : i32
    %c0_i32_0 = arith.constant 0 : i32
    %c0_i32_1 = arith.constant 0 : i32
    return %c0_i32, %c0_i32_0 : i32, i32
  }
  func.func @transform_10(%arg0: i32) -> (i32, i32) {
    %c0_i32 = arith.constant 0 : i32
    %c0_i32_0 = arith.constant 0 : i32
    %c0_i32_1 = arith.constant 0 : i32
    return %c0_i32, %c0_i32_0 : i32, i32
  }
  func.func @transform_11(%arg0: i32) -> (i32, i32) {
    %c0_i32 = arith.constant 0 : i32
    %c0_i32_0 = arith.constant 0 : i32
    %c0_i32_1 = arith.constant 0 : i32
    return %c0_i32, %c0_i32_0 : i32, i32
  }
  func.func @transform_12(%arg0: i32) -> (i32, i32) {
    %c0_i32 = arith.constant 0 : i32
    %c0_i32_0 = arith.constant 0 : i32
    %c0_i32_1 = arith.constant 0 : i32
    return %c0_i32, %c0_i32_0 : i32, i32
  }
  func.func @transform_13(%arg0: i32) -> (i32, i32) {
    %c0_i32 = arith.constant 0 : i32
    %c0_i32_0 = arith.constant 0 : i32
    %c0_i32_1 = arith.constant 0 : i32
    return %c0_i32, %c0_i32_0 : i32, i32
  }
  func.func @transform_14(%arg0: i32) -> (i32, i32) {
    %c0_i32 = arith.constant 0 : i32
    %c0_i32_0 = arith.constant 0 : i32
    %c0_i32_1 = arith.constant 0 : i32
    return %c0_i32, %c0_i32_0 : i32, i32
  }
  func.func @transform_15(%arg0: i32) -> (i32, i32) {
    %c0_i32 = arith.constant 0 : i32
    %c0_i32_0 = arith.constant 0 : i32
    %c0_i32_1 = arith.constant 0 : i32
    return %c0_i32, %c0_i32_0 : i32, i32
  }
  func.func @transform_16(%arg0: i32) -> (i32, i32) {
    %c0_i32 = arith.constant 0 : i32
    %c0_i32_0 = arith.constant 0 : i32
    %c0_i32_1 = arith.constant 0 : i32
    return %c0_i32, %c0_i32_0 : i32, i32
  }
  func.func @transform_17(%arg0: i32) -> (i32, i32) {
    %c0_i32 = arith.constant 0 : i32
    %c0_i32_0 = arith.constant 0 : i32
    %c0_i32_1 = arith.constant 0 : i32
    return %c0_i32, %c0_i32_0 : i32, i32
  }
  func.func @transform_18(%arg0: i32) -> (i32, i32) {
    %c0_i32 = arith.constant 0 : i32
    %c0_i32_0 = arith.constant 0 : i32
    %c0_i32_1 = arith.constant 0 : i32
    return %c0_i32, %c0_i32_0 : i32, i32
  }
  func.func @transform_19(%arg0: i32) -> (i32, i32) {
    %c0_i32 = arith.constant 0 : i32
    %c0_i32_0 = arith.constant 0 : i32
    %c0_i32_1 = arith.constant 0 : i32
    return %c0_i32, %c0_i32_0 : i32, i32
  }
  func.func @transform_20(%arg0: i32) -> (i32, i32) {
    %c0_i32 = arith.constant 0 : i32
    %c0_i32_0 = arith.constant 0 : i32
    %c0_i32_1 = arith.constant 0 : i32
    return %c0_i32, %c0_i32_0 : i32, i32
  }
  func.func @transform_21(%arg0: i32) -> (i32, i32) {
    %c0_i32 = arith.constant 0 : i32
    %c0_i32_0 = arith.constant 0 : i32
    %c0_i32_1 = arith.constant 0 : i32
    return %c0_i32, %c0_i32_0 : i32, i32
  }
  func.func @transform_22(%arg0: i32) -> (i32, i32, i32) {
    %c0_i32 = arith.constant 0 : i32
    %c0_i32_0 = arith.constant 0 : i32
    %c0_i32_1 = arith.constant 0 : i32
    return %arg0, %c0_i32, %c0_i32_0 : i32, i32, i32
  }
}

module attributes {stable_mosaic.version = 11 : i64} {
  func.func @_decoder_block_kernel(%arg0: i32, %arg1: memref<1x8x32xbf16, #tpu.memory_space<vmem>>, %arg2: memref<1x8x32xbf16, #tpu.memory_space<vmem>>, %arg3: memref<32x96xbf16, #tpu.memory_space<vmem>>, %arg4: memref<1x96xf32, #tpu.memory_space<vmem>>, %arg5: memref<32x32xbf16, #tpu.memory_space<vmem>>, %arg6: memref<1x32xf32, #tpu.memory_space<vmem>>, %arg7: memref<1x32xf32, #tpu.memory_space<vmem>>, %arg8: memref<1x32xf32, #tpu.memory_space<vmem>>, %arg9: memref<32x32xbf16, #tpu.memory_space<vmem>>, %arg10: memref<1x32xf32, #tpu.memory_space<vmem>>, %arg11: memref<32x64xbf16, #tpu.memory_space<vmem>>, %arg12: memref<1x64xf32, #tpu.memory_space<vmem>>, %arg13: memref<32x32xbf16, #tpu.memory_space<vmem>>, %arg14: memref<1x32xf32, #tpu.memory_space<vmem>>, %arg15: memref<1x32xf32, #tpu.memory_space<vmem>>, %arg16: memref<1x32xf32, #tpu.memory_space<vmem>>, %arg17: memref<32x64xbf16, #tpu.memory_space<vmem>>, %arg18: memref<1x64xf32, #tpu.memory_space<vmem>>, %arg19: memref<64x32xbf16, #tpu.memory_space<vmem>>, %arg20: memref<1x32xf32, #tpu.memory_space<vmem>>, %arg21: memref<1x32xf32, #tpu.memory_space<vmem>>, %arg22: memref<1x32xf32, #tpu.memory_space<vmem>>, %arg23: memref<1x8x32xbf16, #tpu.memory_space<vmem>>) attributes {dimension_semantics = [#tpu.dimension_semantics<parallel>], iteration_bounds = array<i64: 2>, scalar_prefetch = 0 : i64, scratch_operands = 0 : i64, tpu.core_type = #tpu.core_type<tc>, window_params = [{transform_indices = @transform_0, window_bounds = array<i64: 1, 8, 32>}, {transform_indices = @transform_1, window_bounds = array<i64: 1, 8, 32>}, {pipeline_mode = #tpu.pipeline_mode<synchronous>, transform_indices = @transform_2, window_bounds = array<i64: 32, 96>}, {pipeline_mode = #tpu.pipeline_mode<synchronous>, transform_indices = @transform_3, window_bounds = array<i64: 1, 96>}, {pipeline_mode = #tpu.pipeline_mode<synchronous>, transform_indices = @transform_4, window_bounds = array<i64: 32, 32>}, {pipeline_mode = #tpu.pipeline_mode<synchronous>, transform_indices = @transform_5, window_bounds = array<i64: 1, 32>}, {pipeline_mode = #tpu.pipeline_mode<synchronous>, transform_indices = @transform_6, window_bounds = array<i64: 1, 32>}, {pipeline_mode = #tpu.pipeline_mode<synchronous>, transform_indices = @transform_7, window_bounds = array<i64: 1, 32>}, {pipeline_mode = #tpu.pipeline_mode<synchronous>, transform_indices = @transform_8, window_bounds = array<i64: 32, 32>}, {pipeline_mode = #tpu.pipeline_mode<synchronous>, transform_indices = @transform_9, window_bounds = array<i64: 1, 32>}, {pipeline_mode = #tpu.pipeline_mode<synchronous>, transform_indices = @transform_10, window_bounds = array<i64: 32, 64>}, {pipeline_mode = #tpu.pipeline_mode<synchronous>, transform_indices = @transform_11, window_bounds = array<i64: 1, 64>}, {pipeline_mode = #tpu.pipeline_mode<synchronous>, transform_indices = @transform_12, window_bounds = array<i64: 32, 32>}, {pipeline_mode = #tpu.pipeline_mode<synchronous>, transform_indices = @transform_13, window_bounds = array<i64: 1, 32>}, {pipeline_mode = #tpu.pipeline_mode<synchronous>, transform_indices = @transform_14, window_bounds = array<i64: 1, 32>}, {pipeline_mode = #tpu.pipeline_mode<synchronous>, transform_indices = @transform_15, window_bounds = array<i64: 1, 32>}, {pipeline_mode = #tpu.pipeline_mode<synchronous>, transform_indices = @transform_16, window_bounds = array<i64: 32, 64>}, {pipeline_mode = #tpu.pipeline_mode<synchronous>, transform_indices = @transform_17, window_bounds = array<i64: 1, 64>}, {pipeline_mode = #tpu.pipeline_mode<synchronous>, transform_indices = @transform_18, window_bounds = array<i64: 64, 32>}, {pipeline_mode = #tpu.pipeline_mode<synchronous>, transform_indices = @transform_19, window_bounds = array<i64: 1, 32>}, {pipeline_mode = #tpu.pipeline_mode<synchronous>, transform_indices = @transform_20, window_bounds = array<i64: 1, 32>}, {pipeline_mode = #tpu.pipeline_mode<synchronous>, transform_indices = @transform_21, window_bounds = array<i64: 1, 32>}, {transform_indices = @transform_22, window_bounds = array<i64: 1, 8, 32>}]} {
    %c0 = arith.constant 0 : index
    %c0_0 = arith.constant 0 : index
    %c0_1 = arith.constant 0 : index
    %0 = vector.load %arg1[%c0, %c0_0, %c0_1] : memref<1x8x32xbf16, #tpu.memory_space<vmem>>, vector<1x8x32xbf16>
    %1 = vector.shape_cast %0 : vector<1x8x32xbf16> to vector<8x32xbf16>
    %2 = arith.extf %1 : vector<8x32xbf16> to vector<8x32xf32>
    %c0_2 = arith.constant 0 : index
    %c0_3 = arith.constant 0 : index
    %c0_4 = arith.constant 0 : index
    %3 = vector.load %arg2[%c0_2, %c0_3, %c0_4] : memref<1x8x32xbf16, #tpu.memory_space<vmem>>, vector<1x8x32xbf16>
    %4 = vector.shape_cast %3 : vector<1x8x32xbf16> to vector<8x32xbf16>
    %c0_5 = arith.constant 0 : index
    %c0_6 = arith.constant 0 : index
    %5 = vector.load %arg3[%c0_5, %c0_6] : memref<32x96xbf16, #tpu.memory_space<vmem>>, vector<32x96xbf16>
    %cst = arith.constant dense<0.000000e+00> : vector<8x96xf32>
    %6 = tpu.matmul %1, %5, %cst {dimension_numbers = #tpu.dot_dimension_numbers<[1], [0], [0], [1], [0, 0, 1, 1], [], []>} : vector<8x32xbf16>, vector<32x96xbf16>, vector<8x96xf32> -> vector<8x96xf32>
    %c0_7 = arith.constant 0 : index
    %c0_8 = arith.constant 0 : index
    %7 = vector.load %arg4[%c0_7, %c0_8] : memref<1x96xf32, #tpu.memory_space<vmem>>, vector<1x96xf32>
    %8 = vector.broadcast %7 : vector<1x96xf32> to vector<8x96xf32>
    %9 = arith.addf %6, %8 : vector<8x96xf32>
    %10 = arith.truncf %9 : vector<8x96xf32> to vector<8x96xbf16>
    %11 = vector.extract_strided_slice %10 {offsets = [0, 0], sizes = [8, 32], strides = [1, 1]} : vector<8x96xbf16> to vector<8x32xbf16>
    %12 = vector.extract_strided_slice %10 {offsets = [0, 32], sizes = [8, 32], strides = [1, 1]} : vector<8x96xbf16> to vector<8x32xbf16>
    %13 = vector.extract_strided_slice %10 {offsets = [0, 64], sizes = [8, 32], strides = [1, 1]} : vector<8x96xbf16> to vector<8x32xbf16>
    %c0_9 = arith.constant 0 : index
    %c0_10 = arith.constant 0 : index
    %14 = vector.load %arg5[%c0_9, %c0_10] : memref<32x32xbf16, #tpu.memory_space<vmem>>, vector<32x32xbf16>
    %15 = tpu.iota {dimensions = array<i32: 0>} : vector<8x8xi32>
    %16 = tpu.iota {dimensions = array<i32: 1>} : vector<8x8xi32>
    %17 = arith.cmpi sle, %16, %15 : vector<8x8xi32>
    %cst_11 = arith.constant 0.000000e+00 : f32
    %18 = vector.broadcast %cst_11 : f32 to vector<8x32xf32>
    %19 = vector.extract_strided_slice %11 {offsets = [0, 0], sizes = [8, 8], strides = [1, 1]} : vector<8x32xbf16> to vector<8x8xbf16>
    %20 = vector.extract_strided_slice %12 {offsets = [0, 0], sizes = [8, 8], strides = [1, 1]} : vector<8x32xbf16> to vector<8x8xbf16>
    %cst_12 = arith.constant dense<0.000000e+00> : vector<8x8xf32>
    %21 = tpu.matmul %19, %20, %cst_12 {dimension_numbers = #tpu.dot_dimension_numbers<[1], [1], [0], [0], [0, 0, 1, 0], [], []>} : vector<8x8xbf16>, vector<8x8xbf16>, vector<8x8xf32> -> vector<8x8xf32>
    %cst_13 = arith.constant 0.353553385 : f32
    %22 = vector.broadcast %cst_13 : f32 to vector<8x8xf32>
    %23 = arith.mulf %21, %22 : vector<8x8xf32>
    %cst_14 = arith.constant -3.40282347E+38 : f32
    %24 = vector.broadcast %cst_14 : f32 to vector<8x8xf32>
    %25 = arith.select %17, %23, %24 : vector<8x8xi1>, vector<8x8xf32>
    %cst_15 = arith.constant dense<0xFF800000> : vector<8xf32>
    %26 = vector.multi_reduction <maximumf>, %25, %cst_15 [1] : vector<8x8xf32> to vector<8xf32>
    %27 = vector.shape_cast %26 : vector<8xf32> to vector<8x1xf32>
    %28 = vector.broadcast %27 : vector<8x1xf32> to vector<8x8xf32>
    %29 = arith.subf %25, %28 : vector<8x8xf32>
    %30 = math.exp %29 : vector<8x8xf32>
    %cst_16 = arith.constant dense<0.000000e+00> : vector<8xf32>
    %31 = vector.multi_reduction <add>, %30, %cst_16 [1] : vector<8x8xf32> to vector<8xf32>
    %32 = vector.shape_cast %31 : vector<8xf32> to vector<8x1xf32>
    %33 = vector.broadcast %32 : vector<8x1xf32> to vector<8x8xf32>
    %34 = arith.divf %30, %33 : vector<8x8xf32>
    %35 = arith.truncf %34 : vector<8x8xf32> to vector<8x8xbf16>
    %36 = vector.extract_strided_slice %13 {offsets = [0, 0], sizes = [8, 8], strides = [1, 1]} : vector<8x32xbf16> to vector<8x8xbf16>
    %cst_17 = arith.constant dense<0.000000e+00> : vector<8x8xf32>
    %37 = tpu.matmul %35, %36, %cst_17 {dimension_numbers = #tpu.dot_dimension_numbers<[1], [0], [0], [1], [0, 0, 1, 1], [], []>} : vector<8x8xbf16>, vector<8x8xbf16>, vector<8x8xf32> -> vector<8x8xf32>
    %38 = arith.truncf %37 : vector<8x8xf32> to vector<8x8xbf16>
    %39 = vector.extract_strided_slice %14 {offsets = [0, 0], sizes = [8, 32], strides = [1, 1]} : vector<32x32xbf16> to vector<8x32xbf16>
    %cst_18 = arith.constant dense<0.000000e+00> : vector<8x32xf32>
    %40 = tpu.matmul %38, %39, %cst_18 {dimension_numbers = #tpu.dot_dimension_numbers<[1], [0], [0], [1], [0, 0, 1, 1], [], []>} : vector<8x8xbf16>, vector<8x32xbf16>, vector<8x32xf32> -> vector<8x32xf32>
    %41 = arith.addf %18, %40 : vector<8x32xf32>
    %42 = vector.extract_strided_slice %11 {offsets = [0, 8], sizes = [8, 8], strides = [1, 1]} : vector<8x32xbf16> to vector<8x8xbf16>
    %43 = vector.extract_strided_slice %12 {offsets = [0, 8], sizes = [8, 8], strides = [1, 1]} : vector<8x32xbf16> to vector<8x8xbf16>
    %cst_19 = arith.constant dense<0.000000e+00> : vector<8x8xf32>
    %44 = tpu.matmul %42, %43, %cst_19 {dimension_numbers = #tpu.dot_dimension_numbers<[1], [1], [0], [0], [0, 0, 1, 0], [], []>} : vector<8x8xbf16>, vector<8x8xbf16>, vector<8x8xf32> -> vector<8x8xf32>
    %cst_20 = arith.constant 0.353553385 : f32
    %45 = vector.broadcast %cst_20 : f32 to vector<8x8xf32>
    %46 = arith.mulf %44, %45 : vector<8x8xf32>
    %cst_21 = arith.constant -3.40282347E+38 : f32
    %47 = vector.broadcast %cst_21 : f32 to vector<8x8xf32>
    %48 = arith.select %17, %46, %47 : vector<8x8xi1>, vector<8x8xf32>
    %cst_22 = arith.constant dense<0xFF800000> : vector<8xf32>
    %49 = vector.multi_reduction <maximumf>, %48, %cst_22 [1] : vector<8x8xf32> to vector<8xf32>
    %50 = vector.shape_cast %49 : vector<8xf32> to vector<8x1xf32>
    %51 = vector.broadcast %50 : vector<8x1xf32> to vector<8x8xf32>
    %52 = arith.subf %48, %51 : vector<8x8xf32>
    %53 = math.exp %52 : vector<8x8xf32>
    %cst_23 = arith.constant dense<0.000000e+00> : vector<8xf32>
    %54 = vector.multi_reduction <add>, %53, %cst_23 [1] : vector<8x8xf32> to vector<8xf32>
    %55 = vector.shape_cast %54 : vector<8xf32> to vector<8x1xf32>
    %56 = vector.broadcast %55 : vector<8x1xf32> to vector<8x8xf32>
    %57 = arith.divf %53, %56 : vector<8x8xf32>
    %58 = arith.truncf %57 : vector<8x8xf32> to vector<8x8xbf16>
    %59 = vector.extract_strided_slice %13 {offsets = [0, 8], sizes = [8, 8], strides = [1, 1]} : vector<8x32xbf16> to vector<8x8xbf16>
    %cst_24 = arith.constant dense<0.000000e+00> : vector<8x8xf32>
    %60 = tpu.matmul %58, %59, %cst_24 {dimension_numbers = #tpu.dot_dimension_numbers<[1], [0], [0], [1], [0, 0, 1, 1], [], []>} : vector<8x8xbf16>, vector<8x8xbf16>, vector<8x8xf32> -> vector<8x8xf32>
    %61 = arith.truncf %60 : vector<8x8xf32> to vector<8x8xbf16>
    %62 = vector.extract_strided_slice %14 {offsets = [8, 0], sizes = [8, 32], strides = [1, 1]} : vector<32x32xbf16> to vector<8x32xbf16>
    %cst_25 = arith.constant dense<0.000000e+00> : vector<8x32xf32>
    %63 = tpu.matmul %61, %62, %cst_25 {dimension_numbers = #tpu.dot_dimension_numbers<[1], [0], [0], [1], [0, 0, 1, 1], [], []>} : vector<8x8xbf16>, vector<8x32xbf16>, vector<8x32xf32> -> vector<8x32xf32>
    %64 = arith.addf %41, %63 : vector<8x32xf32>
    %65 = vector.extract_strided_slice %11 {offsets = [0, 16], sizes = [8, 8], strides = [1, 1]} : vector<8x32xbf16> to vector<8x8xbf16>
    %66 = vector.extract_strided_slice %12 {offsets = [0, 16], sizes = [8, 8], strides = [1, 1]} : vector<8x32xbf16> to vector<8x8xbf16>
    %cst_26 = arith.constant dense<0.000000e+00> : vector<8x8xf32>
    %67 = tpu.matmul %65, %66, %cst_26 {dimension_numbers = #tpu.dot_dimension_numbers<[1], [1], [0], [0], [0, 0, 1, 0], [], []>} : vector<8x8xbf16>, vector<8x8xbf16>, vector<8x8xf32> -> vector<8x8xf32>
    %cst_27 = arith.constant 0.353553385 : f32
    %68 = vector.broadcast %cst_27 : f32 to vector<8x8xf32>
    %69 = arith.mulf %67, %68 : vector<8x8xf32>
    %cst_28 = arith.constant -3.40282347E+38 : f32
    %70 = vector.broadcast %cst_28 : f32 to vector<8x8xf32>
    %71 = arith.select %17, %69, %70 : vector<8x8xi1>, vector<8x8xf32>
    %cst_29 = arith.constant dense<0xFF800000> : vector<8xf32>
    %72 = vector.multi_reduction <maximumf>, %71, %cst_29 [1] : vector<8x8xf32> to vector<8xf32>
    %73 = vector.shape_cast %72 : vector<8xf32> to vector<8x1xf32>
    %74 = vector.broadcast %73 : vector<8x1xf32> to vector<8x8xf32>
    %75 = arith.subf %71, %74 : vector<8x8xf32>
    %76 = math.exp %75 : vector<8x8xf32>
    %cst_30 = arith.constant dense<0.000000e+00> : vector<8xf32>
    %77 = vector.multi_reduction <add>, %76, %cst_30 [1] : vector<8x8xf32> to vector<8xf32>
    %78 = vector.shape_cast %77 : vector<8xf32> to vector<8x1xf32>
    %79 = vector.broadcast %78 : vector<8x1xf32> to vector<8x8xf32>
    %80 = arith.divf %76, %79 : vector<8x8xf32>
    %81 = arith.truncf %80 : vector<8x8xf32> to vector<8x8xbf16>
    %82 = vector.extract_strided_slice %13 {offsets = [0, 16], sizes = [8, 8], strides = [1, 1]} : vector<8x32xbf16> to vector<8x8xbf16>
    %cst_31 = arith.constant dense<0.000000e+00> : vector<8x8xf32>
    %83 = tpu.matmul %81, %82, %cst_31 {dimension_numbers = #tpu.dot_dimension_numbers<[1], [0], [0], [1], [0, 0, 1, 1], [], []>} : vector<8x8xbf16>, vector<8x8xbf16>, vector<8x8xf32> -> vector<8x8xf32>
    %84 = arith.truncf %83 : vector<8x8xf32> to vector<8x8xbf16>
    %85 = vector.extract_strided_slice %14 {offsets = [16, 0], sizes = [8, 32], strides = [1, 1]} : vector<32x32xbf16> to vector<8x32xbf16>
    %cst_32 = arith.constant dense<0.000000e+00> : vector<8x32xf32>
    %86 = tpu.matmul %84, %85, %cst_32 {dimension_numbers = #tpu.dot_dimension_numbers<[1], [0], [0], [1], [0, 0, 1, 1], [], []>} : vector<8x8xbf16>, vector<8x32xbf16>, vector<8x32xf32> -> vector<8x32xf32>
    %87 = arith.addf %64, %86 : vector<8x32xf32>
    %88 = vector.extract_strided_slice %11 {offsets = [0, 24], sizes = [8, 8], strides = [1, 1]} : vector<8x32xbf16> to vector<8x8xbf16>
    %89 = vector.extract_strided_slice %12 {offsets = [0, 24], sizes = [8, 8], strides = [1, 1]} : vector<8x32xbf16> to vector<8x8xbf16>
    %cst_33 = arith.constant dense<0.000000e+00> : vector<8x8xf32>
    %90 = tpu.matmul %88, %89, %cst_33 {dimension_numbers = #tpu.dot_dimension_numbers<[1], [1], [0], [0], [0, 0, 1, 0], [], []>} : vector<8x8xbf16>, vector<8x8xbf16>, vector<8x8xf32> -> vector<8x8xf32>
    %cst_34 = arith.constant 0.353553385 : f32
    %91 = vector.broadcast %cst_34 : f32 to vector<8x8xf32>
    %92 = arith.mulf %90, %91 : vector<8x8xf32>
    %cst_35 = arith.constant -3.40282347E+38 : f32
    %93 = vector.broadcast %cst_35 : f32 to vector<8x8xf32>
    %94 = arith.select %17, %92, %93 : vector<8x8xi1>, vector<8x8xf32>
    %cst_36 = arith.constant dense<0xFF800000> : vector<8xf32>
    %95 = vector.multi_reduction <maximumf>, %94, %cst_36 [1] : vector<8x8xf32> to vector<8xf32>
    %96 = vector.shape_cast %95 : vector<8xf32> to vector<8x1xf32>
    %97 = vector.broadcast %96 : vector<8x1xf32> to vector<8x8xf32>
    %98 = arith.subf %94, %97 : vector<8x8xf32>
    %99 = math.exp %98 : vector<8x8xf32>
    %cst_37 = arith.constant dense<0.000000e+00> : vector<8xf32>
    %100 = vector.multi_reduction <add>, %99, %cst_37 [1] : vector<8x8xf32> to vector<8xf32>
    %101 = vector.shape_cast %100 : vector<8xf32> to vector<8x1xf32>
    %102 = vector.broadcast %101 : vector<8x1xf32> to vector<8x8xf32>
    %103 = arith.divf %99, %102 : vector<8x8xf32>
    %104 = arith.truncf %103 : vector<8x8xf32> to vector<8x8xbf16>
    %105 = vector.extract_strided_slice %13 {offsets = [0, 24], sizes = [8, 8], strides = [1, 1]} : vector<8x32xbf16> to vector<8x8xbf16>
    %cst_38 = arith.constant dense<0.000000e+00> : vector<8x8xf32>
    %106 = tpu.matmul %104, %105, %cst_38 {dimension_numbers = #tpu.dot_dimension_numbers<[1], [0], [0], [1], [0, 0, 1, 1], [], []>} : vector<8x8xbf16>, vector<8x8xbf16>, vector<8x8xf32> -> vector<8x8xf32>
    %107 = arith.truncf %106 : vector<8x8xf32> to vector<8x8xbf16>
    %108 = vector.extract_strided_slice %14 {offsets = [24, 0], sizes = [8, 32], strides = [1, 1]} : vector<32x32xbf16> to vector<8x32xbf16>
    %cst_39 = arith.constant dense<0.000000e+00> : vector<8x32xf32>
    %109 = tpu.matmul %107, %108, %cst_39 {dimension_numbers = #tpu.dot_dimension_numbers<[1], [0], [0], [1], [0, 0, 1, 1], [], []>} : vector<8x8xbf16>, vector<8x32xbf16>, vector<8x32xf32> -> vector<8x32xf32>
    %110 = arith.addf %87, %109 : vector<8x32xf32>
    %c0_40 = arith.constant 0 : index
    %c0_41 = arith.constant 0 : index
    %111 = vector.load %arg6[%c0_40, %c0_41] : memref<1x32xf32, #tpu.memory_space<vmem>>, vector<1x32xf32>
    %112 = vector.broadcast %111 : vector<1x32xf32> to vector<8x32xf32>
    %113 = arith.addf %110, %112 : vector<8x32xf32>
    %114 = arith.addf %2, %113 : vector<8x32xf32>
    %c0_42 = arith.constant 0 : index
    %c0_43 = arith.constant 0 : index
    %115 = vector.load %arg7[%c0_42, %c0_43] : memref<1x32xf32, #tpu.memory_space<vmem>>, vector<1x32xf32>
    %c0_44 = arith.constant 0 : index
    %c0_45 = arith.constant 0 : index
    %116 = vector.load %arg8[%c0_44, %c0_45] : memref<1x32xf32, #tpu.memory_space<vmem>>, vector<1x32xf32>
    %cst_46 = arith.constant dense<0.000000e+00> : vector<8xf32>
    %117 = vector.multi_reduction <add>, %114, %cst_46 [1] : vector<8x32xf32> to vector<8xf32>
    %118 = vector.shape_cast %117 : vector<8xf32> to vector<8x1xf32>
    %cst_47 = arith.constant 3.200000e+01 : f32
    %119 = vector.broadcast %cst_47 : f32 to vector<8x1xf32>
    %120 = arith.divf %118, %119 : vector<8x1xf32>
    %121 = vector.broadcast %120 : vector<8x1xf32> to vector<8x32xf32>
    %122 = arith.subf %114, %121 : vector<8x32xf32>
    %123 = arith.mulf %122, %122 : vector<8x32xf32>
    %cst_48 = arith.constant dense<0.000000e+00> : vector<8xf32>
    %124 = vector.multi_reduction <add>, %123, %cst_48 [1] : vector<8x32xf32> to vector<8xf32>
    %125 = vector.shape_cast %124 : vector<8xf32> to vector<8x1xf32>
    %cst_49 = arith.constant 3.200000e+01 : f32
    %126 = vector.broadcast %cst_49 : f32 to vector<8x1xf32>
    %127 = arith.divf %125, %126 : vector<8x1xf32>
    %128 = vector.broadcast %120 : vector<8x1xf32> to vector<8x32xf32>
    %129 = arith.subf %114, %128 : vector<8x32xf32>
    %cst_50 = arith.constant 9.99999974E-6 : f32
    %130 = vector.broadcast %cst_50 : f32 to vector<8x1xf32>
    %131 = arith.addf %127, %130 : vector<8x1xf32>
    %132 = math.rsqrt %131 : vector<8x1xf32>
    %133 = vector.broadcast %132 : vector<8x1xf32> to vector<8x32xf32>
    %134 = arith.mulf %129, %133 : vector<8x32xf32>
    %135 = vector.broadcast %115 : vector<1x32xf32> to vector<8x32xf32>
    %136 = arith.mulf %134, %135 : vector<8x32xf32>
    %137 = vector.broadcast %116 : vector<1x32xf32> to vector<8x32xf32>
    %138 = arith.addf %136, %137 : vector<8x32xf32>
    %139 = arith.truncf %138 : vector<8x32xf32> to vector<8x32xbf16>
    %c0_51 = arith.constant 0 : index
    %c0_52 = arith.constant 0 : index
    %140 = vector.load %arg9[%c0_51, %c0_52] : memref<32x32xbf16, #tpu.memory_space<vmem>>, vector<32x32xbf16>
    %cst_53 = arith.constant dense<0.000000e+00> : vector<8x32xf32>
    %141 = tpu.matmul %139, %140, %cst_53 {dimension_numbers = #tpu.dot_dimension_numbers<[1], [0], [0], [1], [0, 0, 1, 1], [], []>} : vector<8x32xbf16>, vector<32x32xbf16>, vector<8x32xf32> -> vector<8x32xf32>
    %c0_54 = arith.constant 0 : index
    %c0_55 = arith.constant 0 : index
    %142 = vector.load %arg10[%c0_54, %c0_55] : memref<1x32xf32, #tpu.memory_space<vmem>>, vector<1x32xf32>
    %143 = vector.broadcast %142 : vector<1x32xf32> to vector<8x32xf32>
    %144 = arith.addf %141, %143 : vector<8x32xf32>
    %145 = arith.truncf %144 : vector<8x32xf32> to vector<8x32xbf16>
    %c0_56 = arith.constant 0 : index
    %c0_57 = arith.constant 0 : index
    %146 = vector.load %arg11[%c0_56, %c0_57] : memref<32x64xbf16, #tpu.memory_space<vmem>>, vector<32x64xbf16>
    %cst_58 = arith.constant dense<0.000000e+00> : vector<8x64xf32>
    %147 = tpu.matmul %4, %146, %cst_58 {dimension_numbers = #tpu.dot_dimension_numbers<[1], [0], [0], [1], [0, 0, 1, 1], [], []>} : vector<8x32xbf16>, vector<32x64xbf16>, vector<8x64xf32> -> vector<8x64xf32>
    %c0_59 = arith.constant 0 : index
    %c0_60 = arith.constant 0 : index
    %148 = vector.load %arg12[%c0_59, %c0_60] : memref<1x64xf32, #tpu.memory_space<vmem>>, vector<1x64xf32>
    %149 = vector.broadcast %148 : vector<1x64xf32> to vector<8x64xf32>
    %150 = arith.addf %147, %149 : vector<8x64xf32>
    %151 = arith.truncf %150 : vector<8x64xf32> to vector<8x64xbf16>
    %152 = vector.extract_strided_slice %151 {offsets = [0, 0], sizes = [8, 32], strides = [1, 1]} : vector<8x64xbf16> to vector<8x32xbf16>
    %153 = vector.extract_strided_slice %151 {offsets = [0, 32], sizes = [8, 32], strides = [1, 1]} : vector<8x64xbf16> to vector<8x32xbf16>
    %c0_61 = arith.constant 0 : index
    %c0_62 = arith.constant 0 : index
    %154 = vector.load %arg13[%c0_61, %c0_62] : memref<32x32xbf16, #tpu.memory_space<vmem>>, vector<32x32xbf16>
    %cst_63 = arith.constant 0.000000e+00 : f32
    %155 = vector.broadcast %cst_63 : f32 to vector<8x32xf32>
    %156 = vector.extract_strided_slice %145 {offsets = [0, 0], sizes = [8, 8], strides = [1, 1]} : vector<8x32xbf16> to vector<8x8xbf16>
    %157 = vector.extract_strided_slice %152 {offsets = [0, 0], sizes = [8, 8], strides = [1, 1]} : vector<8x32xbf16> to vector<8x8xbf16>
    %cst_64 = arith.constant dense<0.000000e+00> : vector<8x8xf32>
    %158 = tpu.matmul %156, %157, %cst_64 {dimension_numbers = #tpu.dot_dimension_numbers<[1], [1], [0], [0], [0, 0, 1, 0], [], []>} : vector<8x8xbf16>, vector<8x8xbf16>, vector<8x8xf32> -> vector<8x8xf32>
    %cst_65 = arith.constant 0.353553385 : f32
    %159 = vector.broadcast %cst_65 : f32 to vector<8x8xf32>
    %160 = arith.mulf %158, %159 : vector<8x8xf32>
    %cst_66 = arith.constant dense<0xFF800000> : vector<8xf32>
    %161 = vector.multi_reduction <maximumf>, %160, %cst_66 [1] : vector<8x8xf32> to vector<8xf32>
    %162 = vector.shape_cast %161 : vector<8xf32> to vector<8x1xf32>
    %163 = vector.broadcast %162 : vector<8x1xf32> to vector<8x8xf32>
    %164 = arith.subf %160, %163 : vector<8x8xf32>
    %165 = math.exp %164 : vector<8x8xf32>
    %cst_67 = arith.constant dense<0.000000e+00> : vector<8xf32>
    %166 = vector.multi_reduction <add>, %165, %cst_67 [1] : vector<8x8xf32> to vector<8xf32>
    %167 = vector.shape_cast %166 : vector<8xf32> to vector<8x1xf32>
    %168 = vector.broadcast %167 : vector<8x1xf32> to vector<8x8xf32>
    %169 = arith.divf %165, %168 : vector<8x8xf32>
    %170 = arith.truncf %169 : vector<8x8xf32> to vector<8x8xbf16>
    %171 = vector.extract_strided_slice %153 {offsets = [0, 0], sizes = [8, 8], strides = [1, 1]} : vector<8x32xbf16> to vector<8x8xbf16>
    %cst_68 = arith.constant dense<0.000000e+00> : vector<8x8xf32>
    %172 = tpu.matmul %170, %171, %cst_68 {dimension_numbers = #tpu.dot_dimension_numbers<[1], [0], [0], [1], [0, 0, 1, 1], [], []>} : vector<8x8xbf16>, vector<8x8xbf16>, vector<8x8xf32> -> vector<8x8xf32>
    %173 = arith.truncf %172 : vector<8x8xf32> to vector<8x8xbf16>
    %174 = vector.extract_strided_slice %154 {offsets = [0, 0], sizes = [8, 32], strides = [1, 1]} : vector<32x32xbf16> to vector<8x32xbf16>
    %cst_69 = arith.constant dense<0.000000e+00> : vector<8x32xf32>
    %175 = tpu.matmul %173, %174, %cst_69 {dimension_numbers = #tpu.dot_dimension_numbers<[1], [0], [0], [1], [0, 0, 1, 1], [], []>} : vector<8x8xbf16>, vector<8x32xbf16>, vector<8x32xf32> -> vector<8x32xf32>
    %176 = arith.addf %155, %175 : vector<8x32xf32>
    %177 = vector.extract_strided_slice %145 {offsets = [0, 8], sizes = [8, 8], strides = [1, 1]} : vector<8x32xbf16> to vector<8x8xbf16>
    %178 = vector.extract_strided_slice %152 {offsets = [0, 8], sizes = [8, 8], strides = [1, 1]} : vector<8x32xbf16> to vector<8x8xbf16>
    %cst_70 = arith.constant dense<0.000000e+00> : vector<8x8xf32>
    %179 = tpu.matmul %177, %178, %cst_70 {dimension_numbers = #tpu.dot_dimension_numbers<[1], [1], [0], [0], [0, 0, 1, 0], [], []>} : vector<8x8xbf16>, vector<8x8xbf16>, vector<8x8xf32> -> vector<8x8xf32>
    %cst_71 = arith.constant 0.353553385 : f32
    %180 = vector.broadcast %cst_71 : f32 to vector<8x8xf32>
    %181 = arith.mulf %179, %180 : vector<8x8xf32>
    %cst_72 = arith.constant dense<0xFF800000> : vector<8xf32>
    %182 = vector.multi_reduction <maximumf>, %181, %cst_72 [1] : vector<8x8xf32> to vector<8xf32>
    %183 = vector.shape_cast %182 : vector<8xf32> to vector<8x1xf32>
    %184 = vector.broadcast %183 : vector<8x1xf32> to vector<8x8xf32>
    %185 = arith.subf %181, %184 : vector<8x8xf32>
    %186 = math.exp %185 : vector<8x8xf32>
    %cst_73 = arith.constant dense<0.000000e+00> : vector<8xf32>
    %187 = vector.multi_reduction <add>, %186, %cst_73 [1] : vector<8x8xf32> to vector<8xf32>
    %188 = vector.shape_cast %187 : vector<8xf32> to vector<8x1xf32>
    %189 = vector.broadcast %188 : vector<8x1xf32> to vector<8x8xf32>
    %190 = arith.divf %186, %189 : vector<8x8xf32>
    %191 = arith.truncf %190 : vector<8x8xf32> to vector<8x8xbf16>
    %192 = vector.extract_strided_slice %153 {offsets = [0, 8], sizes = [8, 8], strides = [1, 1]} : vector<8x32xbf16> to vector<8x8xbf16>
    %cst_74 = arith.constant dense<0.000000e+00> : vector<8x8xf32>
    %193 = tpu.matmul %191, %192, %cst_74 {dimension_numbers = #tpu.dot_dimension_numbers<[1], [0], [0], [1], [0, 0, 1, 1], [], []>} : vector<8x8xbf16>, vector<8x8xbf16>, vector<8x8xf32> -> vector<8x8xf32>
    %194 = arith.truncf %193 : vector<8x8xf32> to vector<8x8xbf16>
    %195 = vector.extract_strided_slice %154 {offsets = [8, 0], sizes = [8, 32], strides = [1, 1]} : vector<32x32xbf16> to vector<8x32xbf16>
    %cst_75 = arith.constant dense<0.000000e+00> : vector<8x32xf32>
    %196 = tpu.matmul %194, %195, %cst_75 {dimension_numbers = #tpu.dot_dimension_numbers<[1], [0], [0], [1], [0, 0, 1, 1], [], []>} : vector<8x8xbf16>, vector<8x32xbf16>, vector<8x32xf32> -> vector<8x32xf32>
    %197 = arith.addf %176, %196 : vector<8x32xf32>
    %198 = vector.extract_strided_slice %145 {offsets = [0, 16], sizes = [8, 8], strides = [1, 1]} : vector<8x32xbf16> to vector<8x8xbf16>
    %199 = vector.extract_strided_slice %152 {offsets = [0, 16], sizes = [8, 8], strides = [1, 1]} : vector<8x32xbf16> to vector<8x8xbf16>
    %cst_76 = arith.constant dense<0.000000e+00> : vector<8x8xf32>
    %200 = tpu.matmul %198, %199, %cst_76 {dimension_numbers = #tpu.dot_dimension_numbers<[1], [1], [0], [0], [0, 0, 1, 0], [], []>} : vector<8x8xbf16>, vector<8x8xbf16>, vector<8x8xf32> -> vector<8x8xf32>
    %cst_77 = arith.constant 0.353553385 : f32
    %201 = vector.broadcast %cst_77 : f32 to vector<8x8xf32>
    %202 = arith.mulf %200, %201 : vector<8x8xf32>
    %cst_78 = arith.constant dense<0xFF800000> : vector<8xf32>
    %203 = vector.multi_reduction <maximumf>, %202, %cst_78 [1] : vector<8x8xf32> to vector<8xf32>
    %204 = vector.shape_cast %203 : vector<8xf32> to vector<8x1xf32>
    %205 = vector.broadcast %204 : vector<8x1xf32> to vector<8x8xf32>
    %206 = arith.subf %202, %205 : vector<8x8xf32>
    %207 = math.exp %206 : vector<8x8xf32>
    %cst_79 = arith.constant dense<0.000000e+00> : vector<8xf32>
    %208 = vector.multi_reduction <add>, %207, %cst_79 [1] : vector<8x8xf32> to vector<8xf32>
    %209 = vector.shape_cast %208 : vector<8xf32> to vector<8x1xf32>
    %210 = vector.broadcast %209 : vector<8x1xf32> to vector<8x8xf32>
    %211 = arith.divf %207, %210 : vector<8x8xf32>
    %212 = arith.truncf %211 : vector<8x8xf32> to vector<8x8xbf16>
    %213 = vector.extract_strided_slice %153 {offsets = [0, 16], sizes = [8, 8], strides = [1, 1]} : vector<8x32xbf16> to vector<8x8xbf16>
    %cst_80 = arith.constant dense<0.000000e+00> : vector<8x8xf32>
    %214 = tpu.matmul %212, %213, %cst_80 {dimension_numbers = #tpu.dot_dimension_numbers<[1], [0], [0], [1], [0, 0, 1, 1], [], []>} : vector<8x8xbf16>, vector<8x8xbf16>, vector<8x8xf32> -> vector<8x8xf32>
    %215 = arith.truncf %214 : vector<8x8xf32> to vector<8x8xbf16>
    %216 = vector.extract_strided_slice %154 {offsets = [16, 0], sizes = [8, 32], strides = [1, 1]} : vector<32x32xbf16> to vector<8x32xbf16>
    %cst_81 = arith.constant dense<0.000000e+00> : vector<8x32xf32>
    %217 = tpu.matmul %215, %216, %cst_81 {dimension_numbers = #tpu.dot_dimension_numbers<[1], [0], [0], [1], [0, 0, 1, 1], [], []>} : vector<8x8xbf16>, vector<8x32xbf16>, vector<8x32xf32> -> vector<8x32xf32>
    %218 = arith.addf %197, %217 : vector<8x32xf32>
    %219 = vector.extract_strided_slice %145 {offsets = [0, 24], sizes = [8, 8], strides = [1, 1]} : vector<8x32xbf16> to vector<8x8xbf16>
    %220 = vector.extract_strided_slice %152 {offsets = [0, 24], sizes = [8, 8], strides = [1, 1]} : vector<8x32xbf16> to vector<8x8xbf16>
    %cst_82 = arith.constant dense<0.000000e+00> : vector<8x8xf32>
    %221 = tpu.matmul %219, %220, %cst_82 {dimension_numbers = #tpu.dot_dimension_numbers<[1], [1], [0], [0], [0, 0, 1, 0], [], []>} : vector<8x8xbf16>, vector<8x8xbf16>, vector<8x8xf32> -> vector<8x8xf32>
    %cst_83 = arith.constant 0.353553385 : f32
    %222 = vector.broadcast %cst_83 : f32 to vector<8x8xf32>
    %223 = arith.mulf %221, %222 : vector<8x8xf32>
    %cst_84 = arith.constant dense<0xFF800000> : vector<8xf32>
    %224 = vector.multi_reduction <maximumf>, %223, %cst_84 [1] : vector<8x8xf32> to vector<8xf32>
    %225 = vector.shape_cast %224 : vector<8xf32> to vector<8x1xf32>
    %226 = vector.broadcast %225 : vector<8x1xf32> to vector<8x8xf32>
    %227 = arith.subf %223, %226 : vector<8x8xf32>
    %228 = math.exp %227 : vector<8x8xf32>
    %cst_85 = arith.constant dense<0.000000e+00> : vector<8xf32>
    %229 = vector.multi_reduction <add>, %228, %cst_85 [1] : vector<8x8xf32> to vector<8xf32>
    %230 = vector.shape_cast %229 : vector<8xf32> to vector<8x1xf32>
    %231 = vector.broadcast %230 : vector<8x1xf32> to vector<8x8xf32>
    %232 = arith.divf %228, %231 : vector<8x8xf32>
    %233 = arith.truncf %232 : vector<8x8xf32> to vector<8x8xbf16>
    %234 = vector.extract_strided_slice %153 {offsets = [0, 24], sizes = [8, 8], strides = [1, 1]} : vector<8x32xbf16> to vector<8x8xbf16>
    %cst_86 = arith.constant dense<0.000000e+00> : vector<8x8xf32>
    %235 = tpu.matmul %233, %234, %cst_86 {dimension_numbers = #tpu.dot_dimension_numbers<[1], [0], [0], [1], [0, 0, 1, 1], [], []>} : vector<8x8xbf16>, vector<8x8xbf16>, vector<8x8xf32> -> vector<8x8xf32>
    %236 = arith.truncf %235 : vector<8x8xf32> to vector<8x8xbf16>
    %237 = vector.extract_strided_slice %154 {offsets = [24, 0], sizes = [8, 32], strides = [1, 1]} : vector<32x32xbf16> to vector<8x32xbf16>
    %cst_87 = arith.constant dense<0.000000e+00> : vector<8x32xf32>
    %238 = tpu.matmul %236, %237, %cst_87 {dimension_numbers = #tpu.dot_dimension_numbers<[1], [0], [0], [1], [0, 0, 1, 1], [], []>} : vector<8x8xbf16>, vector<8x32xbf16>, vector<8x32xf32> -> vector<8x32xf32>
    %239 = arith.addf %218, %238 : vector<8x32xf32>
    %c0_88 = arith.constant 0 : index
    %c0_89 = arith.constant 0 : index
    %240 = vector.load %arg14[%c0_88, %c0_89] : memref<1x32xf32, #tpu.memory_space<vmem>>, vector<1x32xf32>
    %241 = vector.broadcast %240 : vector<1x32xf32> to vector<8x32xf32>
    %242 = arith.addf %239, %241 : vector<8x32xf32>
    %243 = arith.addf %138, %242 : vector<8x32xf32>
    %c0_90 = arith.constant 0 : index
    %c0_91 = arith.constant 0 : index
    %244 = vector.load %arg15[%c0_90, %c0_91] : memref<1x32xf32, #tpu.memory_space<vmem>>, vector<1x32xf32>
    %c0_92 = arith.constant 0 : index
    %c0_93 = arith.constant 0 : index
    %245 = vector.load %arg16[%c0_92, %c0_93] : memref<1x32xf32, #tpu.memory_space<vmem>>, vector<1x32xf32>
    %cst_94 = arith.constant dense<0.000000e+00> : vector<8xf32>
    %246 = vector.multi_reduction <add>, %243, %cst_94 [1] : vector<8x32xf32> to vector<8xf32>
    %247 = vector.shape_cast %246 : vector<8xf32> to vector<8x1xf32>
    %cst_95 = arith.constant 3.200000e+01 : f32
    %248 = vector.broadcast %cst_95 : f32 to vector<8x1xf32>
    %249 = arith.divf %247, %248 : vector<8x1xf32>
    %250 = vector.broadcast %249 : vector<8x1xf32> to vector<8x32xf32>
    %251 = arith.subf %243, %250 : vector<8x32xf32>
    %252 = arith.mulf %251, %251 : vector<8x32xf32>
    %cst_96 = arith.constant dense<0.000000e+00> : vector<8xf32>
    %253 = vector.multi_reduction <add>, %252, %cst_96 [1] : vector<8x32xf32> to vector<8xf32>
    %254 = vector.shape_cast %253 : vector<8xf32> to vector<8x1xf32>
    %cst_97 = arith.constant 3.200000e+01 : f32
    %255 = vector.broadcast %cst_97 : f32 to vector<8x1xf32>
    %256 = arith.divf %254, %255 : vector<8x1xf32>
    %257 = vector.broadcast %249 : vector<8x1xf32> to vector<8x32xf32>
    %258 = arith.subf %243, %257 : vector<8x32xf32>
    %cst_98 = arith.constant 9.99999974E-6 : f32
    %259 = vector.broadcast %cst_98 : f32 to vector<8x1xf32>
    %260 = arith.addf %256, %259 : vector<8x1xf32>
    %261 = math.rsqrt %260 : vector<8x1xf32>
    %262 = vector.broadcast %261 : vector<8x1xf32> to vector<8x32xf32>
    %263 = arith.mulf %258, %262 : vector<8x32xf32>
    %264 = vector.broadcast %244 : vector<1x32xf32> to vector<8x32xf32>
    %265 = arith.mulf %263, %264 : vector<8x32xf32>
    %266 = vector.broadcast %245 : vector<1x32xf32> to vector<8x32xf32>
    %267 = arith.addf %265, %266 : vector<8x32xf32>
    %268 = arith.truncf %267 : vector<8x32xf32> to vector<8x32xbf16>
    %c0_99 = arith.constant 0 : index
    %c0_100 = arith.constant 0 : index
    %269 = vector.load %arg17[%c0_99, %c0_100] : memref<32x64xbf16, #tpu.memory_space<vmem>>, vector<32x64xbf16>
    %cst_101 = arith.constant dense<0.000000e+00> : vector<8x64xf32>
    %270 = tpu.matmul %268, %269, %cst_101 {dimension_numbers = #tpu.dot_dimension_numbers<[1], [0], [0], [1], [0, 0, 1, 1], [], []>} : vector<8x32xbf16>, vector<32x64xbf16>, vector<8x64xf32> -> vector<8x64xf32>
    %c0_102 = arith.constant 0 : index
    %c0_103 = arith.constant 0 : index
    %271 = vector.load %arg18[%c0_102, %c0_103] : memref<1x64xf32, #tpu.memory_space<vmem>>, vector<1x64xf32>
    %272 = vector.broadcast %271 : vector<1x64xf32> to vector<8x64xf32>
    %273 = arith.addf %270, %272 : vector<8x64xf32>
    %cst_104 = arith.constant 0.000000e+00 : f32
    %274 = vector.broadcast %cst_104 : f32 to vector<8x64xf32>
    %275 = arith.maximumf %273, %274 : vector<8x64xf32>
    %276 = arith.truncf %275 : vector<8x64xf32> to vector<8x64xbf16>
    %c0_105 = arith.constant 0 : index
    %c0_106 = arith.constant 0 : index
    %277 = vector.load %arg19[%c0_105, %c0_106] : memref<64x32xbf16, #tpu.memory_space<vmem>>, vector<64x32xbf16>
    %cst_107 = arith.constant dense<0.000000e+00> : vector<8x32xf32>
    %278 = tpu.matmul %276, %277, %cst_107 {dimension_numbers = #tpu.dot_dimension_numbers<[1], [0], [0], [1], [0, 0, 1, 1], [], []>} : vector<8x64xbf16>, vector<64x32xbf16>, vector<8x32xf32> -> vector<8x32xf32>
    %c0_108 = arith.constant 0 : index
    %c0_109 = arith.constant 0 : index
    %279 = vector.load %arg20[%c0_108, %c0_109] : memref<1x32xf32, #tpu.memory_space<vmem>>, vector<1x32xf32>
    %280 = vector.broadcast %279 : vector<1x32xf32> to vector<8x32xf32>
    %281 = arith.addf %278, %280 : vector<8x32xf32>
    %282 = arith.addf %267, %281 : vector<8x32xf32>
    %c0_110 = arith.constant 0 : index
    %c0_111 = arith.constant 0 : index
    %283 = vector.load %arg21[%c0_110, %c0_111] : memref<1x32xf32, #tpu.memory_space<vmem>>, vector<1x32xf32>
    %c0_112 = arith.constant 0 : index
    %c0_113 = arith.constant 0 : index
    %284 = vector.load %arg22[%c0_112, %c0_113] : memref<1x32xf32, #tpu.memory_space<vmem>>, vector<1x32xf32>
    %cst_114 = arith.constant dense<0.000000e+00> : vector<8xf32>
    %285 = vector.multi_reduction <add>, %282, %cst_114 [1] : vector<8x32xf32> to vector<8xf32>
    %286 = vector.shape_cast %285 : vector<8xf32> to vector<8x1xf32>
    %cst_115 = arith.constant 3.200000e+01 : f32
    %287 = vector.broadcast %cst_115 : f32 to vector<8x1xf32>
    %288 = arith.divf %286, %287 : vector<8x1xf32>
    %289 = vector.broadcast %288 : vector<8x1xf32> to vector<8x32xf32>
    %290 = arith.subf %282, %289 : vector<8x32xf32>
    %291 = arith.mulf %290, %290 : vector<8x32xf32>
    %cst_116 = arith.constant dense<0.000000e+00> : vector<8xf32>
    %292 = vector.multi_reduction <add>, %291, %cst_116 [1] : vector<8x32xf32> to vector<8xf32>
    %293 = vector.shape_cast %292 : vector<8xf32> to vector<8x1xf32>
    %cst_117 = arith.constant 3.200000e+01 : f32
    %294 = vector.broadcast %cst_117 : f32 to vector<8x1xf32>
    %295 = arith.divf %293, %294 : vector<8x1xf32>
    %296 = vector.broadcast %288 : vector<8x1xf32> to vector<8x32xf32>
    %297 = arith.subf %282, %296 : vector<8x32xf32>
    %cst_118 = arith.constant 9.99999974E-6 : f32
    %298 = vector.broadcast %cst_118 : f32 to vector<8x1xf32>
    %299 = arith.addf %295, %298 : vector<8x1xf32>
    %300 = math.rsqrt %299 : vector<8x1xf32>
    %301 = vector.broadcast %300 : vector<8x1xf32> to vector<8x32xf32>
    %302 = arith.mulf %297, %301 : vector<8x32xf32>
    %303 = vector.broadcast %283 : vector<1x32xf32> to vector<8x32xf32>
    %304 = arith.mulf %302, %303 : vector<8x32xf32>
    %305 = vector.broadcast %284 : vector<1x32xf32> to vector<8x32xf32>
    %306 = arith.addf %304, %305 : vector<8x32xf32>
    %307 = arith.truncf %306 : vector<8x32xf32> to vector<8x32xbf16>
    %c0_119 = arith.constant 0 : index
    %c0_120 = arith.constant 0 : index
    %c0_121 = arith.constant 0 : index
    %308 = vector.load %arg23[%c0_119, %c0_120, %c0_121] : memref<1x8x32xbf16, #tpu.memory_space<vmem>>, vector<1x8x32xbf16>
    %309 = vector.shape_cast %308 : vector<1x8x32xbf16> to vector<8x32xbf16>
    %310 = vector.shape_cast %307 : vector<8x32xbf16> to vector<1x8x32xbf16>
    tpu.vector_store %arg23[%c0_119, %c0_120, %c0_121], %310 {strides = array<i32>} : memref<1x8x32xbf16, #tpu.memory_space<vmem>>, vector<1x8x32xbf16>,
    return
  }
  func.func @transform_0(%arg0: i32) -> (i32, i32, i32) {
    %c0_i32 = arith.constant 0 : i32
    %c0_i32_0 = arith.constant 0 : i32
    %c0_i32_1 = arith.constant 0 : i32
    return %arg0, %c0_i32, %c0_i32_0 : i32, i32, i32
  }
  func.func @transform_1(%arg0: i32) -> (i32, i32, i32) {
    %c0_i32 = arith.constant 0 : i32
    %c0_i32_0 = arith.constant 0 : i32
    %c0_i32_1 = arith.constant 0 : i32
    return %arg0, %c0_i32, %c0_i32_0 : i32, i32, i32
  }
  func.func @transform_2(%arg0: i32) -> (i32, i32) {
    %c0_i32 = arith.constant 0 : i32
    %c0_i32_0 = arith.constant 0 : i32
    %c0_i32_1 = arith.constant 0 : i32
    return %c0_i32, %c0_i32_0 : i32, i32
  }
  func.func @transform_3(%arg0: i32) -> (i32, i32) {
    %c0_i32 = arith.constant 0 : i32
    %c0_i32_0 = arith.constant 0 : i32
    %c0_i32_1 = arith.constant 0 : i32
    return %c0_i32, %c0_i32_0 : i32, i32
  }
  func.func @transform_4(%arg0: i32) -> (i32, i32) {
    %c0_i32 = arith.constant 0 : i32
    %c0_i32_0 = arith.constant 0 : i32
    %c0_i32_1 = arith.constant 0 : i32
    return %c0_i32, %c0_i32_0 : i32, i32
  }
  func.func @transform_5(%arg0: i32) -> (i32, i32) {
    %c0_i32 = arith.constant 0 : i32
    %c0_i32_0 = arith.constant 0 : i32
    %c0_i32_1 = arith.constant 0 : i32
    return %c0_i32, %c0_i32_0 : i32, i32
  }
  func.func @transform_6(%arg0: i32) -> (i32, i32) {
    %c0_i32 = arith.constant 0 : i32
    %c0_i32_0 = arith.constant 0 : i32
    %c0_i32_1 = arith.constant 0 : i32
    return %c0_i32, %c0_i32_0 : i32, i32
  }
  func.func @transform_7(%arg0: i32) -> (i32, i32) {
    %c0_i32 = arith.constant 0 : i32
    %c0_i32_0 = arith.constant 0 : i32
    %c0_i32_1 = arith.constant 0 : i32
    return %c0_i32, %c0_i32_0 : i32, i32
  }
  func.func @transform_8(%arg0: i32) -> (i32, i32) {
    %c0_i32 = arith.constant 0 : i32
    %c0_i32_0 = arith.constant 0 : i32
    %c0_i32_1 = arith.constant 0 : i32
    return %c0_i32, %c0_i32_0 : i32, i32
  }
  func.func @transform_9(%arg0: i32) -> (i32, i32) {
    %c0_i32 = arith.constant 0 : i32
    %c0_i32_0 = arith.constant 0 : i32
    %c0_i32_1 = arith.constant 0 : i32
    return %c0_i32, %c0_i32_0 : i32, i32
  }
  func.func @transform_10(%arg0: i32) -> (i32, i32) {
    %c0_i32 = arith.constant 0 : i32
    %c0_i32_0 = arith.constant 0 : i32
    %c0_i32_1 = arith.constant 0 : i32
    return %c0_i32, %c0_i32_0 : i32, i32
  }
  func.func @transform_11(%arg0: i32) -> (i32, i32) {
    %c0_i32 = arith.constant 0 : i32
    %c0_i32_0 = arith.constant 0 : i32
    %c0_i32_1 = arith.constant 0 : i32
    return %c0_i32, %c0_i32_0 : i32, i32
  }
  func.func @transform_12(%arg0: i32) -> (i32, i32) {
    %c0_i32 = arith.constant 0 : i32
    %c0_i32_0 = arith.constant 0 : i32
    %c0_i32_1 = arith.constant 0 : i32
    return %c0_i32, %c0_i32_0 : i32, i32
  }
  func.func @transform_13(%arg0: i32) -> (i32, i32) {
    %c0_i32 = arith.constant 0 : i32
    %c0_i32_0 = arith.constant 0 : i32
    %c0_i32_1 = arith.constant 0 : i32
    return %c0_i32, %c0_i32_0 : i32, i32
  }
  func.func @transform_14(%arg0: i32) -> (i32, i32) {
    %c0_i32 = arith.constant 0 : i32
    %c0_i32_0 = arith.constant 0 : i32
    %c0_i32_1 = arith.constant 0 : i32
    return %c0_i32, %c0_i32_0 : i32, i32
  }
  func.func @transform_15(%arg0: i32) -> (i32, i32) {
    %c0_i32 = arith.constant 0 : i32
    %c0_i32_0 = arith.constant 0 : i32
    %c0_i32_1 = arith.constant 0 : i32
    return %c0_i32, %c0_i32_0 : i32, i32
  }
  func.func @transform_16(%arg0: i32) -> (i32, i32) {
    %c0_i32 = arith.constant 0 : i32
    %c0_i32_0 = arith.constant 0 : i32
    %c0_i32_1 = arith.constant 0 : i32
    return %c0_i32, %c0_i32_0 : i32, i32
  }
  func.func @transform_17(%arg0: i32) -> (i32, i32) {
    %c0_i32 = arith.constant 0 : i32
    %c0_i32_0 = arith.constant 0 : i32
    %c0_i32_1 = arith.constant 0 : i32
    return %c0_i32, %c0_i32_0 : i32, i32
  }
  func.func @transform_18(%arg0: i32) -> (i32, i32) {
    %c0_i32 = arith.constant 0 : i32
    %c0_i32_0 = arith.constant 0 : i32
    %c0_i32_1 = arith.constant 0 : i32
    return %c0_i32, %c0_i32_0 : i32, i32
  }
  func.func @transform_19(%arg0: i32) -> (i32, i32) {
    %c0_i32 = arith.constant 0 : i32
    %c0_i32_0 = arith.constant 0 : i32
    %c0_i32_1 = arith.constant 0 : i32
    return %c0_i32, %c0_i32_0 : i32, i32
  }
  func.func @transform_20(%arg0: i32) -> (i32, i32) {
    %c0_i32 = arith.constant 0 : i32
    %c0_i32_0 = arith.constant 0 : i32
    %c0_i32_1 = arith.constant 0 : i32
    return %c0_i32, %c0_i32_0 : i32, i32
  }
  func.func @transform_21(%arg0: i32) -> (i32, i32) {
    %c0_i32 = arith.constant 0 : i32
    %c0_i32_0 = arith.constant 0 : i32
    %c0_i32_1 = arith.constant 0 : i32
    return %c0_i32, %c0_i32_0 : i32, i32
  }
  func.func @transform_22(%arg0: i32) -> (i32, i32, i32) {
    %c0_i32 = arith.constant 0 : i32
    %c0_i32_0 = arith.constant 0 : i32
    %c0_i32_1 = arith.constant 0 : i32
    return %arg0, %c0_i32, %c0_i32_0 : i32, i32, i32
  }
}

</mosaic_0001>

<bundles_post_ra>
// kernel: _lambda_.5
= control target key start
LH: loop header
LB: loop body
LE: loop exit
PB: predicated region body
PF: predicated region fallthrough
CT: control target
= control target key end

     0   :  { %8 = vsyncpa [#allocation3], 0  ;;  %s573_s0 = inlined_call_operand.vmem [shape: bf16[2,8,32], index: 0, kind: input, shape index: {}]   ;;  %s574_s1 = inlined_call_operand.vmem [shape: bf16[32,128], index: 1, kind: input, shape index: {}]   ;;  %s575_s2 = inlined_call_operand.vmem [shape: f32[1,128], index: 2, kind: input, shape index: {}]   ;;  %s576_s3 = inlined_call_operand.hbm [shape: f32[2,8,128], index: 3, kind: output, shape index: {}]  }
   0x1   :  { %10 = vsyncpa [#allocation3 + $0x1], 0  ;;  %s464_s12 = smov 0   ;;  %s466_s13 = smov 0  }
   0x2   :  { %s468_s14 = smov 0   ;;  %s470_s15 = smov 0  }
   0x3 LB: > { %s485_s16 = sadd.s32 4294967295, %s439_s15   ;;  %s309_s17 = sadd.s32 4294967294, %s439_s15   ;;  %s439_s15 = sphi %s470_s15, %s582_s15   ;;  %s435_s14 = sphi %s468_s14, %s581_s14   ;;  %s431_s13 = sphi %s466_s13, %s580_s13   ;;  %s427_s12 = sphi %s464_s12, %s579_s12  }
   0x4   : > { %s489_s18 = sadd.s32 1, %s439_s15   ;;  %s91_s19 = sadd.s32 1, %s435_s14 }
   0x5   : > { %s88_s20 = ssub.s32 %s439_s15, %s489_s18  ;;  %p101_p0 = scmp.ne.s32.totalorder %s435_s14, %s431_s13 }
   0x6   : > { %p89_p1 = scmp.eq.s32.totalorder %s88_s20, 0  ;;  %p102_p2 = scmp.eq.s32.totalorder %s485_s16, 1 }
   0x7   : > { %p107_p3 = scmp.ne.s32.totalorder %s431_s13, %s427_s12  ;;  %p108_p4 = scmp.eq.s32.totalorder %s309_s17, 1 }
   0x8   : > { %s500_s21 = scalar_select %p89_p1, %s435_s14, %s91_s19  }
   0x9   : > { %p502_p5 = por %p102_p2, %p101_p0  ;;  %p506_p6 = por %p108_p4, %p107_p3 }
   0xa   : > { %p312_p7 = scmp.ge.s32.totalorder %s439_s15, 1  ;;  %p139_p8 = scmp.lt.s32.totalorder %s439_s15, 3 }
   0xc   : > { %p140_p9 = pnand %p312_p7, %p139_p8 }
   0xd   : > { %v375_v0 = vld [vmem:[%s574_s1] sm:$0xff] (!%p140_p9)   ;;  %v441_v1 = vmov (!%p140_p9), 0.0   ;;  %v376_v2 = vld [vmem:[%s574_s1 + $0x8] sm:$0xff] (!%p140_p9)   ;;  %vm442_vm0 = vmmov (!%p140_p9), 0   ;;  %p162_p10 = scmp.lt.s32.totalorder (!%p140_p9), %s485_s16, 1  ;;  %vm191_vm1 = vcmask (!%p140_p9), 261120  }
   0xe   : > { %143 = sbr.rel (%p140_p9) target bundleno = 254 (0xfe), region = 32  ;;  %326 = vmatprep.subr.bf16.mxu0 (!%p140_p9), %v441_v1  ;;  %330 = vmatprep.mubr.msk.bf16.mxu0 (!%p140_p9), %vm442_vm0, %v441_v1  ;;  %s159_s6 = sand.u32 (!%p140_p9), 1, %s431_s13   ;;  %v315_v4 = vld [vmem:[%s575_s2] ss:$0 sm:$0xff] (!%p140_p9) }
   0xf   : > { %327 = vmatpush3.bf16.msra.mxu0 (!%p140_p9), %v375_v0  ;;  %s313_s7 = sshll.u32 (!%p140_p9), %s159_s6, 3  ;;  %s320_s10 = sshll.u32 (!%p140_p9), %s485_s16, 7 }
  0x10   : > { %328 = vmatprep.subr.bf16.mxu0 (!%p140_p9), %v441_v1  ;;  %s161_s11 = scalar_lea.vmem (!%p140_p9), [#allocation2], %s313_s7  ;;  %s531_s24 = scalar_lea.hbm (!%p140_p9), %s576_s3, %s320_s10 }
  0x11   : > { %s250_s17 = sshll.u32 (!%p140_p9), %s161_s11, 4  ;;  %s237_s25 = scalar_lea.sflag (!%p140_p9), [#allocation3], %s159_s6  ;;  %s533_s17 = int_to_ptr.vmem [resolvable:$true] %s250_s17 }
  0x12   : > { %s443_s26 = smov (!%p140_p9), [#allocation2]  }
  0x13   : > { %329 = vmatpush3.bf16.msra.mxu0 (!%p140_p9), %v376_v2  ;;  %s381_s27 = sshll.u32 (!%p140_p9), %s443_s26, 4  ;;  %s382_s27 = int_to_ptr.vmem [resolvable:$false] %s381_s27 }
  0x14   : > { %p384_p0 = scmp.lt.s32.totalorder (!%p140_p9), %s533_s17, %s382_s27 }
  0x15   : > { %s163_s28 = scalar_select %p162_p10, %s485_s16, 1 }
  0x16   : > { %s377_s16 = scalar_lea.vmem %s533_s17, 128 }
  0x17   : > { %s314_s29 = sshll.u32 %s163_s28, 2  ;;  %p378_p11 = scmp.ne.s32.totalorder %s533_s17, %s377_s16 }
  0x18   : > { %s165_s5 = scalar_lea.vmem %s573_s0, %s314_s29  ;;  %s383_s28 = scalar_lea.vmem %s382_s27, 256 }
  0x19   : > { %v167_v3 = vld [vmem:[%s165_s5] sm:$0xf]  ;;  %p379_p12 = pnand %p378_p11, %p502_p5  ;;  %p385_p1 = scmp.lt.s32.totalorder %s383_s28, %s377_s16 }
  0x1a   : > { %331 = vmatmul.mubr.msk.bf16.vlgmr.msra.gmra.mrb[0].mxu0 %vm191_vm1, %v167_v3 }
  0x1b   : > { %p380_p13 = pneg %p379_p12  ;;  %p386_p2 = por %p385_p1, %p384_p0 }
  0x1d   : > { %p387_p3 = pnand %p386_p2, %p380_p13 }
  0xed   : > { %v229_v5 = vpop.f32.mrb[0].mxu0 }
  0xee   : > { %v230_v6 = vadd.f32 %v315_v4, %v229_v5  ;;  %v332_v7 = vpop.f32.mrb[1].mxu0 }
  0xef   : > { %v232_v8 = vpop.f32.mrb[2].mxu0 }
  0xf0   : > { %235 = vst [vmem:[%s161_s11] sm:$0xff] %v230_v6  ;;  %v333_v9 = vpop.f32.mrb[3].mxu0 }
  0xf1   : > { %390 = shalt.err (!%p387_p3)
}
  0xf2   : > { %s391_s29 = scalar_lea.hbm %s531_s24, 128  ;;  %s395_s5 = scalar_lea.hbm %s576_s3, 256 }
  0xf3   : > { %p392_p4 = scmp.ne.s32.totalorder %s531_s24, %s391_s29  ;;  %p396_p9 = scmp.lt.u32.totalorder %s531_s24, %s576_s3 }
  0xf4   : > { %p397_p10 = scmp.lt.u32.totalorder %s395_s5, %s391_s29  ;;  %p399_p12 = scmp.lt.u32.totalorder %s391_s29, %s531_s24 }
  0xf5   : > { %p393_p7 = pnand %p392_p4, %p502_p5 }
  0xf6   : > { %p398_p11 = por %p397_p10, %p396_p9 }
  0xf7   : > { %p394_p8 = pneg %p393_p7 }
  0xf8   : > { %p400_p13 = por %p399_p12, %p398_p11 }
  0xfa   : > { %p401_p0 = pnand %p400_p13, %p394_p8 }
  0xfc   : > { %404 = shalt.err (!%p401_p0)
}
  0xfd   : > { %334 = dma.vmem_to_hbm [thread:$0]  (%p502_p5), %s533_s17, 128, %s531_s24, %s237_s25  }
  0xfe PF: > { %p340_p1 = scmp.ge.s32.totalorder %s439_s15, 2  ;;  %s262_s8 = sand.u32 1, %s427_s12  }
  0xff   : > { %s263_s9 = scalar_lea.sflag [#allocation3], %s262_s8 }
 0x100   : > { %p337_p2 = pnand %p340_p1, %p506_p6 }
 0x102   : > { %422 = dma.done.wait (!%p337_p2), %s263_s9, 128  }
 0x103   : > { %424 = vsyncadd (!%p337_p2), %s263_s9, 4294967168  ;;  %p13_p3 = scmp.ge.s32.totalorder %s489_s18, 4   ;;  %s579_s12 = smov %s431_s13 }
 0x104   : > { %s580_s13 = smov %s435_s14  ;;  %s581_s14 = smov %s500_s21 }
 0x105   : > { %s582_s15 = smov %s489_s18  ;;  %15 = sbr.rel (!%p13_p3) target bundleno = 3 (0x3), region = 67 }
 0x10c   :  { %268 = vsyncpa [#allocation3], 1 }
 0x10d   :  { %270 = vsyncpa [#allocation3 + $0x1], 1 }

// kernel: _lambda_.3
= control target key start
LH: loop header
LB: loop body
LE: loop exit
PB: predicated region body
PF: predicated region fallthrough
CT: control target
= control target key end

     0   :  { %s3410_s0 = inlined_call_operand.vmem [shape: bf16[2,8,32], index: 0, kind: input, shape index: {}]   ;;  %s3411_s1 = inlined_call_operand.vmem [shape: bf16[2,8,32], index: 1, kind: input, shape index: {}]   ;;  %s3412_s2 = inlined_call_operand.vmem [shape: bf16[32,96], index: 2, kind: input, shape index: {}]   ;;  %s3413_s3 = inlined_call_operand.vmem [shape: f32[1,96], index: 3, kind: input, shape index: {}]   ;;  %s3414_s4 = inlined_call_operand.vmem [shape: bf16[32,32], index: 4, kind: input, shape index: {}]   ;;  %s3415_s5 = inlined_call_operand.vmem [shape: f32[1,32], index: 5, kind: input, shape index: {}]   ;;  %s3416_s6 = inlined_call_operand.vmem [shape: f32[1,32], index: 6, kind: input, shape index: {}]   ;;  %s3417_s7 = inlined_call_operand.vmem [shape: f32[1,32], index: 7, kind: input, shape index: {}]   ;;  %s3418_s8 = inlined_call_operand.vmem [shape: bf16[32,32], index: 8, kind: input, shape index: {}]   ;;  %s3419_s9 = inlined_call_operand.vmem [shape: f32[1,32], index: 9, kind: input, shape index: {}]   ;;  %s3420_s10 = inlined_call_operand.vmem [shape: bf16[32,64], index: 10, kind: input, shape index: {}]   ;;  %s3421_s11 = inlined_call_operand.vmem [shape: f32[1,64], index: 11, kind: input, shape index: {}]   ;;  %s3422_s12 = inlined_call_operand.vmem [shape: bf16[32,32], index: 12, kind: input, shape index: {}]   ;;  %s3423_s13 = inlined_call_operand.vmem [shape: f32[1,32], index: 13, kind: input, shape index: {}]   ;;  %s3424_s14 = inlined_call_operand.vmem [shape: f32[1,32], index: 14, kind: input, shape index: {}]   ;;  %s3425_s15 = inlined_call_operand.vmem [shape: f32[1,32], index: 15, kind: input, shape index: {}]   ;;  %s3426_s16 = inlined_call_operand.vmem [shape: bf16[32,64], index: 16, kind: input, shape index: {}]   ;;  %s3427_s17 = inlined_call_operand.vmem [shape: f32[1,64], index: 17, kind: input, shape index: {}]   ;;  %s3428_s18 = inlined_call_operand.vmem [shape: bf16[64,32], index: 18, kind: input, shape index: {}]   ;;  %s3429_s19 = inlined_call_operand.vmem [shape: f32[1,32], index: 19, kind: input, shape index: {}]   ;;  %s3430_s20 = inlined_call_operand.vmem [shape: f32[1,32], index: 20, kind: input, shape index: {}]   ;;  %s3431_s21 = inlined_call_operand.vmem [shape: f32[1,32], index: 21, kind: input, shape index: {}]   ;;  %s3432_s22 = inlined_call_operand.vmem [shape: bf16[2,8,32], index: 22, kind: output, shape index: {}]  }
   0x1   :  { %3440 = sst [smem:[#allocation2_spill]] %s3410_s0 }
   0x2   :  { %3441 = sst [smem:[#allocation3_spill]] %s3411_s1 }
   0x3   :  { %3442 = sst [smem:[#allocation4_spill]] %s3412_s2 }
   0x4   :  { %3443 = sst [smem:[#allocation5_spill]] %s3413_s3  ;;  %s3038_s3 = smov 0  }
   0x5   :  { %3444 = sst [smem:[#allocation6_spill]] %s3414_s4 }
   0x6   :  { %3445 = sst [smem:[#allocation7_spill]] %s3415_s5 }
   0x7   :  { %3446 = sst [smem:[#allocation8_spill]] %s3416_s6 }
   0x8 LB: > { %s2514_s28 = sadd.s32 4294967295, %s2908_s3   ;;  %p2518_p0 = scmp.ge.s32.totalorder %s2908_s3, 1  ;;  %s2908_s3 = sphi %s3038_s3, %s32_s3  }
   0x9   : > { %p620_p1 = scmp.lt.s32.totalorder %s2908_s3, 3 }
   0xb   : > { %p621_p2 = pnand %p2518_p0, %p620_p1 }
   0xc   : > { %s3447_s4 = sld [smem:[#allocation4_spill]] (!%p621_p2)  ;;  %v2910_v1 = vmov (!%p621_p2), 0.0   ;;  %vm2911_vm0 = vmmov (!%p621_p2), 0   ;;  %p684_p3 = scmp.lt.s32.totalorder (!%p621_p2), %s2514_s28, 1  ;;  %vm723_vm1 = vcmask (!%p621_p2), 261120   ;;  %vm780_vm2 = vcmask (!%p621_p2), 64512  }
   0xd   : > { %624 = sbr.rel (%p621_p2) target bundleno = 6592 (0x19c0), region = 108  ;;  %2643 = vmatprep.subr.bf16.mxu1 (!%p621_p2), %v2910_v1  ;;  %2657 = vmatprep.subr.bf16.mxu0 (!%p621_p2), %v2910_v1  ;;  %s3448_s6 = sld [smem:[#allocation2_spill]] (!%p621_p2)  ;;  %v772_v16 = vlaneseq (!%p621_p2)  ;;  %vm846_vm4 = vcmask (!%p621_p2), 1043456   ;;  %vm2372_vm5 = vcmask (!%p621_p2), 523264   ;;  %vm2447_vm6 = vcmask (!%p621_p2), 257024  }
   0xe   : > { %2647 = vmatprep.mubr.msk.bf16.mxu1 (!%p621_p2), %vm2911_vm0, %v2910_v1  ;;  %2659 = vmatprep.mubr.msk.bf16.mxu0 (!%p621_p2), %vm2911_vm0, %v2910_v1  ;;  %s3449_s27 = sld [smem:[#allocation5_spill]] (!%p621_p2)  ;;  %s3439_s29 = smov (!%p621_p2), 96  }
   0xf   : > { %s2914_s30 = smov (!%p621_p2), 88   ;;  %v3094_v17 = vshrl.u32 (!%p621_p2), %v772_v16, 7  ;;  %v3096_v18 = vand.u32 (!%p621_p2), 127, %v772_v16  ;;  %s2915_s0 = smov (!%p621_p2), 64  }
  0x10   : > { %s2916_s23 = smov (!%p621_p2), 56   ;;  %s2917_s5 = smov (!%p621_p2), 112  }
  0x11   : > { %vm776_vm3 = vcmp.le.s32.totalorder (!%p621_p2), %v3096_v18, %v3094_v17  ;;  %s3436_s24 = smov (!%p621_p2), 80   ;;  %s3450_s26 = sld [smem:[#allocation6_spill]] (!%p621_p2) }
  0x12   : > { %v2852_v0 = vld [vmem:[%s3447_s4] sm:$0xff] (!%p621_p2)   ;;  %v2853_v2 = vld [vmem:[%s3447_s4 + $0x8] sm:$0xff] (!%p621_p2)  }
  0x13   : > { %2644 = vmatpush3.bf16.msra.mxu1 (!%p621_p2), %v2852_v0 }
  0x14   : > { %2645 = vmatprep.subr.bf16.mxu1 %v2910_v1  ;;  %s3459_s28 = smov (!%p684_p3, %s2514_s28), 1  ;;  %v2522_v4 = vld [vmem:[%s3449_s27] ss:$0 sm:$0xff]  ;;  %s2922_s27 = smov 40  }
  0x15   : > { %s3059_s1 = sshll.u32 %s3459_s28, 2  ;;  %s2912_s28 = smov 120  }
  0x16   : > { %s687_s25 = scalar_lea.vmem %s3448_s6, %s3059_s1  ;;  %s2921_s6 = smov 48  }
  0x17   : > { %2646 = vmatpush3.bf16.msra.mxu1 %v2853_v2  ;;  %v3066_v3 = vld [vmem:[%s687_s25] sm:$0xf]  ;;  %v769_v57 = vld [vmem:[%s3450_s26 + $0x4] sm:$0xf]  ;;  %s3456_s25 = smov 80   ;;  %s695_s2 = scalar_lea.vmem %s3432_s22, %s3059_s1 }
  0x18   : > { %2651 = vmatprep.subr.bf16.mxu1 %v2910_v1  ;;  %v768_v55 = vld [vmem:[%s3450_s26] sm:$0xf]  ;;  %v1008_v58 = vsel %vm846_vm4, %v769_v57, 0 }
  0x19   : > { %v1054_v56 = vsel %vm846_vm4, %v768_v55, 0 }
  0x1a   : > { %2648 = vmatmul.mubr.msk.bf16.vlgmr.msra.gmra.mrb[0].mxu1 %vm723_vm1, %v3066_v3 }
  0x1b   : > { %2653 = vmatprep.mubr.msk.bf16.mxu1 %vm2911_vm0, %v2910_v1 }
  0xed   : > { %v761_v5 = vpop.f32.mrb[0].mxu1 }
  0xee   : > { %v762_v6 = vadd.f32 %v2522_v4, %v761_v5  ;;  %v2649_v7 = vpop.f32.mrb[1].mxu1 }
  0xef   : > { %v764_v8 = vpop.f32.mrb[2].mxu1 }
  0xf0   : > { %v3075_v9 = vpack.c.bf16 %v762_v6, %v762_v6  ;;  %v2650_v10 = vpop.f32.mrb[3].mxu1 }
  0xf2   : > { %891 = vrot.lane.b32.xlu1 %v3075_v9, %s2912_s28  ;;  %778 = vrot.lane.b32.xlu0 %v3075_v9, %s3439_s29 }
  0xf6   : > { %893 = vrot.lane.b32.xlu0 %v3075_v9, %s2914_s30 }
 0x164   : > { %v779_v11 = vpop.permute.xlu0 %778  ;;  %v892_v15 = vpop.permute.xlu1 %891 }
 0x165   : > { %v785_v12 = vsel %vm780_vm2, %v779_v11, 0 }
 0x166   : > { %2652 = vmatpush3.bf16.xpose.msra.mxu1 %v785_v12 }
 0x167   : > { %2663 = vmatprep.subr.bf16.mxu1 %v2910_v1 }
 0x168   : > { %v894_v13 = vpop.permute.xlu0 %893 }
 0x169   : > { %v899_v14 = vsel %vm780_vm2, %v894_v13, 0 }
 0x16d   : > { %2654 = vmatmul.mubr.msk.bf16.vlgmr.msra.gmra.mrb[4].mxu1 %vm780_vm2, %v3075_v9 }
 0x16e   : > { %2664 = vmatpush3.bf16.xpose.msra.mxu1 %v899_v14  ;;  %2665 = vmatprep.mubr.msk.bf16.mxu1 %vm2911_vm0, %v2910_v1 }
 0x16f   : > { %2675 = vmatprep.subr.bf16.mxu1 %v2910_v1 }
 0x175   : > { %2666 = vmatmul.mubr.msk.bf16.vlgmr.msra.gmra.mrb[8].mxu1 %vm780_vm2, %v892_v15 }
 0x176   : > { %2677 = vmatprep.mubr.msk.bf16.mxu1 %vm2911_vm0, %v2910_v1  ;;  %2676 = vmatpush3.bf16.msra.mxu1 %v1008_v58 }
 0x177   : > { %2687 = vmatprep.subr.bf16.mxu1 %v2910_v1 }
 0x240   : > { %v821_v19 = vpop.f32.mrb[4].mxu1 }
 0x241   : > { %v827_v20 = vmul.f32 0.35355338, %v821_v19  ;;  %v2655_v21 = vpop.f32.mrb[5].mxu1 }
 0x242   : > { %v824_v22 = vpop.f32.mrb[6].mxu1 }
 0x243   : > { %v2656_v23 = vpop.f32.mrb[7].mxu1  ;;  %v828_v24 = vsel %vm776_vm3, %v827_v20, -3.4028235e+38 }
 0x244   : > { %v829_v25 = vsel %vm780_vm2, %v828_v24, -inf }
 0x245   : > { %830 = vmax.xlane.f32.xlu1 %v829_v25 }
 0x248   : > { %v935_v26 = vpop.f32.mrb[8].mxu1 }
 0x249   : > { %v941_v27 = vmul.f32 0.35355338, %v935_v26  ;;  %v2667_v28 = vpop.f32.mrb[9].mxu1 }
 0x24a   : > { %v938_v29 = vpop.f32.mrb[10].mxu1 }
 0x24b   : > { %v2668_v30 = vpop.f32.mrb[11].mxu1  ;;  %v942_v31 = vsel %vm776_vm3, %v941_v27, -3.4028235e+38 }
 0x24c   : > { %v943_v32 = vsel %vm780_vm2, %v942_v31, -inf }
 0x24d   : > { %944 = vmax.xlane.f32.xlu0 %v943_v32 }
 0x2d2   : > { %v831_v33 = vpop.xlane.xlu1 %830 }
 0x2d3   : > { %v832_v34 = vsub.f32 %v828_v24, %v831_v33 }
 0x2d5   : > { %v833_v35 = vmul.f32 1.442695, %v832_v34 }
 0x2d7   : > { %2864 = vpow2.f32 %v833_v35 }
 0x2da   : > { %v945_v36 = vpop.xlane.xlu0 %944 }
 0x2db   : > { %v946_v37 = vsub.f32 %v942_v31, %v945_v36 }
 0x2dd   : > { %v947_v38 = vmul.f32 1.442695, %v946_v37 }
 0x2df   : > { %2866 = vpow2.f32 %v947_v38 }
 0x2e1   : > { %v2865_v39 = vpop.eup %2864 }
 0x2e2   : > { %v835_v40 = vsel %vm780_vm2, %v2865_v39, 0.0 }
 0x2e3   : > { %836 = vadd.xlane.f32.xlu0 %v835_v40 }
 0x2e9   : > { %v2867_v41 = vpop.eup %2866 }
 0x2ea   : > { %v949_v42 = vsel %vm780_vm2, %v2867_v41, 0.0 }
 0x2eb   : > { %950 = vadd.xlane.f32.xlu1 %v949_v42 }
 0x2f9   : > { %841 = vrot.lane.b32.xlu0 %v3075_v9, %s2915_s0  ;;  %s3435_s0 = smov 72  }
 0x2fc   : > { %955 = vrot.lane.b32.xlu1 %v3075_v9, %s2916_s23  ;;  %s3437_s23 = smov 104  }
 0x2fd   : > { %1096 = vrot.lane.b32.xlu0 %v3075_v9, %s2917_s5 }
 0x300   : > { %1098 = vrot.lane.b32.xlu1 %v3075_v9, %s3436_s24 }
 0x370   : > { %v837_v43 = vpop.xlane.xlu0 %836 }
 0x371   : > { %2868 = vrcp.f32 %v837_v43  ;;  %v770_v43 = vld [vmem:[%s3450_s26 + $0x8] sm:$0xf] }
 0x374   : > { %v842_v44 = vpop.permute.xlu0 %841 }
 0x375   : > { %v848_v45 = vsel %vm846_vm4, %v842_v44, 0  ;;  %v1213_v44 = vsel %vm846_vm4, %v770_v43, 0  ;;  %v2540_v43 = vld [vmem:[%s3417_s7] ss:$0 sm:$0xff] }
 0x376   : > { %2658 = vmatpush3.bf16.msra.mxu0 %v848_v45 }
 0x377   : > { %2669 = vmatprep.subr.bf16.mxu0 %v2910_v1 }
 0x378   : > { %v951_v46 = vpop.xlane.xlu1 %950  ;;  %v1097_v10 = vpop.permute.xlu0 %1096 }
 0x379   : > { %2870 = vrcp.f32 %v951_v46 }
 0x37b   : > { %v2869_v47 = vpop.eup %2868 }
 0x37c   : > { %v839_v48 = vmul.f32 %v2869_v47, %v2865_v39  ;;  %v956_v49 = vpop.permute.xlu1 %955 }
 0x37d   : > { %v961_v51 = vsel %vm846_vm4, %v956_v49, 0 }
 0x37e   : > { %v840_v50 = vpack.c.bf16 %v839_v48, %v839_v48 }
 0x380   : > { %2660 = vmatmul.mubr.msk.bf16.vlgmr.msra.gmra.mrb[0].mxu0 %vm780_vm2, %v840_v50  ;;  %v1099_v0 = vpop.permute.xlu1 %1098 }
 0x381   : > { %2670 = vmatpush3.bf16.msra.mxu0 %v961_v51  ;;  %2671 = vmatprep.mubr.msk.bf16.mxu0 %vm2911_vm0, %v2910_v1  ;;  %v1104_v7 = vsel %vm780_vm2, %v1099_v0, 0 }
 0x382   : > { %2681 = vmatprep.subr.bf16.mxu0 %v2910_v1 }
 0x383   : > { %v2871_v52 = vpop.eup %2870 }
 0x384   : > { %v953_v53 = vmul.f32 %v2871_v52, %v2867_v41 }
 0x386   : > { %v954_v54 = vpack.c.bf16 %v953_v53, %v953_v53 }
 0x388   : > { %2672 = vmatmul.mubr.msk.bf16.vlgmr.msra.gmra.mrb[4].mxu0 %vm780_vm2, %v954_v54 }
 0x389   : > { %2683 = vmatprep.mubr.msk.bf16.mxu0 %vm2911_vm0, %v2910_v1  ;;  %2682 = vmatpush3.bf16.msra.mxu0 %v1054_v56 }
 0x38a   : > { %2693 = vmatprep.subr.bf16.mxu0 %v2910_v1 }
 0x453   : > { %v884_v59 = vpop.f32.mrb[0].mxu0 }
 0x454   : > { %v890_v60 = vpack.c.bf16 %v884_v59, %v884_v59  ;;  %v2661_v61 = vpop.f32.mrb[1].mxu0 }
 0x455   : > { %v887_v62 = vpop.f32.mrb[2].mxu0 }
 0x456   : > { %v2662_v63 = vpop.f32.mrb[3].mxu0  ;;  %2684 = vmatmul.mubr.msk.bf16.vlgmr.msra.gmra.mrb[8].mxu0 %vm780_vm2, %v890_v60 }
 0x457   : > { %2695 = vmatprep.mubr.msk.bf16.mxu0 %vm2911_vm0, %v2910_v1 }
 0x45b   : > { %v997_v2 = vpop.f32.mrb[4].mxu0 }
 0x45c   : > { %v1003_v4 = vpack.c.bf16 %v997_v2, %v997_v2  ;;  %v2673_v5 = vpop.f32.mrb[5].mxu0 }
 0x45d   : > { %v1000_v6 = vpop.f32.mrb[6].mxu0 }
 0x45e   : > { %v2674_v8 = vpop.f32.mrb[7].mxu0  ;;  %2678 = vmatmul.mubr.msk.bf16.vlgmr.msra.gmra.mrb[12].mxu1 %vm780_vm2, %v1003_v4 }
 0x45f   : > { %2688 = vmatpush3.bf16.xpose.msra.mxu1 %v1104_v7  ;;  %2689 = vmatprep.mubr.msk.bf16.mxu1 %vm2911_vm0, %v2910_v1  ;;  %v771_v8 = vld [vmem:[%s3450_s26 + $0xc] sm:$0xf] }
 0x460   : > { %2699 = vmatprep.subr.bf16.mxu1 %v2910_v1 }
 0x466   : > { %2690 = vmatmul.mubr.msk.bf16.vlgmr.msra.gmra.mrb[16].mxu1 %vm780_vm2, %v1097_v10  ;;  %v1373_v10 = vsel %vm846_vm4, %v771_v8, 0 }
 0x467   : > { %2701 = vmatprep.mubr.msk.bf16.mxu1 %vm2911_vm0, %v2910_v1  ;;  %2700 = vmatpush3.bf16.msra.mxu1 %v1213_v44 }
 0x468   : > { %2711 = vmatprep.subr.bf16.mxu1 %v2910_v1 }
 0x529   : > { %v1090_v11 = vpop.f32.mrb[8].mxu0 }
 0x52a   : > { %v2685_v12 = vpop.f32.mrb[9].mxu0 }
 0x52b   : > { %v1093_v13 = vpop.f32.mrb[10].mxu0 }
 0x52c   : > { %v2686_v14 = vpop.f32.mrb[11].mxu0 }
 0x531   : > { %v1044_v15 = vpop.f32.mrb[12].mxu1 }
 0x532   : > { %v3147_v16 = vadd.f32 %v1090_v11, %v1044_v15  ;;  %v2679_v19 = vpop.f32.mrb[13].mxu1 }
 0x533   : > { %v1047_v20 = vpop.f32.mrb[14].mxu1 }
 0x534   : > { %v2680_v21 = vpop.f32.mrb[15].mxu1 }
 0x539   : > { %v1140_v22 = vpop.f32.mrb[16].mxu1 }
 0x53a   : > { %v1146_v23 = vmul.f32 0.35355338, %v1140_v22  ;;  %v2691_v24 = vpop.f32.mrb[17].mxu1  ;;  %v698_v22 = vunpack.c.l.bf16 %v3066_v3  ;;  %v2855_v3 = vld [vmem:[%s3420_s10 + $0x8] sm:$0xff]  }
 0x53b   : > { %v1143_v25 = vpop.f32.mrb[18].mxu1 }
 0x53c   : > { %v2692_v26 = vpop.f32.mrb[19].mxu1  ;;  %v1147_v27 = vsel %vm776_vm3, %v1146_v23, -3.4028235e+38 }
 0x53d   : > { %v1148_v28 = vsel %vm780_vm2, %v1147_v27, -inf }
 0x53e   : > { %1149 = vmax.xlane.f32.xlu1 %v1148_v28 }
 0x54f   : > { %1258 = vrot.lane.b32.xlu1 %v3075_v9, %s3435_s0  ;;  %s3453_s0 = sld [smem:[#allocation8_spill]] }
 0x553   : > { %1256 = vrot.lane.b32.xlu1 %v3075_v9, %s3437_s23  ;;  %s3452_s23 = sld [smem:[#allocation3_spill]] }
 0x559   : > { %s691_s29 = scalar_lea.vmem %s3452_s23, %s3059_s1  ;;  %s3455_s23 = smov 104  }
 0x5cb   : > { %v1150_v29 = vpop.xlane.xlu1 %1149 }
 0x5cc   : > { %v1151_v30 = vsub.f32 %v1147_v27, %v1150_v29 }
 0x5ce   : > { %v1152_v31 = vmul.f32 1.442695, %v1151_v30 }
 0x5cf   : > { %v1259_v39 = vpop.permute.xlu1 %1258 }
 0x5d0   : > { %2872 = vpow2.f32 %v1152_v31  ;;  %v1264_v41 = vsel %vm780_vm2, %v1259_v39, 0 }
 0x5d3   : > { %v1257_v42 = vpop.permute.xlu1 %1256 }
 0x5da   : > { %v2873_v32 = vpop.eup %2872 }
 0x5db   : > { %v1154_v33 = vsel %vm780_vm2, %v2873_v32, 0.0 }
 0x5dc   : > { %1155 = vadd.xlane.f32.xlu0 %v1154_v33  ;;  %v2854_v33 = vld [vmem:[%s3420_s10] sm:$0xff]  }
 0x5f2   : > { %1160 = vrot.lane.b32.xlu0 %v3075_v9, %s2921_s6  ;;  %s3451_s6 = sld [smem:[#allocation7_spill]] }
 0x5f8   : > { %v2538_v19 = vld [vmem:[%s3451_s6] ss:$0 sm:$0xff]  ;;  %s3457_s6 = smov 72  }
 0x669   : > { %v1156_v34 = vpop.xlane.xlu0 %1155 }
 0x66a   : > { %2874 = vrcp.f32 %v1156_v34  ;;  %v699_v34 = vld [vmem:[%s691_s29] sm:$0xf] }
 0x66d   : > { %v1161_v35 = vpop.permute.xlu0 %1160 }
 0x66e   : > { %v1166_v36 = vsel %vm846_vm4, %v1161_v35, 0  ;;  %v2856_v35 = vld [vmem:[%s3418_s8] sm:$0xff]  }
 0x66f   : > { %2694 = vmatpush3.bf16.msra.mxu0 %v1166_v36  ;;  %v2857_v36 = vld [vmem:[%s3418_s8 + $0x8] sm:$0xff]  }
 0x670   : > { %2705 = vmatprep.subr.bf16.mxu0 %v2910_v1 }
 0x674   : > { %v2875_v37 = vpop.eup %2874 }
 0x675   : > { %v1158_v38 = vmul.f32 %v2875_v37, %v2873_v32 }
 0x677   : > { %v1159_v40 = vpack.c.bf16 %v1158_v38, %v1158_v38 }
 0x679   : > { %2696 = vmatmul.mubr.msk.bf16.vlgmr.msra.gmra.mrb[12].mxu0 %vm780_vm2, %v1159_v40 }
 0x67a   : > { %2706 = vmatpush3.bf16.xpose.msra.mxu0 %v1264_v41  ;;  %2707 = vmatprep.mubr.msk.bf16.mxu0 %vm2911_vm0, %v2910_v1  ;;  %v2539_v41 = vld [vmem:[%s3453_s0] ss:$0 sm:$0xff] }
 0x67b   : > { %2717 = vmatprep.subr.bf16.mxu0 %v2910_v1 }
 0x681   : > { %2708 = vmatmul.mubr.msk.bf16.vlgmr.msra.gmra.mrb[16].mxu0 %vm780_vm2, %v1257_v42 }
 0x682   : > { %2719 = vmatprep.mubr.msk.bf16.mxu0 %vm2911_vm0, %v2910_v1  ;;  %2718 = vmatpush3.bf16.msra.mxu0 %v1373_v10 }
 0x683   : > { %2731 = vmatprep.subr.bf16.mxu0 %v2910_v1 }
 0x74c   : > { %v1202_v45 = vpop.f32.mrb[12].mxu0 }
 0x74d   : > { %v1208_v46 = vpack.c.bf16 %v1202_v45, %v1202_v45  ;;  %v2697_v47 = vpop.f32.mrb[13].mxu0 }
 0x74e   : > { %v1205_v48 = vpop.f32.mrb[14].mxu0  ;;  %v2545_v47 = vld [vmem:[%s3421_s11] ss:$0 sm:$0xff] }
 0x74f   : > { %v2698_v49 = vpop.f32.mrb[15].mxu0  ;;  %2702 = vmatmul.mubr.msk.bf16.vlgmr.msra.gmra.mrb[20].mxu1 %vm780_vm2, %v1208_v46 }
 0x750   : > { %2713 = vmatprep.mubr.msk.bf16.mxu1 %vm2911_vm0, %v2910_v1 }
 0x754   : > { %v1300_v50 = vpop.f32.mrb[16].mxu0 }
 0x755   : > { %v1306_v51 = vmul.f32 0.35355338, %v1300_v50  ;;  %v2709_v52 = vpop.f32.mrb[17].mxu0 }
 0x756   : > { %v1303_v53 = vpop.f32.mrb[18].mxu0 }
 0x757   : > { %v2710_v54 = vpop.f32.mrb[19].mxu0  ;;  %v1307_v55 = vsel %vm776_vm3, %v1306_v51, -3.4028235e+38 }
 0x758   : > { %v1308_v56 = vsel %vm780_vm2, %v1307_v55, -inf }
 0x759   : > { %1309 = vmax.xlane.f32.xlu0 %v1308_v56 }
 0x76f   : > { %1320 = vrot.lane.b32.xlu0 %v3075_v9, %s2922_s27 }
 0x7e6   : > { %v1310_v57 = vpop.xlane.xlu0 %1309 }
 0x7e7   : > { %v1311_v58 = vsub.f32 %v1307_v55, %v1310_v57  ;;  %v2541_v55 = vld [vmem:[%s3419_s9] ss:$0 sm:$0xff] }
 0x7e9   : > { %v1312_v59 = vmul.f32 1.442695, %v1311_v58 }
 0x7ea   : > { %v1321_v60 = vpop.permute.xlu0 %1320 }
 0x7eb   : > { %2876 = vpow2.f32 %v1312_v59  ;;  %v1326_v61 = vsel %vm846_vm4, %v1321_v60, 0 }
 0x7ec   : > { %2712 = vmatpush3.bf16.msra.mxu1 %v1326_v61 }
 0x7ed   : > { %2723 = vmatprep.subr.bf16.mxu1 %v2910_v1 }
 0x7f5   : > { %v2877_v62 = vpop.eup %2876 }
 0x7f6   : > { %v1314_v17 = vsel %vm780_vm2, %v2877_v62, 0.0 }
 0x7f7   : > { %1315 = vadd.xlane.f32.xlu1 %v1314_v17 }
 0x822   : > { %v1249_v18 = vpop.f32.mrb[20].mxu1 }
 0x823   : > { %v1255_v63 = vadd.f32 %v1249_v18, %v3147_v16  ;;  %v2703_v0 = vpop.f32.mrb[21].mxu1 }
 0x824   : > { %v1252_v2 = vpop.f32.mrb[22].mxu1 }
 0x825   : > { %v2704_v9 = vpop.f32.mrb[23].mxu1 }
 0x884   : > { %v1316_v4 = vpop.xlane.xlu1 %1315 }
 0x885   : > { %2878 = vrcp.f32 %v1316_v4 }
 0x88f   : > { %v2879_v5 = vpop.eup %2878 }
 0x890   : > { %v1318_v6 = vmul.f32 %v2879_v5, %v2877_v62 }
 0x892   : > { %v1319_v7 = vpack.c.bf16 %v1318_v6, %v1318_v6 }
 0x894   : > { %2714 = vmatmul.mubr.msk.bf16.vlgmr.msra.gmra.mrb[24].mxu1 %vm780_vm2, %v1319_v7 }
 0x895   : > { %2727 = vmatprep.mubr.msk.bf16.mxu1 %vm2911_vm0, %v2910_v1  ;;  %2724 = vmatpush3.bf16.msra.mxu1 %v2856_v35 }
 0x896   : > { %2725 = vmatprep.subr.bf16.mxu1 %v2910_v1 }
 0x899   : > { %2726 = vmatpush3.bf16.msra.mxu1 %v2857_v36  ;;  %v1590_v36 = vld [vmem:[%s3422_s12] sm:$0xf] }
 0x89a   : > { %2739 = vmatprep.subr.bf16.mxu1 %v2910_v1 }
 0x967   : > { %v1362_v11 = vpop.f32.mrb[24].mxu1 }
 0x968   : > { %v1368_v12 = vpack.c.bf16 %v1362_v11, %v1362_v11  ;;  %v2715_v13 = vpop.f32.mrb[25].mxu1 }
 0x969   : > { %v1365_v14 = vpop.f32.mrb[26].mxu1 }
 0x96a   : > { %v2716_v15 = vpop.f32.mrb[27].mxu1  ;;  %2720 = vmatmul.mubr.msk.bf16.vlgmr.msra.gmra.mrb[20].mxu0 %vm780_vm2, %v1368_v12 }
 0x96b   : > { %2735 = vmatprep.mubr.msk.bf16.mxu0 %vm2911_vm0, %v2910_v1  ;;  %2732 = vmatpush3.bf16.msra.mxu0 %v2854_v33 }
 0x96c   : > { %2733 = vmatprep.subr.bf16.mxu0 %v2910_v1 }
 0x96f   : > { %2734 = vmatpush3.bf16.msra.mxu0 %v2855_v3 }
 0x970   : > { %2745 = vmatprep.subr.bf16.mxu0 %v2910_v1 }
 0x972   : > { %2736 = vmatmul.mubr.msk.bf16.vlgmr.msra.gmra.mrb[24].mxu0 %vm723_vm1, %v699_v34 }
 0x973   : > { %2747 = vmatprep.mubr.msk.bf16.mxu0 %vm2911_vm0, %v2910_v1 }
 0xa3d   : > { %v1409_v16 = vpop.f32.mrb[20].mxu0 }
 0xa3e   : > { %v1415_v20 = vadd.f32 %v1409_v16, %v1255_v63  ;;  %v2721_v21 = vpop.f32.mrb[21].mxu0 }
 0xa3f   : > { %v1412_v23 = vpop.f32.mrb[22].mxu0 }
 0xa40   : > { %v1423_v24 = vadd.f32 %v2538_v19, %v1415_v20  ;;  %v2722_v25 = vpop.f32.mrb[23].mxu0 }
 0xa42   : > { %v1424_v26 = vadd.f32 %v1423_v24, %v698_v22 }
 0xa44   : > { %v1427_v27 = vsel %vm723_vm1, %v1424_v26, 0.0 }
 0xa45   : > { %1428 = vadd.xlane.f32.xlu1 %v1427_v27  ;;  %v1583_v48 = vpop.f32.mrb[24].mxu0 }
 0xa46   : > { %v1584_v49 = vadd.f32 %v2545_v47, %v1583_v48  ;;  %v2737_v50 = vpop.f32.mrb[25].mxu0 }
 0xa47   : > { %v1586_v51 = vpop.f32.mrb[26].mxu0 }
 0xa48   : > { %v3242_v52 = vpack.c.bf16 %v1584_v49, %v1584_v49  ;;  %v2738_v53 = vpop.f32.mrb[27].mxu0 }
 0xa4a   : > { %v1598_v54 = vsel %vm780_vm2, %v3242_v52, 0 }
 0xad2   : > { %v1429_v28 = vpop.xlane.xlu1 %1428 }
 0xad3   : > { %v1431_v29 = vmul.f32 0.03125, %v1429_v28 }
 0xad5   : > { %v1432_v30 = vsub.f32 %v1424_v26, %v1431_v29 }
 0xad7   : > { %v1433_v31 = vmul.f32 %v1432_v30, %v1432_v30 }
 0xad9   : > { %v1434_v32 = vsel %vm723_vm1, %v1433_v31, 0.0 }
 0xada   : > { %1435 = vadd.xlane.f32.xlu1 %v1434_v32 }
 0xaeb   : > { %1706 = vrot.lane.b32.xlu1 %v3242_v52, %s2912_s28 }
 0xb67   : > { %v1436_v37 = vpop.xlane.xlu1 %1435 }
 0xb68   : > { %v1437_v38 = vmul.f32 0.03125, %v1436_v37  ;;  %v1866_v37 = vsel %vm846_vm4, %v1590_v36, 0 }
 0xb6a   : > { %v1438_v39 = vadd.f32 1e-05, %v1437_v38  ;;  %v1591_v38 = vld [vmem:[%s3422_s12 + $0x4] sm:$0xf] }
 0xb6b   : > { %v1707_v57 = vpop.permute.xlu1 %1706 }
 0xb6c   : > { %2880 = vrsqrt.f32 %v1438_v39  ;;  %v1712_v17 = vsel %vm780_vm2, %v1707_v57, 0  ;;  %v1820_v39 = vsel %vm846_vm4, %v1591_v38, 0 }
 0xb76   : > { %v2881_v40 = vpop.eup %2880 }
 0xb77   : > { %v1440_v42 = vmul.f32 %v2881_v40, %v1432_v30 }
 0xb79   : > { %v1447_v44 = vmul.f32 %v2539_v41, %v1440_v42 }
 0xb7b   : > { %v3232_v45 = vadd.f32 %v2540_v43, %v1447_v44 }
 0xb7d   : > { %v1455_v46 = vpack.c.bf16 %v3232_v45, %v3232_v45 }
 0xb7f   : > { %2728 = vmatmul.mubr.msk.bf16.vlgmr.msra.gmra.mrb[28].mxu1 %vm723_vm1, %v1455_v46 }
 0xb80   : > { %2741 = vmatprep.mubr.msk.bf16.mxu1 %vm2911_vm0, %v2910_v1  ;;  %2740 = vmatpush3.bf16.xpose.msra.mxu1 %v1598_v54 }
 0xb81   : > { %2751 = vmatprep.subr.bf16.mxu1 %v2910_v1 }
 0xc52   : > { %v1516_v56 = vpop.f32.mrb[28].mxu1 }
 0xc53   : > { %v1517_v58 = vadd.f32 %v2541_v55, %v1516_v56  ;;  %v2729_v59 = vpop.f32.mrb[29].mxu1 }
 0xc54   : > { %v1519_v60 = vpop.f32.mrb[30].mxu1 }
 0xc55   : > { %v3252_v61 = vpack.c.bf16 %v1517_v58, %v1517_v58  ;;  %v2730_v62 = vpop.f32.mrb[31].mxu1 }
 0xc57   : > { %1704 = vrot.lane.b32.xlu0 %v3252_v61, %s2912_s28  ;;  %2742 = vmatmul.mubr.msk.bf16.vlgmr.msra.gmra.mrb[32].mxu1 %vm780_vm2, %v3252_v61  ;;  %s3454_s28 = smov 96  }
 0xc58   : > { %2752 = vmatpush3.bf16.xpose.msra.mxu1 %v1712_v17  ;;  %2753 = vmatprep.mubr.msk.bf16.mxu1 %vm2911_vm0, %v2910_v1 }
 0xc59   : > { %2763 = vmatprep.subr.bf16.mxu1 %v2910_v1 }
 0xcc9   : > { %v1705_v18 = vpop.permute.xlu0 %1704 }
 0xcca   : > { %2754 = vmatmul.mubr.msk.bf16.vlgmr.msra.gmra.mrb[36].mxu1 %vm780_vm2, %v1705_v18 }
 0xccb   : > { %2765 = vmatprep.mubr.msk.bf16.mxu1 %vm2911_vm0, %v2910_v1  ;;  %2764 = vmatpush3.bf16.msra.mxu1 %v1820_v39 }
 0xccc   : > { %2775 = vmatprep.subr.bf16.mxu1 %v2910_v1 }
 0xd2a   : > { %v1634_v63 = vpop.f32.mrb[32].mxu1 }
 0xd2b   : > { %v1640_v0 = vmul.f32 0.35355338, %v1634_v63  ;;  %v2743_v2 = vpop.f32.mrb[33].mxu1 }
 0xd2c   : > { %v1637_v9 = vpop.f32.mrb[34].mxu1 }
 0xd2d   : > { %v2744_v4 = vpop.f32.mrb[35].mxu1  ;;  %v1641_v5 = vsel %vm780_vm2, %v1640_v0, -inf }
 0xd2e   : > { %1642 = vmax.xlane.f32.xlu0 %v1641_v5 }
 0xd9d   : > { %v1748_v6 = vpop.f32.mrb[36].mxu1 }
 0xd9e   : > { %v1754_v7 = vmul.f32 0.35355338, %v1748_v6  ;;  %v2755_v8 = vpop.f32.mrb[37].mxu1 }
 0xd9f   : > { %v1751_v10 = vpop.f32.mrb[38].mxu1 }
 0xda0   : > { %v2756_v11 = vpop.f32.mrb[39].mxu1  ;;  %v1755_v12 = vsel %vm780_vm2, %v1754_v7, -inf }
 0xda1   : > { %1756 = vmax.xlane.f32.xlu1 %v1755_v12 }
 0xdb2   : > { %1767 = vrot.lane.b32.xlu1 %v3242_v52, %s2914_s30 }
 0xdb6   : > { %1910 = vrot.lane.b32.xlu1 %v3242_v52, %s2917_s5 }
 0xdbb   : > { %v1643_v13 = vpop.xlane.xlu0 %1642 }
 0xdbc   : > { %v1644_v14 = vsub.f32 %v1640_v0, %v1643_v13 }
 0xdbe   : > { %v1645_v15 = vmul.f32 1.442695, %v1644_v14 }
 0xdc0   : > { %2882 = vpow2.f32 %v1645_v15 }
 0xdca   : > { %v2883_v16 = vpop.eup %2882 }
 0xdcb   : > { %v1647_v19 = vsel %vm780_vm2, %v2883_v16, 0.0 }
 0xdcc   : > { %1648 = vadd.xlane.f32.xlu0 %v1647_v19 }
 0xe2e   : > { %v1757_v20 = vpop.xlane.xlu1 %1756 }
 0xe2f   : > { %v1758_v21 = vsub.f32 %v1754_v7, %v1757_v20 }
 0xe31   : > { %v1759_v22 = vmul.f32 1.442695, %v1758_v21 }
 0xe32   : > { %v1768_v31 = vpop.permute.xlu1 %1767 }
 0xe33   : > { %2884 = vpow2.f32 %v1759_v22  ;;  %v1773_v33 = vsel %vm846_vm4, %v1768_v31, 0  ;;  %v1592_v22 = vld [vmem:[%s3422_s12 + $0x8] sm:$0xf] }
 0xe36   : > { %v1911_v46 = vpop.permute.xlu1 %1910 }
 0xe37   : > { %v1916_v51 = vsel %vm780_vm2, %v1911_v46, 0 }
 0xe3d   : > { %v2885_v23 = vpop.eup %2884 }
 0xe3e   : > { %v1761_v24 = vsel %vm780_vm2, %v2885_v23, 0.0 }
 0xe3f   : > { %1762 = vadd.xlane.f32.xlu0 %v1761_v24 }
 0xe55   : > { %1654 = vrot.lane.b32.xlu0 %v3242_v52, %s3454_s28 }
 0xe59   : > { %1908 = vrot.lane.b32.xlu0 %v3252_v61, %s2917_s5  ;;  %v1649_v25 = vpop.xlane.xlu0 %1648 }
 0xe5a   : > { %2886 = vrcp.f32 %v1649_v25 }
 0xe64   : > { %v2887_v26 = vpop.eup %2886 }
 0xe65   : > { %v1651_v28 = vmul.f32 %v2887_v26, %v2883_v16 }
 0xe67   : > { %v1652_v32 = vpack.c.bf16 %v1651_v28, %v1651_v28 }
 0xecc   : > { %v1763_v27 = vpop.xlane.xlu0 %1762 }
 0xecd   : > { %2888 = vrcp.f32 %v1763_v27 }
 0xed0   : > { %v1655_v29 = vpop.permute.xlu0 %1654 }
 0xed1   : > { %v1660_v30 = vsel %vm846_vm4, %v1655_v29, 0 }
 0xed2   : > { %2746 = vmatpush3.bf16.msra.mxu0 %v1660_v30 }
 0xed3   : > { %2757 = vmatprep.subr.bf16.mxu0 %v2910_v1 }
 0xed4   : > { %v1909_v54 = vpop.permute.xlu0 %1908 }
 0xed5   : > { %2748 = vmatmul.mubr.msk.bf16.vlgmr.msra.gmra.mrb[28].mxu0 %vm780_vm2, %v1652_v32 }
 0xed6   : > { %2758 = vmatpush3.bf16.msra.mxu0 %v1773_v33  ;;  %2759 = vmatprep.mubr.msk.bf16.mxu0 %vm2911_vm0, %v2910_v1 }
 0xed7   : > { %v2889_v3 = vpop.eup %2888  ;;  %2769 = vmatprep.subr.bf16.mxu0 %v2910_v1 }
 0xed8   : > { %v1765_v34 = vmul.f32 %v2889_v3, %v2885_v23  ;;  %v2024_v23 = vsel %vm846_vm4, %v1592_v22, 0 }
 0xeda   : > { %v1766_v35 = vpack.c.bf16 %v1765_v34, %v1765_v34 }
 0xedd   : > { %2760 = vmatmul.mubr.msk.bf16.vlgmr.msra.gmra.mrb[32].mxu0 %vm780_vm2, %v1766_v35 }
 0xede   : > { %2771 = vmatprep.mubr.msk.bf16.mxu0 %vm2911_vm0, %v2910_v1  ;;  %2770 = vmatpush3.bf16.msra.mxu0 %v1866_v37 }
 0xedf   : > { %2781 = vmatprep.subr.bf16.mxu0 %v2910_v1 }
 0xfa8   : > { %v1696_v40 = vpop.f32.mrb[28].mxu0 }
 0xfa9   : > { %v1702_v41 = vpack.c.bf16 %v1696_v40, %v1696_v40  ;;  %v2749_v42 = vpop.f32.mrb[29].mxu0 }
 0xfaa   : > { %v1699_v43 = vpop.f32.mrb[30].mxu0 }
 0xfab   : > { %v2750_v44 = vpop.f32.mrb[31].mxu0  ;;  %2772 = vmatmul.mubr.msk.bf16.vlgmr.msra.gmra.mrb[36].mxu0 %vm780_vm2, %v1702_v41 }
 0xfac   : > { %2783 = vmatprep.mubr.msk.bf16.mxu0 %vm2911_vm0, %v2910_v1 }
 0xfb0   : > { %v1809_v47 = vpop.f32.mrb[32].mxu0 }
 0xfb1   : > { %v1815_v48 = vpack.c.bf16 %v1809_v47, %v1809_v47  ;;  %v2761_v49 = vpop.f32.mrb[33].mxu0 }
 0xfb2   : > { %v1812_v50 = vpop.f32.mrb[34].mxu0 }
 0xfb3   : > { %v2762_v53 = vpop.f32.mrb[35].mxu0  ;;  %2766 = vmatmul.mubr.msk.bf16.vlgmr.msra.gmra.mrb[40].mxu1 %vm780_vm2, %v1815_v48  ;;  %v1593_v50 = vld [vmem:[%s3422_s12 + $0xc] sm:$0xf] }
 0xfb4   : > { %2776 = vmatpush3.bf16.xpose.msra.mxu1 %v1916_v51  ;;  %2777 = vmatprep.mubr.msk.bf16.mxu1 %vm2911_vm0, %v2910_v1  ;;  %v2183_v51 = vsel %vm846_vm4, %v1593_v50, 0  ;;  %v2575_v50 = vld [vmem:[%s3431_s21] ss:$0 sm:$0xff] }
 0xfb5   : > { %2787 = vmatprep.subr.bf16.mxu1 %v2910_v1 }
 0xfbb   : > { %2778 = vmatmul.mubr.msk.bf16.vlgmr.msra.gmra.mrb[44].mxu1 %vm780_vm2, %v1909_v54 }
 0xfbc   : > { %2789 = vmatprep.mubr.msk.bf16.mxu1 %vm2911_vm0, %v2910_v1  ;;  %2788 = vmatpush3.bf16.msra.mxu1 %v2024_v23  ;;  %v2862_v23 = vld [vmem:[%s3428_s18 + $0x10] sm:$0xff]  }
 0xfbd   : > { %2799 = vmatprep.subr.bf16.mxu1 %v2910_v1 }
0x107e   : > { %v1902_v55 = vpop.f32.mrb[36].mxu0 }
0x107f   : > { %v2773_v56 = vpop.f32.mrb[37].mxu0 }
0x1080   : > { %v1905_v57 = vpop.f32.mrb[38].mxu0 }
0x1081   : > { %v2774_v58 = vpop.f32.mrb[39].mxu0 }
0x1086   : > { %v1856_v59 = vpop.f32.mrb[40].mxu1 }
0x1087   : > { %v3308_v60 = vadd.f32 %v1902_v55, %v1856_v59  ;;  %v2767_v62 = vpop.f32.mrb[41].mxu1  ;;  %v2561_v59 = vld [vmem:[%s3423_s13] ss:$0 sm:$0xff] }
0x1088   : > { %v1859_v17 = vpop.f32.mrb[42].mxu1 }
0x1089   : > { %v2768_v18 = vpop.f32.mrb[43].mxu1 }
0x108e   : > { %v1952_v63 = vpop.f32.mrb[44].mxu1 }
0x108f   : > { %v1958_v0 = vmul.f32 0.35355338, %v1952_v63  ;;  %v2779_v2 = vpop.f32.mrb[45].mxu1 }
0x1090   : > { %v1955_v9 = vpop.f32.mrb[46].mxu1 }
0x1091   : > { %v2780_v4 = vpop.f32.mrb[47].mxu1  ;;  %v1959_v5 = vsel %vm780_vm2, %v1958_v0, -inf }
0x1092   : > { %1960 = vmax.xlane.f32.xlu1 %v1959_v5 }
0x10a3   : > { %2069 = vrot.lane.b32.xlu1 %v3242_v52, %s3455_s23 }
0x10a7   : > { %2067 = vrot.lane.b32.xlu1 %v3252_v61, %s3455_s23 }
0x111f   : > { %v1961_v6 = vpop.xlane.xlu1 %1960 }
0x1120   : > { %v1962_v7 = vsub.f32 %v1958_v0, %v1961_v6 }
0x1122   : > { %v1963_v8 = vmul.f32 1.442695, %v1962_v7 }
0x1123   : > { %v2070_v16 = vpop.permute.xlu1 %2069 }
0x1124   : > { %2890 = vpow2.f32 %v1963_v8  ;;  %v2075_v20 = vsel %vm780_vm2, %v2070_v16, 0  ;;  %v2858_v8 = vld [vmem:[%s3426_s16] sm:$0xff]  }
0x1127   : > { %v2068_v21 = vpop.permute.xlu1 %2067 }
0x112e   : > { %v2891_v10 = vpop.eup %2890 }
0x112f   : > { %v1965_v11 = vsel %vm780_vm2, %v2891_v10, 0.0 }
0x1130   : > { %1966 = vadd.xlane.f32.xlu0 %v1965_v11  ;;  %v2861_v11 = vld [vmem:[%s3428_s18 + $0x8] sm:$0xff]  }
0x1146   : > { %1971 = vrot.lane.b32.xlu0 %v3242_v52, %s3456_s25 }
0x11bd   : > { %v1967_v12 = vpop.xlane.xlu0 %1966 }
0x11be   : > { %2892 = vrcp.f32 %v1967_v12 }
0x11c1   : > { %v1972_v13 = vpop.permute.xlu0 %1971 }
0x11c2   : > { %v1977_v14 = vsel %vm846_vm4, %v1972_v13, 0 }
0x11c3   : > { %2782 = vmatpush3.bf16.msra.mxu0 %v1977_v14 }
0x11c4   : > { %2793 = vmatprep.subr.bf16.mxu0 %v2910_v1 }
0x11c8   : > { %v2893_v61 = vpop.eup %2892 }
0x11c9   : > { %v1969_v15 = vmul.f32 %v2893_v61, %v2891_v10  ;;  %v2859_v10 = vld [vmem:[%s3426_s16 + $0x8] sm:$0xff]  }
0x11cb   : > { %v1970_v19 = vpack.c.bf16 %v1969_v15, %v1969_v15  ;;  %v2562_v15 = vld [vmem:[%s3424_s14] ss:$0 sm:$0xff] }
0x11cd   : > { %2784 = vmatmul.mubr.msk.bf16.vlgmr.msra.gmra.mrb[40].mxu0 %vm780_vm2, %v1970_v19  ;;  %v2563_v19 = vld [vmem:[%s3425_s15] ss:$0 sm:$0xff] }
0x11ce   : > { %2794 = vmatpush3.bf16.xpose.msra.mxu0 %v2075_v20  ;;  %2795 = vmatprep.mubr.msk.bf16.mxu0 %vm2911_vm0, %v2910_v1 }
0x11cf   : > { %2805 = vmatprep.subr.bf16.mxu0 %v2910_v1 }
0x11d5   : > { %2796 = vmatmul.mubr.msk.bf16.vlgmr.msra.gmra.mrb[44].mxu0 %vm780_vm2, %v2068_v21 }
0x11d6   : > { %2807 = vmatprep.mubr.msk.bf16.mxu0 %vm2911_vm0, %v2910_v1  ;;  %2806 = vmatpush3.bf16.msra.mxu0 %v2183_v51 }
0x11d7   : > { %2819 = vmatprep.subr.bf16.mxu0 %v2910_v1 }
0x12a0   : > { %v2013_v24 = vpop.f32.mrb[40].mxu0 }
0x12a1   : > { %v2019_v25 = vpack.c.bf16 %v2013_v24, %v2013_v24  ;;  %v2785_v26 = vpop.f32.mrb[41].mxu0  ;;  %v2863_v24 = vld [vmem:[%s3428_s18 + $0x18] sm:$0xff]  }
0x12a2   : > { %v2016_v27 = vpop.f32.mrb[42].mxu0 }
0x12a3   : > { %v2786_v28 = vpop.f32.mrb[43].mxu0  ;;  %2790 = vmatmul.mubr.msk.bf16.vlgmr.msra.gmra.mrb[48].mxu1 %vm780_vm2, %v2019_v25  ;;  %v2564_v25 = vld [vmem:[%s3427_s17] ss:$0 sm:$0xff] }
0x12a4   : > { %2801 = vmatprep.mubr.msk.bf16.mxu1 %vm2911_vm0, %v2910_v1 }
0x12a8   : > { %v2111_v29 = vpop.f32.mrb[44].mxu0 }
0x12a9   : > { %v2117_v30 = vmul.f32 0.35355338, %v2111_v29  ;;  %v2797_v31 = vpop.f32.mrb[45].mxu0 }
0x12aa   : > { %v2114_v32 = vpop.f32.mrb[46].mxu0 }
0x12ab   : > { %v2798_v33 = vpop.f32.mrb[47].mxu0  ;;  %v2118_v3 = vsel %vm780_vm2, %v2117_v30, -inf }
0x12ac   : > { %2119 = vmax.xlane.f32.xlu0 %v2118_v3 }
0x12c2   : > { %2130 = vrot.lane.b32.xlu0 %v3242_v52, %s3457_s6 }
0x1339   : > { %v2120_v34 = vpop.xlane.xlu0 %2119 }
0x133a   : > { %v2121_v35 = vsub.f32 %v2117_v30, %v2120_v34 }
0x133c   : > { %v2122_v36 = vmul.f32 1.442695, %v2121_v35 }
0x133d   : > { %v2131_v37 = vpop.permute.xlu0 %2130 }
0x133e   : > { %2894 = vpow2.f32 %v2122_v36  ;;  %v2136_v38 = vsel %vm846_vm4, %v2131_v37, 0 }
0x133f   : > { %2800 = vmatpush3.bf16.msra.mxu1 %v2136_v38 }
0x1340   : > { %2811 = vmatprep.subr.bf16.mxu1 %v2910_v1 }
0x1348   : > { %v2895_v39 = vpop.eup %2894 }
0x1349   : > { %v2124_v40 = vsel %vm780_vm2, %v2895_v39, 0.0 }
0x134a   : > { %2125 = vadd.xlane.f32.xlu1 %v2124_v40 }
0x1376   : > { %v2060_v41 = vpop.f32.mrb[48].mxu1 }
0x1377   : > { %v2066_v42 = vadd.f32 %v2060_v41, %v3308_v60  ;;  %v2791_v43 = vpop.f32.mrb[49].mxu1 }
0x1378   : > { %v2063_v44 = vpop.f32.mrb[50].mxu1 }
0x1379   : > { %v2792_v52 = vpop.f32.mrb[51].mxu1 }
0x13d7   : > { %v2126_v46 = vpop.xlane.xlu1 %2125 }
0x13d8   : > { %2896 = vrcp.f32 %v2126_v46 }
0x13e2   : > { %v2897_v47 = vpop.eup %2896 }
0x13e3   : > { %v2128_v48 = vmul.f32 %v2897_v47, %v2895_v39 }
0x13e5   : > { %v2129_v49 = vpack.c.bf16 %v2128_v48, %v2128_v48  ;;  %v2574_v48 = vld [vmem:[%s3430_s20] ss:$0 sm:$0xff] }
0x13e7   : > { %2802 = vmatmul.mubr.msk.bf16.vlgmr.msra.gmra.mrb[52].mxu1 %vm780_vm2, %v2129_v49 }
0x13e8   : > { %2815 = vmatprep.mubr.msk.bf16.mxu1 %vm2911_vm0, %v2910_v1  ;;  %2812 = vmatpush3.bf16.msra.mxu1 %v2858_v8 }
0x13e9   : > { %2813 = vmatprep.subr.bf16.mxu1 %v2910_v1 }
0x13ec   : > { %2814 = vmatpush3.bf16.msra.mxu1 %v2859_v10 }
0x14ba   : > { %v2172_v53 = vpop.f32.mrb[52].mxu1 }
0x14bb   : > { %v2178_v54 = vpack.c.bf16 %v2172_v53, %v2172_v53  ;;  %v2803_v55 = vpop.f32.mrb[53].mxu1 }
0x14bc   : > { %v2175_v56 = vpop.f32.mrb[54].mxu1 }
0x14bd   : > { %v2804_v57 = vpop.f32.mrb[55].mxu1  ;;  %2808 = vmatmul.mubr.msk.bf16.vlgmr.msra.gmra.mrb[48].mxu0 %vm780_vm2, %v2178_v54 }
0x14be   : > { %2827 = vmatprep.mubr.msk.bf16.mxu0 %vm2911_vm0, %v2910_v1 }
0x1590   : > { %v2219_v58 = vpop.f32.mrb[48].mxu0 }
0x1591   : > { %v2225_v60 = vadd.f32 %v2219_v58, %v2066_v42  ;;  %v2809_v62 = vpop.f32.mrb[49].mxu0 }
0x1592   : > { %v2222_v17 = vpop.f32.mrb[50].mxu0 }
0x1593   : > { %v2233_v18 = vadd.f32 %v2561_v59, %v2225_v60  ;;  %v2810_v63 = vpop.f32.mrb[51].mxu0 }
0x1595   : > { %v2234_v0 = vadd.f32 %v2233_v18, %v3232_v45  ;;  %v2860_v45 = vld [vmem:[%s3428_s18] sm:$0xff]  }
0x1596   : > { %2820 = vmatpush3.bf16.msra.mxu0 %v2860_v45 }
0x1597   : > { %v2237_v2 = vsel %vm723_vm1, %v2234_v0, 0.0  ;;  %2821 = vmatprep.subr.bf16.mxu0 %v2910_v1 }
0x1598   : > { %2238 = vadd.xlane.f32.xlu1 %v2237_v2 }
0x159a   : > { %2822 = vmatpush3.bf16.msra.mxu0 %v2861_v11 }
0x159b   : > { %2823 = vmatprep.subr.bf16.mxu0 %v2910_v1 }
0x159e   : > { %2824 = vmatpush3.bf16.msra.mxu0 %v2862_v23 }
0x159f   : > { %2825 = vmatprep.subr.bf16.mxu0 %v2910_v1  ;;  %v2568_v1 = vld [vmem:[%s3429_s19] ss:$0 sm:$0xff] }
0x15a2   : > { %2826 = vmatpush3.bf16.msra.mxu0 %v2863_v24 }
0x1625   : > { %v2239_v9 = vpop.xlane.xlu1 %2238 }
0x1626   : > { %v2240_v4 = vmul.f32 0.03125, %v2239_v9 }
0x1628   : > { %v2241_v5 = vsub.f32 %v2234_v0, %v2240_v4 }
0x162a   : > { %v2242_v6 = vmul.f32 %v2241_v5, %v2241_v5 }
0x162c   : > { %v2243_v7 = vsel %vm723_vm1, %v2242_v6, 0.0 }
0x162d   : > { %2244 = vadd.xlane.f32.xlu1 %v2243_v7 }
0x16ba   : > { %v2245_v12 = vpop.xlane.xlu1 %2244 }
0x16bb   : > { %v2246_v13 = vmul.f32 0.03125, %v2245_v12 }
0x16bd   : > { %v2247_v14 = vadd.f32 1e-05, %v2246_v13 }
0x16bf   : > { %2898 = vrsqrt.f32 %v2247_v14 }
0x16c9   : > { %v2899_v61 = vpop.eup %2898 }
0x16ca   : > { %v2249_v16 = vmul.f32 %v2899_v61, %v2241_v5 }
0x16cc   : > { %v2256_v20 = vmul.f32 %v2562_v15, %v2249_v16 }
0x16ce   : > { %v2263_v21 = vadd.f32 %v2563_v19, %v2256_v20 }
0x16d0   : > { %v2264_v22 = vpack.c.bf16 %v2263_v21, %v2263_v21 }
0x16d2   : > { %2816 = vmatmul.mubr.msk.bf16.vlgmr.msra.gmra.mrb[56].mxu1 %vm723_vm1, %v2264_v22 }
0x17a5   : > { %v2325_v26 = vpop.f32.mrb[56].mxu1 }
0x17a6   : > { %v2326_v27 = vadd.f32 %v2564_v25, %v2325_v26  ;;  %v2817_v28 = vpop.f32.mrb[57].mxu1 }
0x17a7   : > { %v2328_v29 = vpop.f32.mrb[58].mxu1 }
0x17a8   : > { %v2331_v30 = vmax.f32 %v2326_v27, 0.0  ;;  %v2818_v31 = vpop.f32.mrb[59].mxu1 }
0x17aa   : > { %v2332_v32 = vpack.c.bf16 %v2331_v30, %v2331_v30 }
0x17ac   : > { %2828 = vmatmul.mubr.msk.bf16.vlgmr.msra.gmra.mrb[52].mxu0 %vm2372_vm5, %v2332_v32 }
0x187f   : > { %v2410_v33 = vpop.f32.mrb[52].mxu0 }
0x1880   : > { %v2411_v3 = vadd.f32 %v2568_v1, %v2410_v33  ;;  %v2829_v34 = vpop.f32.mrb[53].mxu0 }
0x1881   : > { %v2413_v35 = vpop.f32.mrb[54].mxu0 }
0x1882   : > { %v2830_v36 = vpop.f32.mrb[55].mxu0  ;;  %v2416_v37 = vadd.f32 %v2411_v3, %v2263_v21 }
0x1884   : > { %v2419_v38 = vsel %vm723_vm1, %v2416_v37, 0.0 }
0x1885   : > { %2420 = vadd.xlane.f32.xlu1 %v2419_v38 }
0x1912   : > { %v2421_v39 = vpop.xlane.xlu1 %2420 }
0x1913   : > { %v2422_v40 = vmul.f32 0.03125, %v2421_v39 }
0x1915   : > { %v2423_v41 = vsub.f32 %v2416_v37, %v2422_v40 }
0x1917   : > { %v2424_v42 = vmul.f32 %v2423_v41, %v2423_v41 }
0x1919   : > { %v2425_v43 = vsel %vm723_vm1, %v2424_v42, 0.0 }
0x191a   : > { %2426 = vadd.xlane.f32.xlu1 %v2425_v43 }
0x19a7   : > { %v2427_v44 = vpop.xlane.xlu1 %2426 }
0x19a8   : > { %v2428_v52 = vmul.f32 0.03125, %v2427_v44 }
0x19aa   : > { %v2429_v46 = vadd.f32 1e-05, %v2428_v52 }
0x19ac   : > { %2900 = vrsqrt.f32 %v2429_v46 }
0x19b6   : > { %v2901_v47 = vpop.eup %2900 }
0x19b7   : > { %v2431_v49 = vmul.f32 %v2901_v47, %v2423_v41 }
0x19b9   : > { %v2438_v51 = vmul.f32 %v2574_v48, %v2431_v49 }
0x19bb   : > { %v2445_v53 = vadd.f32 %v2575_v50, %v2438_v51 }
0x19bd   : > { %v2446_v54 = vpack.c.bf16 %v2445_v53, %v2445_v53 }
0x19bf   : > { %2448 = vst.msk [vmem:[%s695_s2] sm:$0xf] %vm2447_vm6, %v2446_v54 }
0x19c0 PF: > { %s32_s3 = sadd.s32 1, %s2908_s3  }
0x19c1   : > { %p29_p4 = scmp.ge.s32.totalorder %s32_s3, 4  }
0x19c3   :  { %31 = sbr.rel (!%p29_p4) target bundleno = 8 (0x8), region = 141 }

// kernel: _lambda_.4
= control target key start
LH: loop header
LB: loop body
LE: loop exit
PB: predicated region body
PF: predicated region fallthrough
CT: control target
= control target key end

     0   :  { %s3517_s0 = inlined_call_operand.vmem [shape: bf16[2,8,32], index: 0, kind: input, shape index: {}]   ;;  %s3518_s1 = inlined_call_operand.vmem [shape: bf16[2,8,32], index: 1, kind: input, shape index: {}]   ;;  %s3519_s2 = inlined_call_operand.vmem [shape: bf16[32,96], index: 2, kind: input, shape index: {}]   ;;  %s3520_s3 = inlined_call_operand.vmem [shape: f32[1,96], index: 3, kind: input, shape index: {}]   ;;  %s3521_s4 = inlined_call_operand.vmem [shape: bf16[32,32], index: 4, kind: input, shape index: {}]   ;;  %s3522_s5 = inlined_call_operand.vmem [shape: f32[1,32], index: 5, kind: input, shape index: {}]   ;;  %s3523_s6 = inlined_call_operand.vmem [shape: f32[1,32], index: 6, kind: input, shape index: {}]   ;;  %s3524_s7 = inlined_call_operand.vmem [shape: f32[1,32], index: 7, kind: input, shape index: {}]   ;;  %s3525_s8 = inlined_call_operand.vmem [shape: bf16[32,32], index: 8, kind: input, shape index: {}]   ;;  %s3526_s9 = inlined_call_operand.vmem [shape: f32[1,32], index: 9, kind: input, shape index: {}]   ;;  %s3527_s10 = inlined_call_operand.vmem [shape: bf16[32,64], index: 10, kind: input, shape index: {}]   ;;  %s3528_s11 = inlined_call_operand.vmem [shape: f32[1,64], index: 11, kind: input, shape index: {}]   ;;  %s3529_s12 = inlined_call_operand.vmem [shape: bf16[32,32], index: 12, kind: input, shape index: {}]   ;;  %s3530_s13 = inlined_call_operand.vmem [shape: f32[1,32], index: 13, kind: input, shape index: {}]   ;;  %s3531_s14 = inlined_call_operand.vmem [shape: f32[1,32], index: 14, kind: input, shape index: {}]   ;;  %s3532_s15 = inlined_call_operand.vmem [shape: f32[1,32], index: 15, kind: input, shape index: {}]   ;;  %s3533_s16 = inlined_call_operand.vmem [shape: bf16[32,64], index: 16, kind: input, shape index: {}]   ;;  %s3534_s17 = inlined_call_operand.vmem [shape: f32[1,64], index: 17, kind: input, shape index: {}]   ;;  %s3535_s18 = inlined_call_operand.vmem [shape: bf16[64,32], index: 18, kind: input, shape index: {}]   ;;  %s3536_s19 = inlined_call_operand.vmem [shape: f32[1,32], index: 19, kind: input, shape index: {}]   ;;  %s3537_s20 = inlined_call_operand.vmem [shape: f32[1,32], index: 20, kind: input, shape index: {}]   ;;  %s3538_s21 = inlined_call_operand.hbm [shape: f32[1,32], index: 21, kind: input, shape index: {}]   ;;  %s3539_s22 = inlined_call_operand.vmem [shape: bf16[2,8,32], index: 22, kind: output, shape index: {}]  }
   0x1   :  { %3549 = sst [smem:[#allocation5_spill]] %s3517_s0 }
   0x2   :  { %3550 = sst [smem:[#allocation6_spill]] %s3518_s1 }
   0x3   :  { %3551 = sst [smem:[#allocation7_spill]] %s3519_s2 }
   0x4   :  { %3552 = sst [smem:[#allocation8_spill]] %s3520_s3 }
   0x5   :  { %3553 = sst [smem:[#allocation9_spill]] %s3521_s4 }
   0x6   :  { %3554 = sst [smem:[#allocation10_spill]] %s3522_s5 }
   0x7   :  { %3555 = sst [smem:[#allocation11_spill]] %s3523_s6 }
   0x8   :  { %27 = vsyncpa [#allocation3], 0  ;;  %s3109_s3 = smov 0  }
   0x9 LB: > { %s3115_s28 = sadd.s32 4294967295, %s2978_s3   ;;  %p2541_p0 = scmp.ge.s32.totalorder %s2978_s3, 1  ;;  %s2978_s3 = sphi %s3109_s3, %s33_s3  }
   0xa   : > { %p536_p1 = scmp.lt.s32.totalorder %s2978_s3, 3  ;;  %p3542_p3 = scmp.eq.s32.totalorder %s3115_s28, 0 }
   0xb   : > { %s2980_s30 = smov [#allocation2]   ;;  %s2940_s5 = scalar_lea.hbm %s3538_s21, 16 }
   0xc   : > { %p3119_p2 = pnand %p2541_p0, %p536_p1  ;;  %s606_s4 = sshll.u32 %s2980_s30, 4  ;;  %s607_s4 = int_to_ptr.vmem [resolvable:$true] %s606_s4 }
   0xd   : > { %p2941_p6 = scmp.ne.s32.totalorder %s3538_s21, %s2940_s5  ;;  %p2947_p10 = scmp.lt.u32.totalorder %s2940_s5, %s3538_s21 }
   0xe   : > { %s3556_s29 = scalar_select %p3119_p2, 1, 0 }
   0xf   : > { %p2862_p4 = pneg %p3119_p2 }
  0x11   : > { %p3128_p5 = pnand %p3542_p3, %p2862_p4 }
  0x13   : > { %p2942_p7 = pneg %p3128_p5 }
  0x15   : > { %p2943_p8 = pnand %p2942_p7, %p2941_p6 }
  0x17   : > { %p2944_p9 = pneg %p2943_p8 }
  0x19   : > { %p2949_p11 = pnand %p2947_p10, %p2944_p9 }
  0x1b   : > { %2952 = shalt.err (!%p2949_p11)
}
  0x1c   : > { %s2953_s2 = scalar_lea.vmem %s607_s4, 16  ;;  %s2960_s27 = scalar_lea.vmem %s607_s4, 32 }
  0x1d   : > { %p2954_p12 = scmp.ne.s32.totalorder %s607_s4, %s2953_s2  ;;  %p2961_p1 = scmp.lt.s32.totalorder %s607_s4, %s607_s4 }
  0x1e   : > { %p2962_p4 = scmp.lt.s32.totalorder %s2960_s27, %s2953_s2 }
  0x1f   : > { %p2956_p13 = pnand %p2954_p12, %p2942_p7 }
  0x20   : > { %p2963_p3 = por %p2962_p4, %p2961_p1 }
  0x21   : > { %p2957_p0 = pneg %p2956_p13 }
  0x23   : > { %p2964_p2 = pnand %p2963_p3, %p2957_p0 }
  0x25   : > { %2967 = shalt.err (!%p2964_p2)
}
  0x26   : > { %2865 = dma.hbm_to_vmem [thread:$0]  (!%p3128_p5), %s3538_s21, 16, %s607_s4, [#allocation3]  }
  0x27   : > { %p3558_p6 = scmp.ne.s32.totalorder %s3556_s29, 0 }
  0x28   : > { %p3559_p8 = scmp.eq.s32.totalorder (!%p3558_p6), %s3115_s28, 0 }
  0x29   : > { %633 = sbr.rel (%p3558_p6) target bundleno = 6629 (0x19e5), region = 108 }
  0x30   : > { %2973 = dma.done.wait (%p3559_p8), [#allocation3], 16   ;;  %p3560_p7 = pmov %p3559_p8 }
  0x31   : > { %p697_p9 = scmp.lt.s32.totalorder %s3115_s28, 1  ;;  %v2981_v0 = vmov 0.0   ;;  %vm2982_vm0 = vmmov 0   ;;  %s3561_s1 = sld [smem:[#allocation7_spill]]  ;;  %vm736_vm1 = vcmask 261120   ;;  %vm793_vm2 = vcmask 64512  }
  0x32   : > { %2975 = vsyncadd (%p3560_p7), [#allocation3], 4294967280  ;;  %2670 = vmatprep.subr.bf16.mxu1 %v2981_v0  ;;  %2674 = vmatprep.mubr.msk.bf16.mxu1 %vm2982_vm0, %v2981_v0  ;;  %s3562_s6 = sld [smem:[#allocation5_spill]]  ;;  %s3563_s30 = sld [smem:[#allocation8_spill]]  ;;  %v785_v16 = vlaneseq  ;;  %vm859_vm4 = vcmask 1043456   ;;  %vm2385_vm5 = vcmask 523264  }
  0x33   : > { %s3573_s28 = smov (!%p697_p9, %s3115_s28), 1  ;;  %2684 = vmatprep.subr.bf16.mxu0 %v2981_v0  ;;  %2686 = vmatprep.mubr.msk.bf16.mxu0 %vm2982_vm0, %v2981_v0  ;;  %s2983_s23 = smov 120   ;;  %vm2460_vm6 = vcmask 257024  }
  0x34   : > { %s3162_s29 = sshll.u32 %s3573_s28, 2  ;;  %s3548_s4 = smov 96   ;;  %v3204_v17 = vshrl.u32 %v785_v16, 7  ;;  %v3206_v18 = vand.u32 127, %v785_v16 }
  0x35   : > { %s2985_s0 = smov 88   ;;  %s2986_s5 = smov 64  }
  0x36   : > { %vm789_vm3 = vcmp.le.s32.totalorder %v3206_v18, %v3204_v17  ;;  %s2987_s24 = smov 56   ;;  %s3564_s28 = sld [smem:[#allocation9_spill]] }
  0x37   : > { %v2890_v1 = vld [vmem:[%s3561_s1] sm:$0xff]   ;;  %v2891_v2 = vld [vmem:[%s3561_s1 + $0x8] sm:$0xff]   ;;  %s2992_s26 = smov 48   ;;  %s3570_s2 = smov 80  }
  0x38   : > { %s700_s25 = scalar_lea.vmem %s3562_s6, %s3162_s29  ;;  %2671 = vmatpush3.bf16.msra.mxu1 %v2890_v1  ;;  %v2549_v4 = vld [vmem:[%s3563_s30] ss:$0 sm:$0xff]  ;;  %s2988_s6 = smov 112  }
  0x39   : > { %2672 = vmatprep.subr.bf16.mxu1 %v2981_v0  ;;  %v3175_v3 = vld [vmem:[%s700_s25] sm:$0xf]  ;;  %s3545_s25 = smov 80   ;;  %s2993_s30 = smov 40  }
  0x3c   : > { %2673 = vmatpush3.bf16.msra.mxu1 %v2891_v2  ;;  %v781_v55 = vld [vmem:[%s3564_s28] sm:$0xf]  ;;  %v782_v57 = vld [vmem:[%s3564_s28 + $0x4] sm:$0xf] }
  0x3d   : > { %2678 = vmatprep.subr.bf16.mxu1 %v2981_v0  ;;  %v1067_v56 = vsel %vm859_vm4, %v781_v55, 0  ;;  %v1021_v58 = vsel %vm859_vm4, %v782_v57, 0 }
  0x3f   : > { %2675 = vmatmul.mubr.msk.bf16.vlgmr.msra.gmra.mrb[0].mxu1 %vm736_vm1, %v3175_v3 }
  0x40   : > { %2680 = vmatprep.mubr.msk.bf16.mxu1 %vm2982_vm0, %v2981_v0 }
 0x112   : > { %v774_v5 = vpop.f32.mrb[0].mxu1 }
 0x113   : > { %v775_v6 = vadd.f32 %v2549_v4, %v774_v5  ;;  %v2676_v7 = vpop.f32.mrb[1].mxu1 }
 0x114   : > { %v777_v8 = vpop.f32.mrb[2].mxu1 }
 0x115   : > { %v3185_v9 = vpack.c.bf16 %v775_v6, %v775_v6  ;;  %v2677_v10 = vpop.f32.mrb[3].mxu1 }
 0x117   : > { %904 = vrot.lane.b32.xlu1 %v3185_v9, %s2983_s23  ;;  %791 = vrot.lane.b32.xlu0 %v3185_v9, %s3548_s4 }
 0x11b   : > { %906 = vrot.lane.b32.xlu0 %v3185_v9, %s2985_s0 }
 0x189   : > { %v792_v11 = vpop.permute.xlu0 %791  ;;  %v905_v15 = vpop.permute.xlu1 %904 }
 0x18a   : > { %v798_v12 = vsel %vm793_vm2, %v792_v11, 0 }
 0x18b   : > { %2679 = vmatpush3.bf16.xpose.msra.mxu1 %v798_v12 }
 0x18c   : > { %2690 = vmatprep.subr.bf16.mxu1 %v2981_v0 }
 0x18d   : > { %v907_v13 = vpop.permute.xlu0 %906 }
 0x18e   : > { %v912_v14 = vsel %vm793_vm2, %v907_v13, 0 }
 0x192   : > { %2681 = vmatmul.mubr.msk.bf16.vlgmr.msra.gmra.mrb[4].mxu1 %vm793_vm2, %v3185_v9 }
 0x193   : > { %2691 = vmatpush3.bf16.xpose.msra.mxu1 %v912_v14  ;;  %2692 = vmatprep.mubr.msk.bf16.mxu1 %vm2982_vm0, %v2981_v0 }
 0x194   : > { %2702 = vmatprep.subr.bf16.mxu1 %v2981_v0 }
 0x19a   : > { %2693 = vmatmul.mubr.msk.bf16.vlgmr.msra.gmra.mrb[8].mxu1 %vm793_vm2, %v905_v15 }
 0x19b   : > { %2704 = vmatprep.mubr.msk.bf16.mxu1 %vm2982_vm0, %v2981_v0  ;;  %2703 = vmatpush3.bf16.msra.mxu1 %v1021_v58 }
 0x19c   : > { %2714 = vmatprep.subr.bf16.mxu1 %v2981_v0 }
 0x265   : > { %v834_v19 = vpop.f32.mrb[4].mxu1 }
 0x266   : > { %v840_v20 = vmul.f32 0.35355338, %v834_v19  ;;  %v2682_v21 = vpop.f32.mrb[5].mxu1 }
 0x267   : > { %v837_v22 = vpop.f32.mrb[6].mxu1 }
 0x268   : > { %v2683_v23 = vpop.f32.mrb[7].mxu1  ;;  %v841_v24 = vsel %vm789_vm3, %v840_v20, -3.4028235e+38 }
 0x269   : > { %v842_v25 = vsel %vm793_vm2, %v841_v24, -inf }
 0x26a   : > { %843 = vmax.xlane.f32.xlu1 %v842_v25 }
 0x26d   : > { %v948_v26 = vpop.f32.mrb[8].mxu1 }
 0x26e   : > { %v954_v27 = vmul.f32 0.35355338, %v948_v26  ;;  %v2694_v28 = vpop.f32.mrb[9].mxu1 }
 0x26f   : > { %v951_v29 = vpop.f32.mrb[10].mxu1 }
 0x270   : > { %v2695_v30 = vpop.f32.mrb[11].mxu1  ;;  %v955_v31 = vsel %vm789_vm3, %v954_v27, -3.4028235e+38 }
 0x271   : > { %v956_v32 = vsel %vm793_vm2, %v955_v31, -inf }
 0x272   : > { %957 = vmax.xlane.f32.xlu0 %v956_v32 }
 0x2f7   : > { %v844_v33 = vpop.xlane.xlu1 %843 }
 0x2f8   : > { %v845_v34 = vsub.f32 %v841_v24, %v844_v33 }
 0x2fa   : > { %v846_v35 = vmul.f32 1.442695, %v845_v34 }
 0x2fc   : > { %2902 = vpow2.f32 %v846_v35 }
 0x2ff   : > { %v958_v36 = vpop.xlane.xlu0 %957 }
 0x300   : > { %v959_v37 = vsub.f32 %v955_v31, %v958_v36 }
 0x302   : > { %v960_v38 = vmul.f32 1.442695, %v959_v37 }
 0x304   : > { %2904 = vpow2.f32 %v960_v38 }
 0x306   : > { %v2903_v39 = vpop.eup %2902 }
 0x307   : > { %v848_v40 = vsel %vm793_vm2, %v2903_v39, 0.0 }
 0x308   : > { %849 = vadd.xlane.f32.xlu0 %v848_v40 }
 0x30e   : > { %v2905_v41 = vpop.eup %2904 }
 0x30f   : > { %v962_v42 = vsel %vm793_vm2, %v2905_v41, 0.0 }
 0x310   : > { %963 = vadd.xlane.f32.xlu1 %v962_v42 }
 0x31e   : > { %854 = vrot.lane.b32.xlu0 %v3185_v9, %s2986_s5  ;;  %s3544_s5 = smov 72  }
 0x321   : > { %968 = vrot.lane.b32.xlu1 %v3185_v9, %s2987_s24  ;;  %s3546_s24 = smov 104  }
 0x322   : > { %1109 = vrot.lane.b32.xlu0 %v3185_v9, %s2988_s6 }
 0x325   : > { %1111 = vrot.lane.b32.xlu1 %v3185_v9, %s3545_s25 }
 0x395   : > { %v850_v43 = vpop.xlane.xlu0 %849 }
 0x396   : > { %2906 = vrcp.f32 %v850_v43  ;;  %v783_v43 = vld [vmem:[%s3564_s28 + $0x8] sm:$0xf] }
 0x399   : > { %v855_v44 = vpop.permute.xlu0 %854 }
 0x39a   : > { %v861_v45 = vsel %vm859_vm4, %v855_v44, 0  ;;  %v1226_v44 = vsel %vm859_vm4, %v783_v43, 0  ;;  %v2567_v43 = vld [vmem:[%s3524_s7] ss:$0 sm:$0xff] }
 0x39b   : > { %2685 = vmatpush3.bf16.msra.mxu0 %v861_v45 }
 0x39c   : > { %2696 = vmatprep.subr.bf16.mxu0 %v2981_v0 }
 0x39d   : > { %v964_v46 = vpop.xlane.xlu1 %963  ;;  %v1110_v10 = vpop.permute.xlu0 %1109 }
 0x39e   : > { %2908 = vrcp.f32 %v964_v46 }
 0x3a0   : > { %v2907_v47 = vpop.eup %2906 }
 0x3a1   : > { %v852_v48 = vmul.f32 %v2907_v47, %v2903_v39  ;;  %v969_v49 = vpop.permute.xlu1 %968 }
 0x3a2   : > { %v974_v51 = vsel %vm859_vm4, %v969_v49, 0 }
 0x3a3   : > { %v853_v50 = vpack.c.bf16 %v852_v48, %v852_v48 }
 0x3a5   : > { %2687 = vmatmul.mubr.msk.bf16.vlgmr.msra.gmra.mrb[0].mxu0 %vm793_vm2, %v853_v50  ;;  %v1112_v1 = vpop.permute.xlu1 %1111 }
 0x3a6   : > { %2697 = vmatpush3.bf16.msra.mxu0 %v974_v51  ;;  %2698 = vmatprep.mubr.msk.bf16.mxu0 %vm2982_vm0, %v2981_v0  ;;  %v1117_v7 = vsel %vm793_vm2, %v1112_v1, 0 }
 0x3a7   : > { %2708 = vmatprep.subr.bf16.mxu0 %v2981_v0 }
 0x3a8   : > { %v2909_v52 = vpop.eup %2908 }
 0x3a9   : > { %v966_v53 = vmul.f32 %v2909_v52, %v2905_v41 }
 0x3ab   : > { %v967_v54 = vpack.c.bf16 %v966_v53, %v966_v53 }
 0x3ad   : > { %2699 = vmatmul.mubr.msk.bf16.vlgmr.msra.gmra.mrb[4].mxu0 %vm793_vm2, %v967_v54 }
 0x3ae   : > { %2710 = vmatprep.mubr.msk.bf16.mxu0 %vm2982_vm0, %v2981_v0  ;;  %2709 = vmatpush3.bf16.msra.mxu0 %v1067_v56 }
 0x3af   : > { %2720 = vmatprep.subr.bf16.mxu0 %v2981_v0 }
 0x478   : > { %v897_v59 = vpop.f32.mrb[0].mxu0 }
 0x479   : > { %v903_v60 = vpack.c.bf16 %v897_v59, %v897_v59  ;;  %v2688_v61 = vpop.f32.mrb[1].mxu0 }
 0x47a   : > { %v900_v62 = vpop.f32.mrb[2].mxu0 }
 0x47b   : > { %v2689_v63 = vpop.f32.mrb[3].mxu0  ;;  %2711 = vmatmul.mubr.msk.bf16.vlgmr.msra.gmra.mrb[8].mxu0 %vm793_vm2, %v903_v60 }
 0x47c   : > { %2722 = vmatprep.mubr.msk.bf16.mxu0 %vm2982_vm0, %v2981_v0 }
 0x480   : > { %v1010_v2 = vpop.f32.mrb[4].mxu0 }
 0x481   : > { %v1016_v4 = vpack.c.bf16 %v1010_v2, %v1010_v2  ;;  %v2700_v5 = vpop.f32.mrb[5].mxu0 }
 0x482   : > { %v1013_v6 = vpop.f32.mrb[6].mxu0 }
 0x483   : > { %v2701_v8 = vpop.f32.mrb[7].mxu0  ;;  %2705 = vmatmul.mubr.msk.bf16.vlgmr.msra.gmra.mrb[12].mxu1 %vm793_vm2, %v1016_v4 }
 0x484   : > { %2715 = vmatpush3.bf16.xpose.msra.mxu1 %v1117_v7  ;;  %2716 = vmatprep.mubr.msk.bf16.mxu1 %vm2982_vm0, %v2981_v0  ;;  %v784_v8 = vld [vmem:[%s3564_s28 + $0xc] sm:$0xf] }
 0x485   : > { %2726 = vmatprep.subr.bf16.mxu1 %v2981_v0 }
 0x48b   : > { %2717 = vmatmul.mubr.msk.bf16.vlgmr.msra.gmra.mrb[16].mxu1 %vm793_vm2, %v1110_v10  ;;  %v1386_v10 = vsel %vm859_vm4, %v784_v8, 0 }
 0x48c   : > { %2728 = vmatprep.mubr.msk.bf16.mxu1 %vm2982_vm0, %v2981_v0  ;;  %2727 = vmatpush3.bf16.msra.mxu1 %v1226_v44 }
 0x48d   : > { %2738 = vmatprep.subr.bf16.mxu1 %v2981_v0 }
 0x54e   : > { %v1103_v11 = vpop.f32.mrb[8].mxu0 }
 0x54f   : > { %v2712_v12 = vpop.f32.mrb[9].mxu0 }
 0x550   : > { %v1106_v13 = vpop.f32.mrb[10].mxu0 }
 0x551   : > { %v2713_v14 = vpop.f32.mrb[11].mxu0 }
 0x556   : > { %v1057_v15 = vpop.f32.mrb[12].mxu1 }
 0x557   : > { %v3257_v16 = vadd.f32 %v1103_v11, %v1057_v15  ;;  %v2706_v19 = vpop.f32.mrb[13].mxu1 }
 0x558   : > { %v1060_v20 = vpop.f32.mrb[14].mxu1 }
 0x559   : > { %v2707_v21 = vpop.f32.mrb[15].mxu1 }
 0x55e   : > { %v1153_v22 = vpop.f32.mrb[16].mxu1 }
 0x55f   : > { %v1159_v23 = vmul.f32 0.35355338, %v1153_v22  ;;  %v2718_v24 = vpop.f32.mrb[17].mxu1  ;;  %v711_v22 = vunpack.c.l.bf16 %v3175_v3  ;;  %v2893_v3 = vld [vmem:[%s3527_s10 + $0x8] sm:$0xff]  }
 0x560   : > { %v1156_v25 = vpop.f32.mrb[18].mxu1 }
 0x561   : > { %v2719_v26 = vpop.f32.mrb[19].mxu1  ;;  %v1160_v27 = vsel %vm789_vm3, %v1159_v23, -3.4028235e+38 }
 0x562   : > { %v1161_v28 = vsel %vm793_vm2, %v1160_v27, -inf }
 0x563   : > { %1162 = vmax.xlane.f32.xlu1 %v1161_v28 }
 0x574   : > { %1271 = vrot.lane.b32.xlu1 %v3185_v9, %s3544_s5  ;;  %s3567_s5 = sld [smem:[#allocation11_spill]] }
 0x578   : > { %1269 = vrot.lane.b32.xlu1 %v3185_v9, %s3546_s24  ;;  %s3566_s24 = sld [smem:[#allocation6_spill]] }
 0x57e   : > { %s704_s4 = scalar_lea.vmem %s3566_s24, %s3162_s29  ;;  %s3569_s24 = smov 104  }
 0x5f0   : > { %v1163_v29 = vpop.xlane.xlu1 %1162 }
 0x5f1   : > { %v1164_v30 = vsub.f32 %v1160_v27, %v1163_v29 }
 0x5f3   : > { %v1165_v31 = vmul.f32 1.442695, %v1164_v30 }
 0x5f4   : > { %v1272_v39 = vpop.permute.xlu1 %1271 }
 0x5f5   : > { %2910 = vpow2.f32 %v1165_v31  ;;  %v1277_v41 = vsel %vm793_vm2, %v1272_v39, 0 }
 0x5f8   : > { %v1270_v42 = vpop.permute.xlu1 %1269 }
 0x5ff   : > { %v2911_v32 = vpop.eup %2910 }
 0x600   : > { %v1167_v33 = vsel %vm793_vm2, %v2911_v32, 0.0 }
 0x601   : > { %1168 = vadd.xlane.f32.xlu0 %v1167_v33  ;;  %v2892_v33 = vld [vmem:[%s3527_s10] sm:$0xff]  }
 0x617   : > { %1173 = vrot.lane.b32.xlu0 %v3185_v9, %s2992_s26  ;;  %s3565_s26 = sld [smem:[#allocation10_spill]] }
 0x61d   : > { %v2565_v19 = vld [vmem:[%s3565_s26] ss:$0 sm:$0xff]  ;;  %s3571_s26 = smov 72  }
 0x68e   : > { %v1169_v34 = vpop.xlane.xlu0 %1168 }
 0x68f   : > { %2912 = vrcp.f32 %v1169_v34  ;;  %v712_v34 = vld [vmem:[%s704_s4] sm:$0xf] }
 0x692   : > { %v1174_v35 = vpop.permute.xlu0 %1173 }
 0x693   : > { %v1179_v36 = vsel %vm859_vm4, %v1174_v35, 0  ;;  %v2894_v35 = vld [vmem:[%s3525_s8] sm:$0xff]  }
 0x694   : > { %2721 = vmatpush3.bf16.msra.mxu0 %v1179_v36  ;;  %v2895_v36 = vld [vmem:[%s3525_s8 + $0x8] sm:$0xff]  }
 0x695   : > { %2732 = vmatprep.subr.bf16.mxu0 %v2981_v0 }
 0x699   : > { %v2913_v37 = vpop.eup %2912 }
 0x69a   : > { %v1171_v38 = vmul.f32 %v2913_v37, %v2911_v32 }
 0x69c   : > { %v1172_v40 = vpack.c.bf16 %v1171_v38, %v1171_v38 }
 0x69e   : > { %2723 = vmatmul.mubr.msk.bf16.vlgmr.msra.gmra.mrb[12].mxu0 %vm793_vm2, %v1172_v40 }
 0x69f   : > { %2733 = vmatpush3.bf16.xpose.msra.mxu0 %v1277_v41  ;;  %2734 = vmatprep.mubr.msk.bf16.mxu0 %vm2982_vm0, %v2981_v0  ;;  %v2566_v41 = vld [vmem:[%s3567_s5] ss:$0 sm:$0xff] }
 0x6a0   : > { %2744 = vmatprep.subr.bf16.mxu0 %v2981_v0 }
 0x6a6   : > { %2735 = vmatmul.mubr.msk.bf16.vlgmr.msra.gmra.mrb[16].mxu0 %vm793_vm2, %v1270_v42 }
 0x6a7   : > { %2746 = vmatprep.mubr.msk.bf16.mxu0 %vm2982_vm0, %v2981_v0  ;;  %2745 = vmatpush3.bf16.msra.mxu0 %v1386_v10 }
 0x6a8   : > { %2758 = vmatprep.subr.bf16.mxu0 %v2981_v0 }
 0x771   : > { %v1215_v45 = vpop.f32.mrb[12].mxu0 }
 0x772   : > { %v1221_v46 = vpack.c.bf16 %v1215_v45, %v1215_v45  ;;  %v2724_v47 = vpop.f32.mrb[13].mxu0 }
 0x773   : > { %v1218_v48 = vpop.f32.mrb[14].mxu0  ;;  %v2572_v47 = vld [vmem:[%s3528_s11] ss:$0 sm:$0xff] }
 0x774   : > { %v2725_v49 = vpop.f32.mrb[15].mxu0  ;;  %2729 = vmatmul.mubr.msk.bf16.vlgmr.msra.gmra.mrb[20].mxu1 %vm793_vm2, %v1221_v46 }
 0x775   : > { %2740 = vmatprep.mubr.msk.bf16.mxu1 %vm2982_vm0, %v2981_v0 }
 0x779   : > { %v1313_v50 = vpop.f32.mrb[16].mxu0 }
 0x77a   : > { %v1319_v51 = vmul.f32 0.35355338, %v1313_v50  ;;  %v2736_v52 = vpop.f32.mrb[17].mxu0 }
 0x77b   : > { %v1316_v53 = vpop.f32.mrb[18].mxu0 }
 0x77c   : > { %v2737_v54 = vpop.f32.mrb[19].mxu0  ;;  %v1320_v55 = vsel %vm789_vm3, %v1319_v51, -3.4028235e+38 }
 0x77d   : > { %v1321_v56 = vsel %vm793_vm2, %v1320_v55, -inf }
 0x77e   : > { %1322 = vmax.xlane.f32.xlu0 %v1321_v56 }
 0x794   : > { %1333 = vrot.lane.b32.xlu0 %v3185_v9, %s2993_s30 }
 0x80b   : > { %v1323_v57 = vpop.xlane.xlu0 %1322 }
 0x80c   : > { %v1324_v58 = vsub.f32 %v1320_v55, %v1323_v57  ;;  %v2568_v55 = vld [vmem:[%s3526_s9] ss:$0 sm:$0xff] }
 0x80e   : > { %v1325_v59 = vmul.f32 1.442695, %v1324_v58 }
 0x80f   : > { %v1334_v60 = vpop.permute.xlu0 %1333 }
 0x810   : > { %2914 = vpow2.f32 %v1325_v59  ;;  %v1339_v61 = vsel %vm859_vm4, %v1334_v60, 0 }
 0x811   : > { %2739 = vmatpush3.bf16.msra.mxu1 %v1339_v61 }
 0x812   : > { %2750 = vmatprep.subr.bf16.mxu1 %v2981_v0 }
 0x81a   : > { %v2915_v62 = vpop.eup %2914 }
 0x81b   : > { %v1327_v17 = vsel %vm793_vm2, %v2915_v62, 0.0 }
 0x81c   : > { %1328 = vadd.xlane.f32.xlu1 %v1327_v17 }
 0x847   : > { %v1262_v18 = vpop.f32.mrb[20].mxu1 }
 0x848   : > { %v1268_v63 = vadd.f32 %v1262_v18, %v3257_v16  ;;  %v2730_v1 = vpop.f32.mrb[21].mxu1 }
 0x849   : > { %v1265_v2 = vpop.f32.mrb[22].mxu1 }
 0x84a   : > { %v2731_v9 = vpop.f32.mrb[23].mxu1 }
 0x8a9   : > { %v1329_v4 = vpop.xlane.xlu1 %1328 }
 0x8aa   : > { %2916 = vrcp.f32 %v1329_v4 }
 0x8b4   : > { %v2917_v5 = vpop.eup %2916 }
 0x8b5   : > { %v1331_v6 = vmul.f32 %v2917_v5, %v2915_v62 }
 0x8b7   : > { %v1332_v7 = vpack.c.bf16 %v1331_v6, %v1331_v6 }
 0x8b9   : > { %2741 = vmatmul.mubr.msk.bf16.vlgmr.msra.gmra.mrb[24].mxu1 %vm793_vm2, %v1332_v7 }
 0x8ba   : > { %2754 = vmatprep.mubr.msk.bf16.mxu1 %vm2982_vm0, %v2981_v0  ;;  %2751 = vmatpush3.bf16.msra.mxu1 %v2894_v35 }
 0x8bb   : > { %2752 = vmatprep.subr.bf16.mxu1 %v2981_v0 }
 0x8be   : > { %2753 = vmatpush3.bf16.msra.mxu1 %v2895_v36  ;;  %v1603_v36 = vld [vmem:[%s3529_s12] sm:$0xf] }
 0x8bf   : > { %2766 = vmatprep.subr.bf16.mxu1 %v2981_v0 }
 0x98c   : > { %v1375_v11 = vpop.f32.mrb[24].mxu1 }
 0x98d   : > { %v1381_v12 = vpack.c.bf16 %v1375_v11, %v1375_v11  ;;  %v2742_v13 = vpop.f32.mrb[25].mxu1 }
 0x98e   : > { %v1378_v14 = vpop.f32.mrb[26].mxu1 }
 0x98f   : > { %v2743_v15 = vpop.f32.mrb[27].mxu1  ;;  %2747 = vmatmul.mubr.msk.bf16.vlgmr.msra.gmra.mrb[20].mxu0 %vm793_vm2, %v1381_v12 }
 0x990   : > { %2762 = vmatprep.mubr.msk.bf16.mxu0 %vm2982_vm0, %v2981_v0  ;;  %2759 = vmatpush3.bf16.msra.mxu0 %v2892_v33 }
 0x991   : > { %2760 = vmatprep.subr.bf16.mxu0 %v2981_v0 }
 0x994   : > { %2761 = vmatpush3.bf16.msra.mxu0 %v2893_v3 }
 0x995   : > { %2772 = vmatprep.subr.bf16.mxu0 %v2981_v0 }
 0x997   : > { %2763 = vmatmul.mubr.msk.bf16.vlgmr.msra.gmra.mrb[24].mxu0 %vm736_vm1, %v712_v34 }
 0x998   : > { %2774 = vmatprep.mubr.msk.bf16.mxu0 %vm2982_vm0, %v2981_v0 }
 0xa62   : > { %v1422_v16 = vpop.f32.mrb[20].mxu0 }
 0xa63   : > { %v1428_v20 = vadd.f32 %v1422_v16, %v1268_v63  ;;  %v2748_v21 = vpop.f32.mrb[21].mxu0 }
 0xa64   : > { %v1425_v23 = vpop.f32.mrb[22].mxu0 }
 0xa65   : > { %v1436_v24 = vadd.f32 %v2565_v19, %v1428_v20  ;;  %v2749_v25 = vpop.f32.mrb[23].mxu0 }
 0xa67   : > { %v1437_v26 = vadd.f32 %v1436_v24, %v711_v22 }
 0xa69   : > { %v1440_v27 = vsel %vm736_vm1, %v1437_v26, 0.0 }
 0xa6a   : > { %1441 = vadd.xlane.f32.xlu1 %v1440_v27  ;;  %v1596_v48 = vpop.f32.mrb[24].mxu0 }
 0xa6b   : > { %v1597_v49 = vadd.f32 %v2572_v47, %v1596_v48  ;;  %v2764_v50 = vpop.f32.mrb[25].mxu0 }
 0xa6c   : > { %v1599_v51 = vpop.f32.mrb[26].mxu0 }
 0xa6d   : > { %v3352_v52 = vpack.c.bf16 %v1597_v49, %v1597_v49  ;;  %v2765_v53 = vpop.f32.mrb[27].mxu0 }
 0xa6f   : > { %v1611_v54 = vsel %vm793_vm2, %v3352_v52, 0 }
 0xaf7   : > { %v1442_v28 = vpop.xlane.xlu1 %1441 }
 0xaf8   : > { %v1444_v29 = vmul.f32 0.03125, %v1442_v28 }
 0xafa   : > { %v1445_v30 = vsub.f32 %v1437_v26, %v1444_v29 }
 0xafc   : > { %v1446_v31 = vmul.f32 %v1445_v30, %v1445_v30 }
 0xafe   : > { %v1447_v32 = vsel %vm736_vm1, %v1446_v31, 0.0 }
 0xaff   : > { %1448 = vadd.xlane.f32.xlu1 %v1447_v32 }
 0xb10   : > { %1719 = vrot.lane.b32.xlu1 %v3352_v52, %s2983_s23 }
 0xb8c   : > { %v1449_v37 = vpop.xlane.xlu1 %1448 }
 0xb8d   : > { %v1450_v38 = vmul.f32 0.03125, %v1449_v37  ;;  %v1879_v37 = vsel %vm859_vm4, %v1603_v36, 0 }
 0xb8f   : > { %v1451_v39 = vadd.f32 1e-05, %v1450_v38  ;;  %v1604_v38 = vld [vmem:[%s3529_s12 + $0x4] sm:$0xf] }
 0xb90   : > { %v1720_v57 = vpop.permute.xlu1 %1719 }
 0xb91   : > { %2918 = vrsqrt.f32 %v1451_v39  ;;  %v1725_v17 = vsel %vm793_vm2, %v1720_v57, 0  ;;  %v1833_v39 = vsel %vm859_vm4, %v1604_v38, 0 }
 0xb9b   : > { %v2919_v40 = vpop.eup %2918 }
 0xb9c   : > { %v1453_v42 = vmul.f32 %v2919_v40, %v1445_v30 }
 0xb9e   : > { %v1460_v44 = vmul.f32 %v2566_v41, %v1453_v42 }
 0xba0   : > { %v3342_v45 = vadd.f32 %v2567_v43, %v1460_v44 }
 0xba2   : > { %v1468_v46 = vpack.c.bf16 %v3342_v45, %v3342_v45 }
 0xba4   : > { %2755 = vmatmul.mubr.msk.bf16.vlgmr.msra.gmra.mrb[28].mxu1 %vm736_vm1, %v1468_v46 }
 0xba5   : > { %2768 = vmatprep.mubr.msk.bf16.mxu1 %vm2982_vm0, %v2981_v0  ;;  %2767 = vmatpush3.bf16.xpose.msra.mxu1 %v1611_v54 }
 0xba6   : > { %2778 = vmatprep.subr.bf16.mxu1 %v2981_v0 }
 0xc77   : > { %v1529_v56 = vpop.f32.mrb[28].mxu1 }
 0xc78   : > { %v1530_v58 = vadd.f32 %v2568_v55, %v1529_v56  ;;  %v2756_v59 = vpop.f32.mrb[29].mxu1 }
 0xc79   : > { %v1532_v60 = vpop.f32.mrb[30].mxu1 }
 0xc7a   : > { %v3362_v61 = vpack.c.bf16 %v1530_v58, %v1530_v58  ;;  %v2757_v62 = vpop.f32.mrb[31].mxu1 }
 0xc7c   : > { %1717 = vrot.lane.b32.xlu0 %v3362_v61, %s2983_s23  ;;  %2769 = vmatmul.mubr.msk.bf16.vlgmr.msra.gmra.mrb[32].mxu1 %vm793_vm2, %v3362_v61  ;;  %s3568_s23 = smov 96  }
 0xc7d   : > { %2779 = vmatpush3.bf16.xpose.msra.mxu1 %v1725_v17  ;;  %2780 = vmatprep.mubr.msk.bf16.mxu1 %vm2982_vm0, %v2981_v0 }
 0xc7e   : > { %2790 = vmatprep.subr.bf16.mxu1 %v2981_v0 }
 0xcee   : > { %v1718_v18 = vpop.permute.xlu0 %1717 }
 0xcef   : > { %2781 = vmatmul.mubr.msk.bf16.vlgmr.msra.gmra.mrb[36].mxu1 %vm793_vm2, %v1718_v18 }
 0xcf0   : > { %2792 = vmatprep.mubr.msk.bf16.mxu1 %vm2982_vm0, %v2981_v0  ;;  %2791 = vmatpush3.bf16.msra.mxu1 %v1833_v39 }
 0xcf1   : > { %2802 = vmatprep.subr.bf16.mxu1 %v2981_v0 }
 0xd4f   : > { %v1647_v63 = vpop.f32.mrb[32].mxu1 }
 0xd50   : > { %v1653_v1 = vmul.f32 0.35355338, %v1647_v63  ;;  %v2770_v2 = vpop.f32.mrb[33].mxu1 }
 0xd51   : > { %v1650_v9 = vpop.f32.mrb[34].mxu1 }
 0xd52   : > { %v2771_v4 = vpop.f32.mrb[35].mxu1  ;;  %v1654_v5 = vsel %vm793_vm2, %v1653_v1, -inf }
 0xd53   : > { %1655 = vmax.xlane.f32.xlu0 %v1654_v5 }
 0xdc2   : > { %v1761_v6 = vpop.f32.mrb[36].mxu1 }
 0xdc3   : > { %v1767_v7 = vmul.f32 0.35355338, %v1761_v6  ;;  %v2782_v8 = vpop.f32.mrb[37].mxu1 }
 0xdc4   : > { %v1764_v10 = vpop.f32.mrb[38].mxu1 }
 0xdc5   : > { %v2783_v11 = vpop.f32.mrb[39].mxu1  ;;  %v1768_v12 = vsel %vm793_vm2, %v1767_v7, -inf }
 0xdc6   : > { %1769 = vmax.xlane.f32.xlu1 %v1768_v12 }
 0xdd7   : > { %1780 = vrot.lane.b32.xlu1 %v3352_v52, %s2985_s0 }
 0xddb   : > { %1923 = vrot.lane.b32.xlu1 %v3352_v52, %s2988_s6 }
 0xde0   : > { %v1656_v13 = vpop.xlane.xlu0 %1655 }
 0xde1   : > { %v1657_v14 = vsub.f32 %v1653_v1, %v1656_v13 }
 0xde3   : > { %v1658_v15 = vmul.f32 1.442695, %v1657_v14 }
 0xde5   : > { %2920 = vpow2.f32 %v1658_v15 }
 0xdef   : > { %v2921_v16 = vpop.eup %2920 }
 0xdf0   : > { %v1660_v19 = vsel %vm793_vm2, %v2921_v16, 0.0 }
 0xdf1   : > { %1661 = vadd.xlane.f32.xlu0 %v1660_v19 }
 0xe53   : > { %v1770_v20 = vpop.xlane.xlu1 %1769 }
 0xe54   : > { %v1771_v21 = vsub.f32 %v1767_v7, %v1770_v20 }
 0xe56   : > { %v1772_v22 = vmul.f32 1.442695, %v1771_v21 }
 0xe57   : > { %v1781_v31 = vpop.permute.xlu1 %1780 }
 0xe58   : > { %2922 = vpow2.f32 %v1772_v22  ;;  %v1786_v33 = vsel %vm859_vm4, %v1781_v31, 0  ;;  %v1605_v22 = vld [vmem:[%s3529_s12 + $0x8] sm:$0xf] }
 0xe5b   : > { %v1924_v46 = vpop.permute.xlu1 %1923 }
 0xe5c   : > { %v1929_v51 = vsel %vm793_vm2, %v1924_v46, 0 }
 0xe62   : > { %v2923_v23 = vpop.eup %2922 }
 0xe63   : > { %v1774_v24 = vsel %vm793_vm2, %v2923_v23, 0.0 }
 0xe64   : > { %1775 = vadd.xlane.f32.xlu0 %v1774_v24 }
 0xe7a   : > { %1667 = vrot.lane.b32.xlu0 %v3352_v52, %s3568_s23 }
 0xe7e   : > { %1921 = vrot.lane.b32.xlu0 %v3362_v61, %s2988_s6  ;;  %v1662_v25 = vpop.xlane.xlu0 %1661 }
 0xe7f   : > { %2924 = vrcp.f32 %v1662_v25 }
 0xe89   : > { %v2925_v26 = vpop.eup %2924 }
 0xe8a   : > { %v1664_v28 = vmul.f32 %v2925_v26, %v2921_v16 }
 0xe8c   : > { %v1665_v32 = vpack.c.bf16 %v1664_v28, %v1664_v28 }
 0xef1   : > { %v1776_v27 = vpop.xlane.xlu0 %1775 }
 0xef2   : > { %2926 = vrcp.f32 %v1776_v27 }
 0xef5   : > { %v1668_v29 = vpop.permute.xlu0 %1667 }
 0xef6   : > { %v1673_v30 = vsel %vm859_vm4, %v1668_v29, 0 }
 0xef7   : > { %2773 = vmatpush3.bf16.msra.mxu0 %v1673_v30 }
 0xef8   : > { %2784 = vmatprep.subr.bf16.mxu0 %v2981_v0 }
 0xef9   : > { %v1922_v54 = vpop.permute.xlu0 %1921 }
 0xefa   : > { %2775 = vmatmul.mubr.msk.bf16.vlgmr.msra.gmra.mrb[28].mxu0 %vm793_vm2, %v1665_v32 }
 0xefb   : > { %2785 = vmatpush3.bf16.msra.mxu0 %v1786_v33  ;;  %2786 = vmatprep.mubr.msk.bf16.mxu0 %vm2982_vm0, %v2981_v0 }
 0xefc   : > { %v2927_v3 = vpop.eup %2926  ;;  %2796 = vmatprep.subr.bf16.mxu0 %v2981_v0 }
 0xefd   : > { %v1778_v34 = vmul.f32 %v2927_v3, %v2923_v23  ;;  %v2037_v23 = vsel %vm859_vm4, %v1605_v22, 0 }
 0xeff   : > { %v1779_v35 = vpack.c.bf16 %v1778_v34, %v1778_v34 }
 0xf02   : > { %2787 = vmatmul.mubr.msk.bf16.vlgmr.msra.gmra.mrb[32].mxu0 %vm793_vm2, %v1779_v35 }
 0xf03   : > { %2798 = vmatprep.mubr.msk.bf16.mxu0 %vm2982_vm0, %v2981_v0  ;;  %2797 = vmatpush3.bf16.msra.mxu0 %v1879_v37 }
 0xf04   : > { %2808 = vmatprep.subr.bf16.mxu0 %v2981_v0 }
 0xfcd   : > { %v1709_v40 = vpop.f32.mrb[28].mxu0 }
 0xfce   : > { %v1715_v41 = vpack.c.bf16 %v1709_v40, %v1709_v40  ;;  %v2776_v42 = vpop.f32.mrb[29].mxu0 }
 0xfcf   : > { %v1712_v43 = vpop.f32.mrb[30].mxu0 }
 0xfd0   : > { %v2777_v44 = vpop.f32.mrb[31].mxu0  ;;  %2799 = vmatmul.mubr.msk.bf16.vlgmr.msra.gmra.mrb[36].mxu0 %vm793_vm2, %v1715_v41 }
 0xfd1   : > { %2810 = vmatprep.mubr.msk.bf16.mxu0 %vm2982_vm0, %v2981_v0 }
 0xfd5   : > { %v1822_v47 = vpop.f32.mrb[32].mxu0 }
 0xfd6   : > { %v1828_v48 = vpack.c.bf16 %v1822_v47, %v1822_v47  ;;  %v2788_v49 = vpop.f32.mrb[33].mxu0 }
 0xfd7   : > { %v1825_v50 = vpop.f32.mrb[34].mxu0 }
 0xfd8   : > { %v2789_v53 = vpop.f32.mrb[35].mxu0  ;;  %2793 = vmatmul.mubr.msk.bf16.vlgmr.msra.gmra.mrb[40].mxu1 %vm793_vm2, %v1828_v48  ;;  %v1606_v50 = vld [vmem:[%s3529_s12 + $0xc] sm:$0xf] }
 0xfd9   : > { %2803 = vmatpush3.bf16.xpose.msra.mxu1 %v1929_v51  ;;  %2804 = vmatprep.mubr.msk.bf16.mxu1 %vm2982_vm0, %v2981_v0  ;;  %v2196_v51 = vsel %vm859_vm4, %v1606_v50, 0  ;;  %v2602_v50 = vld [vmem:[#allocation2] ss:$0 sm:$0xff] }
 0xfda   : > { %2814 = vmatprep.subr.bf16.mxu1 %v2981_v0 }
 0xfe0   : > { %2805 = vmatmul.mubr.msk.bf16.vlgmr.msra.gmra.mrb[44].mxu1 %vm793_vm2, %v1922_v54 }
 0xfe1   : > { %2816 = vmatprep.mubr.msk.bf16.mxu1 %vm2982_vm0, %v2981_v0  ;;  %2815 = vmatpush3.bf16.msra.mxu1 %v2037_v23  ;;  %v2900_v23 = vld [vmem:[%s3535_s18 + $0x10] sm:$0xff]  }
 0xfe2   : > { %2826 = vmatprep.subr.bf16.mxu1 %v2981_v0 }
0x10a3   : > { %v1915_v55 = vpop.f32.mrb[36].mxu0 }
0x10a4   : > { %v2800_v56 = vpop.f32.mrb[37].mxu0 }
0x10a5   : > { %v1918_v57 = vpop.f32.mrb[38].mxu0 }
0x10a6   : > { %v2801_v58 = vpop.f32.mrb[39].mxu0 }
0x10ab   : > { %v1869_v59 = vpop.f32.mrb[40].mxu1 }
0x10ac   : > { %v3418_v60 = vadd.f32 %v1915_v55, %v1869_v59  ;;  %v2794_v62 = vpop.f32.mrb[41].mxu1  ;;  %v2588_v59 = vld [vmem:[%s3530_s13] ss:$0 sm:$0xff] }
0x10ad   : > { %v1872_v17 = vpop.f32.mrb[42].mxu1 }
0x10ae   : > { %v2795_v18 = vpop.f32.mrb[43].mxu1 }
0x10b3   : > { %v1965_v63 = vpop.f32.mrb[44].mxu1 }
0x10b4   : > { %v1971_v1 = vmul.f32 0.35355338, %v1965_v63  ;;  %v2806_v2 = vpop.f32.mrb[45].mxu1 }
0x10b5   : > { %v1968_v9 = vpop.f32.mrb[46].mxu1 }
0x10b6   : > { %v2807_v4 = vpop.f32.mrb[47].mxu1  ;;  %v1972_v5 = vsel %vm793_vm2, %v1971_v1, -inf }
0x10b7   : > { %1973 = vmax.xlane.f32.xlu1 %v1972_v5 }
0x10c8   : > { %2082 = vrot.lane.b32.xlu1 %v3352_v52, %s3569_s24 }
0x10cc   : > { %2080 = vrot.lane.b32.xlu1 %v3362_v61, %s3569_s24  ;;  %s708_s24 = scalar_lea.vmem %s3539_s22, %s3162_s29 }
0x1144   : > { %v1974_v6 = vpop.xlane.xlu1 %1973 }
0x1145   : > { %v1975_v7 = vsub.f32 %v1971_v1, %v1974_v6 }
0x1147   : > { %v1976_v8 = vmul.f32 1.442695, %v1975_v7 }
0x1148   : > { %v2083_v16 = vpop.permute.xlu1 %2082 }
0x1149   : > { %2928 = vpow2.f32 %v1976_v8  ;;  %v2088_v20 = vsel %vm793_vm2, %v2083_v16, 0  ;;  %v2896_v8 = vld [vmem:[%s3533_s16] sm:$0xff]  }
0x114c   : > { %v2081_v21 = vpop.permute.xlu1 %2080 }
0x1153   : > { %v2929_v10 = vpop.eup %2928 }
0x1154   : > { %v1978_v11 = vsel %vm793_vm2, %v2929_v10, 0.0 }
0x1155   : > { %1979 = vadd.xlane.f32.xlu0 %v1978_v11  ;;  %v2899_v11 = vld [vmem:[%s3535_s18 + $0x8] sm:$0xff]  }
0x116b   : > { %1984 = vrot.lane.b32.xlu0 %v3352_v52, %s3570_s2 }
0x11e2   : > { %v1980_v12 = vpop.xlane.xlu0 %1979 }
0x11e3   : > { %2930 = vrcp.f32 %v1980_v12 }
0x11e6   : > { %v1985_v13 = vpop.permute.xlu0 %1984 }
0x11e7   : > { %v1990_v14 = vsel %vm859_vm4, %v1985_v13, 0 }
0x11e8   : > { %2809 = vmatpush3.bf16.msra.mxu0 %v1990_v14 }
0x11e9   : > { %2820 = vmatprep.subr.bf16.mxu0 %v2981_v0 }
0x11ed   : > { %v2931_v61 = vpop.eup %2930 }
0x11ee   : > { %v1982_v15 = vmul.f32 %v2931_v61, %v2929_v10  ;;  %v2897_v10 = vld [vmem:[%s3533_s16 + $0x8] sm:$0xff]  }
0x11f0   : > { %v1983_v19 = vpack.c.bf16 %v1982_v15, %v1982_v15  ;;  %v2589_v15 = vld [vmem:[%s3531_s14] ss:$0 sm:$0xff] }
0x11f2   : > { %2811 = vmatmul.mubr.msk.bf16.vlgmr.msra.gmra.mrb[40].mxu0 %vm793_vm2, %v1983_v19  ;;  %v2590_v19 = vld [vmem:[%s3532_s15] ss:$0 sm:$0xff] }
0x11f3   : > { %2821 = vmatpush3.bf16.xpose.msra.mxu0 %v2088_v20  ;;  %2822 = vmatprep.mubr.msk.bf16.mxu0 %vm2982_vm0, %v2981_v0 }
0x11f4   : > { %2832 = vmatprep.subr.bf16.mxu0 %v2981_v0 }
0x11fa   : > { %2823 = vmatmul.mubr.msk.bf16.vlgmr.msra.gmra.mrb[44].mxu0 %vm793_vm2, %v2081_v21 }
0x11fb   : > { %2834 = vmatprep.mubr.msk.bf16.mxu0 %vm2982_vm0, %v2981_v0  ;;  %2833 = vmatpush3.bf16.msra.mxu0 %v2196_v51 }
0x11fc   : > { %2846 = vmatprep.subr.bf16.mxu0 %v2981_v0 }
0x12c5   : > { %v2026_v24 = vpop.f32.mrb[40].mxu0 }
0x12c6   : > { %v2032_v25 = vpack.c.bf16 %v2026_v24, %v2026_v24  ;;  %v2812_v26 = vpop.f32.mrb[41].mxu0  ;;  %v2901_v24 = vld [vmem:[%s3535_s18 + $0x18] sm:$0xff]  }
0x12c7   : > { %v2029_v27 = vpop.f32.mrb[42].mxu0 }
0x12c8   : > { %v2813_v28 = vpop.f32.mrb[43].mxu0  ;;  %2817 = vmatmul.mubr.msk.bf16.vlgmr.msra.gmra.mrb[48].mxu1 %vm793_vm2, %v2032_v25  ;;  %v2591_v25 = vld [vmem:[%s3534_s17] ss:$0 sm:$0xff] }
0x12c9   : > { %2828 = vmatprep.mubr.msk.bf16.mxu1 %vm2982_vm0, %v2981_v0 }
0x12cd   : > { %v2124_v29 = vpop.f32.mrb[44].mxu0 }
0x12ce   : > { %v2130_v30 = vmul.f32 0.35355338, %v2124_v29  ;;  %v2824_v31 = vpop.f32.mrb[45].mxu0 }
0x12cf   : > { %v2127_v32 = vpop.f32.mrb[46].mxu0 }
0x12d0   : > { %v2825_v33 = vpop.f32.mrb[47].mxu0  ;;  %v2131_v3 = vsel %vm793_vm2, %v2130_v30, -inf }
0x12d1   : > { %2132 = vmax.xlane.f32.xlu0 %v2131_v3 }
0x12e7   : > { %2143 = vrot.lane.b32.xlu0 %v3352_v52, %s3571_s26 }
0x135e   : > { %v2133_v34 = vpop.xlane.xlu0 %2132 }
0x135f   : > { %v2134_v35 = vsub.f32 %v2130_v30, %v2133_v34 }
0x1361   : > { %v2135_v36 = vmul.f32 1.442695, %v2134_v35 }
0x1362   : > { %v2144_v37 = vpop.permute.xlu0 %2143 }
0x1363   : > { %2932 = vpow2.f32 %v2135_v36  ;;  %v2149_v38 = vsel %vm859_vm4, %v2144_v37, 0 }
0x1364   : > { %2827 = vmatpush3.bf16.msra.mxu1 %v2149_v38 }
0x1365   : > { %2838 = vmatprep.subr.bf16.mxu1 %v2981_v0 }
0x136d   : > { %v2933_v39 = vpop.eup %2932 }
0x136e   : > { %v2137_v40 = vsel %vm793_vm2, %v2933_v39, 0.0 }
0x136f   : > { %2138 = vadd.xlane.f32.xlu1 %v2137_v40 }
0x139b   : > { %v2073_v41 = vpop.f32.mrb[48].mxu1 }
0x139c   : > { %v2079_v42 = vadd.f32 %v2073_v41, %v3418_v60  ;;  %v2818_v43 = vpop.f32.mrb[49].mxu1 }
0x139d   : > { %v2076_v44 = vpop.f32.mrb[50].mxu1 }
0x139e   : > { %v2819_v52 = vpop.f32.mrb[51].mxu1 }
0x13fc   : > { %v2139_v46 = vpop.xlane.xlu1 %2138 }
0x13fd   : > { %2934 = vrcp.f32 %v2139_v46 }
0x1407   : > { %v2935_v47 = vpop.eup %2934 }
0x1408   : > { %v2141_v48 = vmul.f32 %v2935_v47, %v2933_v39 }
0x140a   : > { %v2142_v49 = vpack.c.bf16 %v2141_v48, %v2141_v48  ;;  %v2601_v48 = vld [vmem:[%s3537_s20] ss:$0 sm:$0xff] }
0x140c   : > { %2829 = vmatmul.mubr.msk.bf16.vlgmr.msra.gmra.mrb[52].mxu1 %vm793_vm2, %v2142_v49 }
0x140d   : > { %2842 = vmatprep.mubr.msk.bf16.mxu1 %vm2982_vm0, %v2981_v0  ;;  %2839 = vmatpush3.bf16.msra.mxu1 %v2896_v8 }
0x140e   : > { %2840 = vmatprep.subr.bf16.mxu1 %v2981_v0 }
0x1411   : > { %2841 = vmatpush3.bf16.msra.mxu1 %v2897_v10 }
0x14df   : > { %v2185_v53 = vpop.f32.mrb[52].mxu1 }
0x14e0   : > { %v2191_v54 = vpack.c.bf16 %v2185_v53, %v2185_v53  ;;  %v2830_v55 = vpop.f32.mrb[53].mxu1 }
0x14e1   : > { %v2188_v56 = vpop.f32.mrb[54].mxu1 }
0x14e2   : > { %v2831_v57 = vpop.f32.mrb[55].mxu1  ;;  %2835 = vmatmul.mubr.msk.bf16.vlgmr.msra.gmra.mrb[48].mxu0 %vm793_vm2, %v2191_v54 }
0x14e3   : > { %2854 = vmatprep.mubr.msk.bf16.mxu0 %vm2982_vm0, %v2981_v0 }
0x15b5   : > { %v2232_v58 = vpop.f32.mrb[48].mxu0 }
0x15b6   : > { %v2238_v60 = vadd.f32 %v2232_v58, %v2079_v42  ;;  %v2836_v62 = vpop.f32.mrb[49].mxu0 }
0x15b7   : > { %v2235_v17 = vpop.f32.mrb[50].mxu0 }
0x15b8   : > { %v2246_v18 = vadd.f32 %v2588_v59, %v2238_v60  ;;  %v2837_v63 = vpop.f32.mrb[51].mxu0 }
0x15ba   : > { %v2247_v1 = vadd.f32 %v2246_v18, %v3342_v45  ;;  %v2898_v45 = vld [vmem:[%s3535_s18] sm:$0xff]  }
0x15bb   : > { %2847 = vmatpush3.bf16.msra.mxu0 %v2898_v45 }
0x15bc   : > { %v2250_v2 = vsel %vm736_vm1, %v2247_v1, 0.0  ;;  %2848 = vmatprep.subr.bf16.mxu0 %v2981_v0 }
0x15bd   : > { %2251 = vadd.xlane.f32.xlu1 %v2250_v2 }
0x15bf   : > { %2849 = vmatpush3.bf16.msra.mxu0 %v2899_v11 }
0x15c0   : > { %2850 = vmatprep.subr.bf16.mxu0 %v2981_v0 }
0x15c3   : > { %2851 = vmatpush3.bf16.msra.mxu0 %v2900_v23 }
0x15c4   : > { %2852 = vmatprep.subr.bf16.mxu0 %v2981_v0  ;;  %v2595_v0 = vld [vmem:[%s3536_s19] ss:$0 sm:$0xff] }
0x15c7   : > { %2853 = vmatpush3.bf16.msra.mxu0 %v2901_v24 }
0x164a   : > { %v2252_v9 = vpop.xlane.xlu1 %2251 }
0x164b   : > { %v2253_v4 = vmul.f32 0.03125, %v2252_v9 }
0x164d   : > { %v2254_v5 = vsub.f32 %v2247_v1, %v2253_v4 }
0x164f   : > { %v2255_v6 = vmul.f32 %v2254_v5, %v2254_v5 }
0x1651   : > { %v2256_v7 = vsel %vm736_vm1, %v2255_v6, 0.0 }
0x1652   : > { %2257 = vadd.xlane.f32.xlu1 %v2256_v7 }
0x16df   : > { %v2258_v12 = vpop.xlane.xlu1 %2257 }
0x16e0   : > { %v2259_v13 = vmul.f32 0.03125, %v2258_v12 }
0x16e2   : > { %v2260_v14 = vadd.f32 1e-05, %v2259_v13 }
0x16e4   : > { %2936 = vrsqrt.f32 %v2260_v14 }
0x16ee   : > { %v2937_v61 = vpop.eup %2936 }
0x16ef   : > { %v2262_v16 = vmul.f32 %v2937_v61, %v2254_v5 }
0x16f1   : > { %v2269_v20 = vmul.f32 %v2589_v15, %v2262_v16 }
0x16f3   : > { %v2276_v21 = vadd.f32 %v2590_v19, %v2269_v20 }
0x16f5   : > { %v2277_v22 = vpack.c.bf16 %v2276_v21, %v2276_v21 }
0x16f7   : > { %2843 = vmatmul.mubr.msk.bf16.vlgmr.msra.gmra.mrb[56].mxu1 %vm736_vm1, %v2277_v22 }
0x17ca   : > { %v2338_v26 = vpop.f32.mrb[56].mxu1 }
0x17cb   : > { %v2339_v27 = vadd.f32 %v2591_v25, %v2338_v26  ;;  %v2844_v28 = vpop.f32.mrb[57].mxu1 }
0x17cc   : > { %v2341_v29 = vpop.f32.mrb[58].mxu1 }
0x17cd   : > { %v2344_v30 = vmax.f32 %v2339_v27, 0.0  ;;  %v2845_v31 = vpop.f32.mrb[59].mxu1 }
0x17cf   : > { %v2345_v32 = vpack.c.bf16 %v2344_v30, %v2344_v30 }
0x17d1   : > { %2855 = vmatmul.mubr.msk.bf16.vlgmr.msra.gmra.mrb[52].mxu0 %vm2385_vm5, %v2345_v32 }
0x18a4   : > { %v2423_v33 = vpop.f32.mrb[52].mxu0 }
0x18a5   : > { %v2424_v3 = vadd.f32 %v2595_v0, %v2423_v33  ;;  %v2856_v34 = vpop.f32.mrb[53].mxu0 }
0x18a6   : > { %v2426_v35 = vpop.f32.mrb[54].mxu0 }
0x18a7   : > { %v2857_v36 = vpop.f32.mrb[55].mxu0  ;;  %v2429_v37 = vadd.f32 %v2424_v3, %v2276_v21 }
0x18a9   : > { %v2432_v38 = vsel %vm736_vm1, %v2429_v37, 0.0 }
0x18aa   : > { %2433 = vadd.xlane.f32.xlu1 %v2432_v38 }
0x1937   : > { %v2434_v39 = vpop.xlane.xlu1 %2433 }
0x1938   : > { %v2435_v40 = vmul.f32 0.03125, %v2434_v39 }
0x193a   : > { %v2436_v41 = vsub.f32 %v2429_v37, %v2435_v40 }
0x193c   : > { %v2437_v42 = vmul.f32 %v2436_v41, %v2436_v41 }
0x193e   : > { %v2438_v43 = vsel %vm736_vm1, %v2437_v42, 0.0 }
0x193f   : > { %2439 = vadd.xlane.f32.xlu1 %v2438_v43 }
0x19cc   : > { %v2440_v44 = vpop.xlane.xlu1 %2439 }
0x19cd   : > { %v2441_v52 = vmul.f32 0.03125, %v2440_v44 }
0x19cf   : > { %v2442_v46 = vadd.f32 1e-05, %v2441_v52 }
0x19d1   : > { %2938 = vrsqrt.f32 %v2442_v46 }
0x19db   : > { %v2939_v47 = vpop.eup %2938 }
0x19dc   : > { %v2444_v49 = vmul.f32 %v2939_v47, %v2436_v41 }
0x19de   : > { %v2451_v51 = vmul.f32 %v2601_v48, %v2444_v49 }
0x19e0   : > { %v2458_v53 = vadd.f32 %v2602_v50, %v2451_v51 }
0x19e2   : > { %v2459_v54 = vpack.c.bf16 %v2458_v53, %v2458_v53 }
0x19e4   : > { %2461 = vst.msk [vmem:[%s708_s24] sm:$0xf] %vm2460_vm6, %v2459_v54 }
0x19e5 PF: > { %s33_s3 = sadd.s32 1, %s2978_s3  }
0x19e6   : > { %p30_p2 = scmp.ge.s32.totalorder %s33_s3, 4  }
0x19e8   :  { %32 = sbr.rel (!%p30_p2) target bundleno = 9 (0x9), region = 146 }
0x19ef   :  { %2481 = vsyncpa [#allocation3], 1 }
0x19f0   :  { %2483 = vsyncpa [#allocation3 + $0x1], 1 }

</bundles_post_ra>
